<compile_context>
chip_gen: v7x
topology: tpu7x:2x2x1
jax: 0.10.0
libtpu: 0.0.40
codegen_flags: <defaults>
</compile_context>

<pallas_src>
import functools

import numpy as np
import jax
import jax.numpy as jnp
from jax import lax
from jax.experimental import pallas as pl
from jax.experimental.pallas import tpu as pltpu


# ----------------------------------------------------------------------------
# Small static helpers
# ----------------------------------------------------------------------------
def _pick_tile(n, prefs=(512, 256, 128)):
    """Lane-dim tile: a 128-aligned divisor of n if possible, else the full dim."""
    if n % 128 == 0:
        for p in prefs:
            if n % p == 0:
                return p
        return 128
    return n


def _pick_row_tile(m, cap=256):
    """Row (sublane) tile: full dim if small, else a multiple-of-8 divisor <= cap."""
    if m <= cap:
        return m
    for t in range(cap, 7, -8):
        if m % t == 0:
            return t
    return cap  # cdiv fallback; pad rows are computed and discarded


def _gelu_exact(x):
    # Exact (erf-based) GELU matching torch.nn.GELU(); erf via Abramowitz &
    # Stegun 7.1.26 (|err| <= 1.5e-7) so it lowers with only exp/abs/where.
    # The rational prologue's divide goes to the EUP via approx reciprocal.
    a1, a2, a3, a4, a5 = 0.254829592, -0.284496736, 1.421413741, -1.453152027, 1.061405429
    p = 0.3275911
    z = x * 0.7071067811865476
    sgn = jnp.where(z >= 0.0, 1.0, -1.0)
    az = jnp.abs(z)
    t = pl.reciprocal(1.0 + p * az, approx=True)
    poly = ((((a5 * t + a4) * t + a3) * t + a2) * t + a1) * t
    erf = sgn * (1.0 - poly * jnp.exp(-az * az))
    return 0.5 * x * (1.0 + erf)


# ----------------------------------------------------------------------------
# Pallas kernels
# ----------------------------------------------------------------------------
def _ln_matmul_kernel(x_ref, g_ref, b_ref, w_ref, bias_ref, o_ref, xn_ref, *, eps, act):
    """out = act(LayerNorm(x) @ W + bias).

    LN runs once per row tile (j == 0) into a bf16 VMEM scratch; every
    N-column tile reuses it (no redundant mean/var/rsqrt per j).
    """
    @pl.when(pl.program_id(1) == 0)
    def _():
        x = x_ref[...].astype(jnp.float32)
        mean = jnp.mean(x, axis=-1, keepdims=True)
        xc = x - mean
        var = jnp.mean(xc * xc, axis=-1, keepdims=True)
        xn = xc * lax.rsqrt(var + eps) * g_ref[...] + b_ref[...]
        xn_ref[...] = xn.astype(jnp.bfloat16)

    acc = jnp.dot(xn_ref[...], w_ref[...], preferred_element_type=jnp.float32)
    acc = acc + bias_ref[...]
    if act == "gelu":
        acc = _gelu_exact(acc)
    o_ref[...] = acc.astype(o_ref.dtype)


def ln_matmul(x, gamma, beta, w, bias=None, act=None,
              out_dtype=jnp.float32, eps=1e-5):
    M, K = x.shape
    _, N = w.shape
    if bias is None:
        bias = jnp.zeros((N,), jnp.float32)
    tm = _pick_row_tile(M)
    tn = _pick_tile(N)
    assert N % tn == 0, (N, tn)
    grid = (pl.cdiv(M, tm), N // tn)
    return pl.pallas_call(
        functools.partial(_ln_matmul_kernel, eps=eps, act=act),
        out_shape=jax.ShapeDtypeStruct((M, N), out_dtype),
        grid=grid,
        in_specs=[
            pl.BlockSpec((tm, K), lambda i, j: (i, 0)),
            pl.BlockSpec((1, K), lambda i, j: (0, 0)),
            pl.BlockSpec((1, K), lambda i, j: (0, 0)),
            pl.BlockSpec((K, tn), lambda i, j: (0, j)),
            pl.BlockSpec((1, tn), lambda i, j: (0, j)),
        ],
        out_specs=pl.BlockSpec((tm, tn), lambda i, j: (i, j)),
        scratch_shapes=[pltpu.VMEM((tm, K), jnp.bfloat16)],
        compiler_params=pltpu.CompilerParams(
            dimension_semantics=("parallel", "arbitrary")),
    )(x,
      gamma.astype(jnp.float32).reshape(1, K),
      beta.astype(jnp.float32).reshape(1, K),
      w.astype(jnp.bfloat16),
      bias.astype(jnp.float32).reshape(1, N))


def _matmul_kernel(*refs, has_residual):
    """out = a @ w + bias (+ residual), f32 accumulated in the output block."""
    if has_residual:
        a_ref, w_ref, bias_ref, res_ref, o_ref = refs
    else:
        a_ref, w_ref, bias_ref, o_ref = refs
        res_ref = None

    @pl.when(pl.program_id(2) == 0)
    def _():
        init = jnp.broadcast_to(bias_ref[...], o_ref.shape)
        if has_residual:
            init = init + res_ref[...].astype(jnp.float32)
        o_ref[...] = init

    o_ref[...] += jnp.dot(a_ref[...].astype(jnp.bfloat16), w_ref[...],
                          preferred_element_type=jnp.float32)


def matmul_bias(a, w, bias=None, residual=None):
    """a @ w + bias (+ residual).  f32 output block doubles as the accumulator
    (resident across k); K not tiled when it fits (K <= 2048)."""
    M, K = a.shape
    _, N = w.shape
    if bias is None:
        bias = jnp.zeros((N,), jnp.float32)
    tm = _pick_row_tile(M)
    tn = _pick_tile(N)
    tk = K if K <= 2048 else _pick_tile(K, prefs=(1024, 512, 256, 128))
    assert N % tn == 0 and K % tk == 0, (N, tn, K, tk)
    grid = (pl.cdiv(M, tm), N // tn, K // tk)
    in_specs = [
        pl.BlockSpec((tm, tk), lambda i, j, k: (i, k)),
        pl.BlockSpec((tk, tn), lambda i, j, k: (k, j)),
        pl.BlockSpec((1, tn), lambda i, j, k: (0, j)),
    ]
    args = [a, w.astype(jnp.bfloat16), bias.astype(jnp.float32).reshape(1, N)]
    if residual is not None:
        in_specs.append(pl.BlockSpec((tm, tn), lambda i, j, k: (i, j)))
        args.append(residual)
    return pl.pallas_call(
        functools.partial(_matmul_kernel, has_residual=residual is not None),
        out_shape=jax.ShapeDtypeStruct((M, N), jnp.float32),
        grid=grid,
        in_specs=in_specs,
        out_specs=pl.BlockSpec((tm, tn), lambda i, j, k: (i, j)),
        compiler_params=pltpu.CompilerParams(
            dimension_semantics=("parallel", "parallel", "arbitrary")),
    )(*args)


def _matmul_ln_kernel(x_ref, w_ref, bias_ref, g_ref, bt_ref, o_ref, *, eps):
    """out = LayerNorm(a @ w + bias)  -- patch-embed conv + patch_norm fused."""
    acc = jnp.dot(x_ref[...].astype(jnp.bfloat16), w_ref[...],
                  preferred_element_type=jnp.float32)
    acc = acc + bias_ref[...]
    mean = jnp.mean(acc, axis=-1, keepdims=True)
    xc = acc - mean
    var = jnp.mean(xc * xc, axis=-1, keepdims=True)
    o_ref[...] = xc * lax.rsqrt(var + eps) * g_ref[...] + bt_ref[...]


def matmul_bias_ln(a, w, bias, gamma, beta, eps=1e-5):
    M, K = a.shape
    _, N = w.shape
    tm = _pick_row_tile(M)
    grid = (pl.cdiv(M, tm),)
    return pl.pallas_call(
        functools.partial(_matmul_ln_kernel, eps=eps),
        out_shape=jax.ShapeDtypeStruct((M, N), jnp.float32),
        grid=grid,
        in_specs=[
            pl.BlockSpec((tm, K), lambda i: (i, 0)),
            pl.BlockSpec((K, N), lambda i: (0, 0)),
            pl.BlockSpec((1, N), lambda i: (0, 0)),
            pl.BlockSpec((1, N), lambda i: (0, 0)),
            pl.BlockSpec((1, N), lambda i: (0, 0)),
        ],
        out_specs=pl.BlockSpec((tm, N), lambda i: (i, 0)),
        compiler_params=pltpu.CompilerParams(dimension_semantics=("parallel",)),
    )(a, w.astype(jnp.bfloat16),
      bias.astype(jnp.float32).reshape(1, N),
      gamma.astype(jnp.float32).reshape(1, N),
      beta.astype(jnp.float32).reshape(1, N))


def _layernorm_kernel(x_ref, g_ref, b_ref, o_ref, *, eps):
    x = x_ref[...].astype(jnp.float32)
    mean = jnp.mean(x, axis=-1, keepdims=True)
    xc = x - mean
    var = jnp.mean(xc * xc, axis=-1, keepdims=True)
    o_ref[...] = (xc * lax.rsqrt(var + eps) * g_ref[...] + b_ref[...]).astype(o_ref.dtype)


def layernorm(x, gamma, beta, eps=1e-5):
    """Standalone channel LayerNorm (LayerNorm2d over dim=1) on (tokens, C)."""
    M, C = x.shape
    tm = _pick_row_tile(M)
    return pl.pallas_call(
        functools.partial(_layernorm_kernel, eps=eps),
        out_shape=jax.ShapeDtypeStruct((M, C), jnp.float32),
        grid=(pl.cdiv(M, tm),),
        in_specs=[
            pl.BlockSpec((tm, C), lambda i: (i, 0)),
            pl.BlockSpec((1, C), lambda i: (0, 0)),
            pl.BlockSpec((1, C), lambda i: (0, 0)),
        ],
        out_specs=pl.BlockSpec((tm, C), lambda i: (i, 0)),
        compiler_params=pltpu.CompilerParams(dimension_semantics=("parallel",)),
    )(x, gamma.astype(jnp.float32).reshape(1, C),
      beta.astype(jnp.float32).reshape(1, C))


def _win_attn_kernel(*refs, scale, num_heads, head_dim, ws, nw, has_mask):
    """Window attention on a strip of nw windows (one window row per step).

    The window partition/reverse live entirely in the BlockSpec: the kernel
    reads a (1, ws, W, 3C) strip of the qkv map and writes the matching
    (1, ws, W, C) strip of the output feature map.
    """
    if has_mask:
        qkv_ref, rel_ref, mask_ref, o_ref = refs
    else:
        qkv_ref, rel_ref, o_ref = refs
        mask_ref = None
    C = num_heads * head_dim
    N = ws * ws
    for w in range(nw):                                   # static window loop
        c0 = w * ws
        win = qkv_ref[:, :, c0:c0 + ws, :].reshape(N, 3 * C)   # (N, 3C) bf16
        if has_mask:
            msk = mask_ref[0, w].astype(jnp.float32)            # (N, N)
        outs = []
        for h in range(num_heads):                        # static head loop
            qo = h * head_dim
            q = win[:, qo:qo + head_dim]
            k = win[:, C + qo:C + qo + head_dim]
            v = win[:, 2 * C + qo:2 * C + qo + head_dim]
            s = lax.dot_general(q, k, (((1,), (1,)), ((), ())),
                                preferred_element_type=jnp.float32)
            s = s * scale + rel_ref[h].astype(jnp.float32)
            if has_mask:
                s = s + msk
            s = s - jnp.max(s, axis=-1, keepdims=True)
            p = jnp.exp(s)
            l = jnp.sum(p, axis=-1, keepdims=True)
            pv = lax.dot_general(p.astype(win.dtype), v, (((1,), (0,)), ((), ())),
                                 preferred_element_type=jnp.float32)
            # deferred softmax normalization: EUP reciprocal on (N,1), scale PV
            outs.append(pv * pl.reciprocal(l, approx=True))
        o_win = jnp.concatenate(outs, axis=-1).reshape(1, ws, ws, C)
        o_ref[:, :, c0:c0 + ws, :] = o_win.astype(o_ref.dtype)


def window_attention(qkv_map, rel_bias, mask, scale, num_heads, ws):
    """softmax(q k^T * scale + rel_bias (+ shift mask)) v, windowed via BlockSpec.

    qkv_map: (B, H, W, 3C) bf16; output: (B, H, W, C) bf16 (window_reverse fused).
    """
    B, H, W, threeC = qkv_map.shape
    C = threeC // 3
    hd = C // num_heads
    assert H % ws == 0 and W % ws == 0, (H, W, ws)
    nh, nw = H // ws, W // ws
    N = ws * ws
    grid = (B, nh)
    in_specs = [
        pl.BlockSpec((1, ws, W, threeC), lambda b, i: (b, i, 0, 0)),
        pl.BlockSpec((num_heads, N, N), lambda b, i: (0, 0, 0)),    # resident bias
    ]
    args = [qkv_map, rel_bias.astype(jnp.float32)]
    if mask is not None:
        assert mask.shape == (nh, nw, N, N), mask.shape
        in_specs.append(pl.BlockSpec((1, nw, N, N), lambda b, i: (i, 0, 0, 0)))
        args.append(mask.astype(jnp.float32))
    return pl.pallas_call(
        functools.partial(_win_attn_kernel, scale=scale, num_heads=num_heads,
                          head_dim=hd, ws=ws, nw=nw, has_mask=mask is not None),
        out_shape=jax.ShapeDtypeStruct((B, H, W, C), jnp.bfloat16),
        grid=grid,
        in_specs=in_specs,
        out_specs=pl.BlockSpec((1, ws, W, C), lambda b, i: (b, i, 0, 0)),
        compiler_params=pltpu.CompilerParams(
            dimension_semantics=("parallel", "parallel")),
    )(*args)


# ----------------------------------------------------------------------------
# Static helpers (trace-time glue)
# ----------------------------------------------------------------------------
def relative_position_index_np(ws):
    coords = np.stack(np.meshgrid(np.arange(ws), np.arange(ws), indexing="ij"))
    flat = coords.reshape(2, -1)
    rel = flat[:, :, None] - flat[:, None, :]
    rel = rel.transpose(1, 2, 0).astype(np.int64)
    rel[..., 0] += ws - 1
    rel[..., 1] += ws - 1
    rel[..., 0] *= 2 * ws - 1
    return rel.sum(-1)


def shifted_window_attn_mask_np(H, W, ws, shift):
    img = np.zeros((H, W), np.float32)
    cnt = 0
    for hs in (slice(0, -ws), slice(-ws, -shift), slice(-shift, None)):
        for wl in (slice(0, -ws), slice(-ws, -shift), slice(-shift, None)):
            img[hs, wl] = cnt
            cnt += 1
    mw = img.reshape(H // ws, ws, W // ws, ws).transpose(0, 2, 1, 3)
    mw = mw.reshape(-1, ws * ws)
    diff = mw[:, None, :] - mw[:, :, None]
    mask = np.where(diff != 0, -100.0, 0.0).astype(np.float32)       # (nW, N, N)
    return mask.reshape(H // ws, W // ws, ws * ws, ws * ws)          # (nh, nw, N, N)


# ----------------------------------------------------------------------------
# Model blocks (glue around the Pallas kernels)
# ----------------------------------------------------------------------------
def patch_embed(x_nchw, p, patch_size, embed):
    B, C, H, W = x_nchw.shape
    ps = patch_size
    # TODO(synk): PatchEmbedding4d pads when H/W % patch_size != 0; demo shapes divide evenly.
    Hp, Wp = H // ps, W // ps
    x = x_nchw.reshape(B, C, Hp, ps, Wp, ps).transpose(0, 2, 4, 1, 3, 5)
    x = x.reshape(B * Hp * Wp, C * ps * ps)               # im2col of the strided conv
    # conv == linear on patches; patch_norm fused as the matmul epilogue.
    x = matmul_bias_ln(x, p["proj_w"], p["proj_b"], p["norm_g"], p["norm_b"])
    return x.reshape(B, Hp, Wp, embed)


def swin_block(x, p, num_heads, qk_scale):
    B, H, W, C = x.shape
    ws, shift = p["ws"], p["shift"]
    hd = C // num_heads
    scale = qk_scale if qk_scale is not None else hd ** -0.5

    # ---- window attention branch -------------------------------------------
    xs = x
    if shift > 0:
        # TODO(synk): cyclic shift stays as XLA data movement; a BlockSpec
        # formulation would need wraparound gather support.
        xs = jnp.roll(xs, shift=(-shift, -shift), axis=(1, 2))
    # TODO(synk): H/W not divisible by window_size would need padding; demo shapes divide evenly.
    xs_tok = xs.reshape(B * H * W, C)                     # rolled shortcut / qkv input

    # norm1 + qkv fused, per token (window partition is expressed in the
    # attention kernel's BlockSpec, so no partition pass here).
    qkv = ln_matmul(xs_tok, p["norm1_g"], p["norm1_b"], p["qkv_w"], p["qkv_b"],
                    out_dtype=jnp.bfloat16)
    qkv_map = qkv.reshape(B, H, W, 3 * C)

    mask = p["attn_mask"] if shift > 0 else None
    attn = window_attention(qkv_map, p["rel_bias"], mask, scale, num_heads, ws)

    # proj + bias + residual fused (residual is the rolled shortcut; rolling
    # back afterwards restores shortcut + attn_branch exactly).
    xw = matmul_bias(attn.reshape(B * H * W, C), p["proj_w"], p["proj_b"],
                     residual=xs_tok)
    x = xw.reshape(B, H, W, C)
    if shift > 0:
        x = jnp.roll(x, shift=(shift, shift), axis=(1, 2))

    # ---- MLP branch: LN+fc1+GELU fused, then fc2+bias+residual fused -------
    xt = x.reshape(B * H * W, C)
    h = ln_matmul(xt, p["norm2_g"], p["norm2_b"], p["fc1_w"], p["fc1_b"],
                  act="gelu", out_dtype=jnp.bfloat16)
    x = matmul_bias(h, p["fc2_w"], p["fc2_b"], residual=xt)
    return x.reshape(B, H, W, C)


def patch_merging(x, p):
    B, H, W, C = x.shape
    # TODO(synk): the 2x2 strided gather + concat stays as XLA data movement.
    x0 = x[:, 0::2, 0::2, :]
    x1 = x[:, 1::2, 0::2, :]
    x2 = x[:, 0::2, 1::2, :]
    x3 = x[:, 1::2, 1::2, :]
    xc = jnp.concatenate([x0, x1, x2, x3], axis=-1).reshape(-1, 4 * C)
    # LayerNorm(4C) fused into the bias-free 4C -> 2C reduction matmul.
    xt = ln_matmul(xc, p["norm_g"], p["norm_b"], p["reduction_w"])
    return xt.reshape(B, H // 2, W // 2, 2 * C)


def horizon_swin_forward(x_nchw, params, cfg):
    # QuantStub / DeQuantStub are identity in float mode; Dropout(p=0) is identity.
    embed = cfg["embedding_dims"]
    x = patch_embed(x_nchw, params["patch_embed"], cfg["patch_size"], embed)
    num_layers = len(cfg["depth_list"])
    outs = []
    for i in range(num_layers):
        layer = params["layers"][i]
        for bp in layer["blocks"]:
            x = swin_block(x, bp, cfg["num_heads"][i], cfg["qk_scale"])
        x_out = x
        if "downsample" in layer:
            x = patch_merging(x, layer["downsample"])
        if (i in cfg["out_indices"]) and not cfg["include_top"]:
            B, H, W, C = x_out.shape
            npar = params[f"norm{i}"]
            t = layernorm(x_out.reshape(-1, C), npar["g"], npar["b"]).reshape(B, H, W, C)
            outs.append(t.transpose(0, 3, 1, 2))           # NCHW feature maps
    if not cfg["include_top"]:
        return outs
    B, H, W, C = x.shape
    xn = layernorm(x.reshape(-1, C), params["norm"]["g"], params["norm"]["b"])
    pooled = jnp.mean(xn.reshape(B, H * W, C), axis=1)      # AdaptiveAvgPool2d((1,1))
    logits = matmul_bias(pooled, params["head"]["w"], params["head"]["b"])  # 1x1 conv
    return logits.reshape(-1, cfg["num_classes"])            # flat_output


# ----------------------------------------------------------------------------
# Deterministic parameter construction
# ----------------------------------------------------------------------------
class KeyGen:
    def __init__(self, seed):
        self._key = jax.random.PRNGKey(seed)

    def __call__(self):
        self._key, sub = jax.random.split(self._key)
        return sub


def _trunc_normal(key, shape, std=0.02, dtype=jnp.float32):
    w = std * jax.random.truncated_normal(key, -2.0, 2.0, shape, jnp.float32)
    return w.astype(dtype)


def init_params(cfg, image_hw, seed=0):
    kg = KeyGen(seed)
    H, W = image_hw
    p = cfg["patch_size"]
    embed = cfg["embedding_dims"]
    in_ch = cfg["in_channels"]
    num_layers = len(cfg["depth_list"])
    wdt = jnp.bfloat16        # MXU weights stored bf16 once (no per-call cast)

    params = {
        "patch_embed": dict(
            proj_w=_trunc_normal(kg(), (in_ch * p * p, embed), dtype=wdt),
            proj_b=jnp.zeros((embed,), jnp.float32),
            norm_g=jnp.ones((embed,), jnp.float32),
            norm_b=jnp.zeros((embed,), jnp.float32),
        )
    }
    Hc, Wc = H // p, W // p
    layers = []
    for i in range(num_layers):
        dim = int(embed * 2 ** i)
        heads = cfg["num_heads"][i]
        depth = cfg["depth_list"][i]
        hidden = int(dim * cfg["mlp_ratio"])
        # If the feature map is not larger than the window, shrink the window and disable shift.
        ws_eff = min(cfg["window_size"], Hc, Wc)
        N = ws_eff * ws_eff
        rel_index = relative_position_index_np(ws_eff).reshape(-1)
        blocks = []
        for b in range(depth):
            shift = 0
            if (b % 2 == 1) and (min(Hc, Wc) > cfg["window_size"]):
                shift = ws_eff // 2
            rel_table = _trunc_normal(kg(), ((2 * ws_eff - 1) ** 2, heads))
            # Precompute the (nH, N, N) relative-position bias once.
            rel_bias = rel_table[rel_index].reshape(N, N, heads).transpose(2, 0, 1)
            block = dict(
                ws=ws_eff,
                shift=shift,
                norm1_g=jnp.ones((dim,), jnp.float32),
                norm1_b=jnp.zeros((dim,), jnp.float32),
                qkv_w=_trunc_normal(kg(), (dim, 3 * dim), dtype=wdt),
                qkv_b=jnp.zeros((3 * dim,), jnp.float32) if cfg["qkv_bias"] else None,
                rel_bias=rel_bias,
                proj_w=_trunc_normal(kg(), (dim, dim), dtype=wdt),
                proj_b=jnp.zeros((dim,), jnp.float32),
                norm2_g=jnp.ones((dim,), jnp.float32),
                norm2_b=jnp.zeros((dim,), jnp.float32),
                fc1_w=_trunc_normal(kg(), (dim, hidden), dtype=wdt),
                fc1_b=jnp.zeros((hidden,), jnp.float32),
                fc2_w=_trunc_normal(kg(), (hidden, dim), dtype=wdt),
                fc2_b=jnp.zeros((dim,), jnp.float32),
            )
            if shift > 0:
                block["attn_mask"] = jnp.asarray(
                    shifted_window_attn_mask_np(Hc, Wc, ws_eff, shift))  # (nh,nw,N,N)
            blocks.append(block)
        layer = dict(blocks=blocks)
        if i < num_layers - 1:
            layer["downsample"] = dict(
                norm_g=jnp.ones((4 * dim,), jnp.float32),
                norm_b=jnp.zeros((4 * dim,), jnp.float32),
                reduction_w=_trunc_normal(kg(), (4 * dim, 2 * dim), dtype=wdt),
            )
            Hc, Wc = Hc // 2, Wc // 2
        layers.append(layer)
    params["layers"] = layers

    num_features = [int(embed * 2 ** i) for i in range(num_layers)]
    for i in cfg["out_indices"]:
        params[f"norm{i}"] = dict(
            g=jnp.ones((num_features[i],), jnp.float32),
            b=jnp.zeros((num_features[i],), jnp.float32),
        )
    if cfg["include_top"]:
        params["norm"] = dict(
            g=jnp.ones((num_features[-1],), jnp.float32),
            b=jnp.zeros((num_features[-1],), jnp.float32),
        )
        params["head"] = dict(
            w=_trunc_normal(kg(), (num_features[-1], cfg["num_classes"]), dtype=wdt),
            b=jnp.zeros((cfg["num_classes"],), jnp.float32),
        )
    return params


# ----------------------------------------------------------------------------
# Demo
# ----------------------------------------------------------------------------
if __name__ == "__main__":
    cfg = dict(
        depth_list=[2, 2],
        num_heads=[2, 4],
        num_classes=10,
        patch_size=4,
        in_channels=3,
        embedding_dims=16,
        window_size=2,
        mlp_ratio=4.0,
        qkv_bias=True,
        qk_scale=None,
        out_indices=(0, 1),
        include_top=True,
        flat_output=True,
    )
    B, C, H, W = 2, 3, 16, 16
    params = init_params(cfg, (H, W), seed=0)
    x = jax.random.normal(jax.random.PRNGKey(0), (B, C, H, W), jnp.float32)

    fwd = jax.jit(functools.partial(horizon_swin_forward, params=params, cfg=cfg))
    logits = jax.block_until_ready(fwd(x))

    assert logits.shape == (B, cfg["num_classes"]), logits.shape
    assert bool(jnp.all(jnp.isfinite(logits)))
    print("KERNEL_OK")
</pallas_src>

<mosaic_0001>
module attributes {stable_mosaic.version = 11 : i64} {
  func.func @_matmul_kernel(%arg0: i32, %arg1: i32, %arg2: i32, %arg3: memref<32x16xbf16, #tpu.memory_space<vmem>>, %arg4: memref<16x16xbf16, #tpu.memory_space<vmem>>, %arg5: memref<1x16xf32, #tpu.memory_space<vmem>>, %arg6: memref<32x16xf32, #tpu.memory_space<vmem>>, %arg7: memref<32x16xf32, #tpu.memory_space<vmem>>) attributes {dimension_semantics = [#tpu.dimension_semantics<parallel>, #tpu.dimension_semantics<parallel>, #tpu.dimension_semantics<arbitrary>], iteration_bounds = array<i64: 1, 1, 1>, scalar_prefetch = 0 : i64, scratch_operands = 0 : i64, tpu.core_type = #tpu.core_type<tc>, window_params = [{transform_indices = @transform_0, window_bounds = array<i64: 32, 16>}, {transform_indices = @transform_1, window_bounds = array<i64: 16, 16>}, {transform_indices = @transform_2, window_bounds = array<i64: 1, 16>}, {transform_indices = @transform_3, window_bounds = array<i64: 32, 16>}, {transform_indices = @transform_4, window_bounds = array<i64: 32, 16>}]} {
    %c0_i32 = arith.constant 0 : i32
    %0 = arith.cmpi eq, %arg2, %c0_i32 : i32
    %1 = arith.extui %0 : i1 to i32
    %c0_i32_0 = arith.constant 0 : i32
    %2 = arith.cmpi ne, %1, %c0_i32_0 : i32
    scf.if %2 {
      %c0_8 = arith.constant 0 : index
      %c0_9 = arith.constant 0 : index
      %9 = vector.load %arg5[%c0_8, %c0_9] : memref<1x16xf32, #tpu.memory_space<vmem>>, vector<1x16xf32>
      %10 = vector.shape_cast %9 : vector<1x16xf32> to vector<1x16xf32>
      %11 = vector.broadcast %10 : vector<1x16xf32> to vector<32x16xf32>
      %c0_10 = arith.constant 0 : index
      %c0_11 = arith.constant 0 : index
      %12 = vector.load %arg6[%c0_10, %c0_11] : memref<32x16xf32, #tpu.memory_space<vmem>>, vector<32x16xf32>
      %13 = arith.addf %11, %12 : vector<32x16xf32>
      %c0_12 = arith.constant 0 : index
      %c0_13 = arith.constant 0 : index
      %14 = vector.load %arg7[%c0_12, %c0_13] : memref<32x16xf32, #tpu.memory_space<vmem>>, vector<32x16xf32>
      tpu.vector_store %arg7[%c0_12, %c0_13], %13 {strides = array<i32>} : memref<32x16xf32, #tpu.memory_space<vmem>>, vector<32x16xf32>,
    } else {
    }
    %c0 = arith.constant 0 : index
    %c0_1 = arith.constant 0 : index
    %3 = vector.load %arg7[%c0, %c0_1] : memref<32x16xf32, #tpu.memory_space<vmem>>, vector<32x16xf32>
    %c0_2 = arith.constant 0 : index
    %c0_3 = arith.constant 0 : index
    %4 = vector.load %arg3[%c0_2, %c0_3] : memref<32x16xbf16, #tpu.memory_space<vmem>>, vector<32x16xbf16>
    %c0_4 = arith.constant 0 : index
    %c0_5 = arith.constant 0 : index
    %5 = vector.load %arg4[%c0_4, %c0_5] : memref<16x16xbf16, #tpu.memory_space<vmem>>, vector<16x16xbf16>
    %cst = arith.constant dense<0.000000e+00> : vector<32x16xf32>
    %6 = tpu.matmul %4, %5, %cst {dimension_numbers = #tpu.dot_dimension_numbers<[1], [0], [0], [1], [0, 0, 1, 1], [], []>} : vector<32x16xbf16>, vector<16x16xbf16>, vector<32x16xf32> -> vector<32x16xf32>
    %7 = arith.addf %3, %6 : vector<32x16xf32>
    %c0_6 = arith.constant 0 : index
    %c0_7 = arith.constant 0 : index
    %8 = vector.load %arg7[%c0_6, %c0_7] : memref<32x16xf32, #tpu.memory_space<vmem>>, vector<32x16xf32>
    tpu.vector_store %arg7[%c0_6, %c0_7], %7 {strides = array<i32>} : memref<32x16xf32, #tpu.memory_space<vmem>>, vector<32x16xf32>,
    return
  }
  func.func @transform_0(%arg0: i32, %arg1: i32, %arg2: i32) -> (i32, i32) {
    %c0_i32 = arith.constant 0 : i32
    return %arg0, %arg2 : i32, i32
  }
  func.func @transform_1(%arg0: i32, %arg1: i32, %arg2: i32) -> (i32, i32) {
    %c0_i32 = arith.constant 0 : i32
    return %arg2, %arg1 : i32, i32
  }
  func.func @transform_2(%arg0: i32, %arg1: i32, %arg2: i32) -> (i32, i32) {
    %c0_i32 = arith.constant 0 : i32
    %c0_i32_0 = arith.constant 0 : i32
    return %c0_i32, %arg1 : i32, i32
  }
  func.func @transform_3(%arg0: i32, %arg1: i32, %arg2: i32) -> (i32, i32) {
    %c0_i32 = arith.constant 0 : i32
    return %arg0, %arg1 : i32, i32
  }
  func.func @transform_4(%arg0: i32, %arg1: i32, %arg2: i32) -> (i32, i32) {
    %c0_i32 = arith.constant 0 : i32
    return %arg0, %arg1 : i32, i32
  }
}

module attributes {stable_mosaic.version = 11 : i64} {
  func.func @_matmul_ln_kernel(%arg0: i32, %arg1: memref<32x48xf32, #tpu.memory_space<vmem>>, %arg2: memref<48x16xbf16, #tpu.memory_space<vmem>>, %arg3: memref<1x16xf32, #tpu.memory_space<vmem>>, %arg4: memref<1x16xf32, #tpu.memory_space<vmem>>, %arg5: memref<1x16xf32, #tpu.memory_space<vmem>>, %arg6: memref<32x16xf32, #tpu.memory_space<vmem>>) attributes {dimension_semantics = [#tpu.dimension_semantics<parallel>], iteration_bounds = array<i64: 1>, scalar_prefetch = 0 : i64, scratch_operands = 0 : i64, tpu.core_type = #tpu.core_type<tc>, window_params = [{transform_indices = @transform_0, window_bounds = array<i64: 32, 48>}, {pipeline_mode = #tpu.pipeline_mode<synchronous>, transform_indices = @transform_1, window_bounds = array<i64: 48, 16>}, {pipeline_mode = #tpu.pipeline_mode<synchronous>, transform_indices = @transform_2, window_bounds = array<i64: 1, 16>}, {pipeline_mode = #tpu.pipeline_mode<synchronous>, transform_indices = @transform_3, window_bounds = array<i64: 1, 16>}, {pipeline_mode = #tpu.pipeline_mode<synchronous>, transform_indices = @transform_4, window_bounds = array<i64: 1, 16>}, {transform_indices = @transform_5, window_bounds = array<i64: 32, 16>}]} {
    %c0 = arith.constant 0 : index
    %c0_0 = arith.constant 0 : index
    %0 = vector.load %arg1[%c0, %c0_0] : memref<32x48xf32, #tpu.memory_space<vmem>>, vector<32x48xf32>
    %1 = arith.truncf %0 : vector<32x48xf32> to vector<32x48xbf16>
    %c0_1 = arith.constant 0 : index
    %c0_2 = arith.constant 0 : index
    %2 = vector.load %arg2[%c0_1, %c0_2] : memref<48x16xbf16, #tpu.memory_space<vmem>>, vector<48x16xbf16>
    %cst = arith.constant dense<0.000000e+00> : vector<32x16xf32>
    %3 = tpu.matmul %1, %2, %cst {dimension_numbers = #tpu.dot_dimension_numbers<[1], [0], [0], [1], [0, 0, 1, 1], [], []>} : vector<32x48xbf16>, vector<48x16xbf16>, vector<32x16xf32> -> vector<32x16xf32>
    %c0_3 = arith.constant 0 : index
    %c0_4 = arith.constant 0 : index
    %4 = vector.load %arg3[%c0_3, %c0_4] : memref<1x16xf32, #tpu.memory_space<vmem>>, vector<1x16xf32>
    %5 = vector.broadcast %4 : vector<1x16xf32> to vector<32x16xf32>
    %6 = arith.addf %3, %5 : vector<32x16xf32>
    %cst_5 = arith.constant dense<0.000000e+00> : vector<32xf32>
    %7 = vector.multi_reduction <add>, %6, %cst_5 [1] : vector<32x16xf32> to vector<32xf32>
    %8 = vector.shape_cast %7 : vector<32xf32> to vector<32x1xf32>
    %cst_6 = arith.constant 1.600000e+01 : f32
    %9 = vector.broadcast %cst_6 : f32 to vector<32x1xf32>
    %10 = arith.divf %8, %9 : vector<32x1xf32>
    %11 = vector.broadcast %10 : vector<32x1xf32> to vector<32x16xf32>
    %12 = arith.subf %6, %11 : vector<32x16xf32>
    %13 = arith.mulf %12, %12 : vector<32x16xf32>
    %cst_7 = arith.constant dense<0.000000e+00> : vector<32xf32>
    %14 = vector.multi_reduction <add>, %13, %cst_7 [1] : vector<32x16xf32> to vector<32xf32>
    %15 = vector.shape_cast %14 : vector<32xf32> to vector<32x1xf32>
    %cst_8 = arith.constant 1.600000e+01 : f32
    %16 = vector.broadcast %cst_8 : f32 to vector<32x1xf32>
    %17 = arith.divf %15, %16 : vector<32x1xf32>
    %cst_9 = arith.constant 9.99999974E-6 : f32
    %18 = vector.broadcast %cst_9 : f32 to vector<32x1xf32>
    %19 = arith.addf %17, %18 : vector<32x1xf32>
    %20 = math.rsqrt %19 : vector<32x1xf32>
    %21 = vector.broadcast %20 : vector<32x1xf32> to vector<32x16xf32>
    %22 = arith.mulf %12, %21 : vector<32x16xf32>
    %c0_10 = arith.constant 0 : index
    %c0_11 = arith.constant 0 : index
    %23 = vector.load %arg4[%c0_10, %c0_11] : memref<1x16xf32, #tpu.memory_space<vmem>>, vector<1x16xf32>
    %24 = vector.broadcast %23 : vector<1x16xf32> to vector<32x16xf32>
    %25 = arith.mulf %22, %24 : vector<32x16xf32>
    %c0_12 = arith.constant 0 : index
    %c0_13 = arith.constant 0 : index
    %26 = vector.load %arg5[%c0_12, %c0_13] : memref<1x16xf32, #tpu.memory_space<vmem>>, vector<1x16xf32>
    %27 = vector.broadcast %26 : vector<1x16xf32> to vector<32x16xf32>
    %28 = arith.addf %25, %27 : vector<32x16xf32>
    %c0_14 = arith.constant 0 : index
    %c0_15 = arith.constant 0 : index
    %29 = vector.load %arg6[%c0_14, %c0_15] : memref<32x16xf32, #tpu.memory_space<vmem>>, vector<32x16xf32>
    tpu.vector_store %arg6[%c0_14, %c0_15], %28 {strides = array<i32>} : memref<32x16xf32, #tpu.memory_space<vmem>>, vector<32x16xf32>,
    return
  }
  func.func @transform_0(%arg0: i32) -> (i32, i32) {
    %c0_i32 = arith.constant 0 : i32
    %c0_i32_0 = arith.constant 0 : i32
    return %arg0, %c0_i32 : i32, i32
  }
  func.func @transform_1(%arg0: i32) -> (i32, i32) {
    %c0_i32 = arith.constant 0 : i32
    %c0_i32_0 = arith.constant 0 : i32
    %c0_i32_1 = arith.constant 0 : i32
    return %c0_i32, %c0_i32_0 : i32, i32
  }
  func.func @transform_2(%arg0: i32) -> (i32, i32) {
    %c0_i32 = arith.constant 0 : i32
    %c0_i32_0 = arith.constant 0 : i32
    %c0_i32_1 = arith.constant 0 : i32
    return %c0_i32, %c0_i32_0 : i32, i32
  }
  func.func @transform_3(%arg0: i32) -> (i32, i32) {
    %c0_i32 = arith.constant 0 : i32
    %c0_i32_0 = arith.constant 0 : i32
    %c0_i32_1 = arith.constant 0 : i32
    return %c0_i32, %c0_i32_0 : i32, i32
  }
  func.func @transform_4(%arg0: i32) -> (i32, i32) {
    %c0_i32 = arith.constant 0 : i32
    %c0_i32_0 = arith.constant 0 : i32
    %c0_i32_1 = arith.constant 0 : i32
    return %c0_i32, %c0_i32_0 : i32, i32
  }
  func.func @transform_5(%arg0: i32) -> (i32, i32) {
    %c0_i32 = arith.constant 0 : i32
    %c0_i32_0 = arith.constant 0 : i32
    return %arg0, %c0_i32 : i32, i32
  }
}

module attributes {stable_mosaic.version = 11 : i64} {
  func.func @_ln_matmul_kernel(%arg0: i32, %arg1: i32, %arg2: memref<32x16xf32, #tpu.memory_space<vmem>>, %arg3: memref<1x16xf32, #tpu.memory_space<vmem>>, %arg4: memref<1x16xf32, #tpu.memory_space<vmem>>, %arg5: memref<16x48xbf16, #tpu.memory_space<vmem>>, %arg6: memref<1x48xf32, #tpu.memory_space<vmem>>, %arg7: memref<32x48xbf16, #tpu.memory_space<vmem>>, %arg8: memref<32x16xbf16, #tpu.memory_space<vmem>>) attributes {dimension_semantics = [#tpu.dimension_semantics<parallel>, #tpu.dimension_semantics<arbitrary>], iteration_bounds = array<i64: 1, 1>, scalar_prefetch = 0 : i64, scratch_operands = 1 : i64, tpu.core_type = #tpu.core_type<tc>, window_params = [{transform_indices = @transform_0, window_bounds = array<i64: 32, 16>}, {pipeline_mode = #tpu.pipeline_mode<synchronous>, transform_indices = @transform_1, window_bounds = array<i64: 1, 16>}, {pipeline_mode = #tpu.pipeline_mode<synchronous>, transform_indices = @transform_2, window_bounds = array<i64: 1, 16>}, {transform_indices = @transform_3, window_bounds = array<i64: 16, 48>}, {transform_indices = @transform_4, window_bounds = array<i64: 1, 48>}, {transform_indices = @transform_5, window_bounds = array<i64: 32, 48>}]} {
    %c0_i32 = arith.constant 0 : i32
    %0 = arith.cmpi eq, %arg1, %c0_i32 : i32
    %1 = arith.extui %0 : i1 to i32
    %c0_i32_0 = arith.constant 0 : i32
    %2 = arith.cmpi ne, %1, %c0_i32_0 : i32
    scf.if %2 {
      %c0_8 = arith.constant 0 : index
      %c0_9 = arith.constant 0 : index
      %11 = vector.load %arg2[%c0_8, %c0_9] : memref<32x16xf32, #tpu.memory_space<vmem>>, vector<32x16xf32>
      %cst_10 = arith.constant dense<0.000000e+00> : vector<32xf32>
      %12 = vector.multi_reduction <add>, %11, %cst_10 [1] : vector<32x16xf32> to vector<32xf32>
      %13 = vector.shape_cast %12 : vector<32xf32> to vector<32x1xf32>
      %cst_11 = arith.constant 1.600000e+01 : f32
      %14 = vector.broadcast %cst_11 : f32 to vector<32x1xf32>
      %15 = arith.divf %13, %14 : vector<32x1xf32>
      %16 = vector.broadcast %15 : vector<32x1xf32> to vector<32x16xf32>
      %17 = arith.subf %11, %16 : vector<32x16xf32>
      %18 = arith.mulf %17, %17 : vector<32x16xf32>
      %cst_12 = arith.constant dense<0.000000e+00> : vector<32xf32>
      %19 = vector.multi_reduction <add>, %18, %cst_12 [1] : vector<32x16xf32> to vector<32xf32>
      %20 = vector.shape_cast %19 : vector<32xf32> to vector<32x1xf32>
      %cst_13 = arith.constant 1.600000e+01 : f32
      %21 = vector.broadcast %cst_13 : f32 to vector<32x1xf32>
      %22 = arith.divf %20, %21 : vector<32x1xf32>
      %cst_14 = arith.constant 9.99999974E-6 : f32
      %23 = vector.broadcast %cst_14 : f32 to vector<32x1xf32>
      %24 = arith.addf %22, %23 : vector<32x1xf32>
      %25 = math.rsqrt %24 : vector<32x1xf32>
      %26 = vector.broadcast %25 : vector<32x1xf32> to vector<32x16xf32>
      %27 = arith.mulf %17, %26 : vector<32x16xf32>
      %c0_15 = arith.constant 0 : index
      %c0_16 = arith.constant 0 : index
      %28 = vector.load %arg3[%c0_15, %c0_16] : memref<1x16xf32, #tpu.memory_space<vmem>>, vector<1x16xf32>
      %29 = vector.broadcast %28 : vector<1x16xf32> to vector<32x16xf32>
      %30 = arith.mulf %27, %29 : vector<32x16xf32>
      %c0_17 = arith.constant 0 : index
      %c0_18 = arith.constant 0 : index
      %31 = vector.load %arg4[%c0_17, %c0_18] : memref<1x16xf32, #tpu.memory_space<vmem>>, vector<1x16xf32>
      %32 = vector.broadcast %31 : vector<1x16xf32> to vector<32x16xf32>
      %33 = arith.addf %30, %32 : vector<32x16xf32>
      %34 = arith.truncf %33 : vector<32x16xf32> to vector<32x16xbf16>
      %c0_19 = arith.constant 0 : index
      %c0_20 = arith.constant 0 : index
      %35 = vector.load %arg8[%c0_19, %c0_20] : memref<32x16xbf16, #tpu.memory_space<vmem>>, vector<32x16xbf16>
      tpu.vector_store %arg8[%c0_19, %c0_20], %34 {strides = array<i32>} : memref<32x16xbf16, #tpu.memory_space<vmem>>, vector<32x16xbf16>,
    } else {
    }
    %c0 = arith.constant 0 : index
    %c0_1 = arith.constant 0 : index
    %3 = vector.load %arg8[%c0, %c0_1] : memref<32x16xbf16, #tpu.memory_space<vmem>>, vector<32x16xbf16>
    %c0_2 = arith.constant 0 : index
    %c0_3 = arith.constant 0 : index
    %4 = vector.load %arg5[%c0_2, %c0_3] : memref<16x48xbf16, #tpu.memory_space<vmem>>, vector<16x48xbf16>
    %cst = arith.constant dense<0.000000e+00> : vector<32x48xf32>
    %5 = tpu.matmul %3, %4, %cst {dimension_numbers = #tpu.dot_dimension_numbers<[1], [0], [0], [1], [0, 0, 1, 1], [], []>} : vector<32x16xbf16>, vector<16x48xbf16>, vector<32x48xf32> -> vector<32x48xf32>
    %c0_4 = arith.constant 0 : index
    %c0_5 = arith.constant 0 : index
    %6 = vector.load %arg6[%c0_4, %c0_5] : memref<1x48xf32, #tpu.memory_space<vmem>>, vector<1x48xf32>
    %7 = vector.broadcast %6 : vector<1x48xf32> to vector<32x48xf32>
    %8 = arith.addf %5, %7 : vector<32x48xf32>
    %9 = arith.truncf %8 : vector<32x48xf32> to vector<32x48xbf16>
    %c0_6 = arith.constant 0 : index
    %c0_7 = arith.constant 0 : index
    %10 = vector.load %arg7[%c0_6, %c0_7] : memref<32x48xbf16, #tpu.memory_space<vmem>>, vector<32x48xbf16>
    tpu.vector_store %arg7[%c0_6, %c0_7], %9 {strides = array<i32>} : memref<32x48xbf16, #tpu.memory_space<vmem>>, vector<32x48xbf16>,
    return
  }
  func.func @transform_0(%arg0: i32, %arg1: i32) -> (i32, i32) {
    %c0_i32 = arith.constant 0 : i32
    %c0_i32_0 = arith.constant 0 : i32
    return %arg0, %c0_i32 : i32, i32
  }
  func.func @transform_1(%arg0: i32, %arg1: i32) -> (i32, i32) {
    %c0_i32 = arith.constant 0 : i32
    %c0_i32_0 = arith.constant 0 : i32
    %c0_i32_1 = arith.constant 0 : i32
    return %c0_i32, %c0_i32_0 : i32, i32
  }
  func.func @transform_2(%arg0: i32, %arg1: i32) -> (i32, i32) {
    %c0_i32 = arith.constant 0 : i32
    %c0_i32_0 = arith.constant 0 : i32
    %c0_i32_1 = arith.constant 0 : i32
    return %c0_i32, %c0_i32_0 : i32, i32
  }
  func.func @transform_3(%arg0: i32, %arg1: i32) -> (i32, i32) {
    %c0_i32 = arith.constant 0 : i32
    %c0_i32_0 = arith.constant 0 : i32
    return %c0_i32, %arg1 : i32, i32
  }
  func.func @transform_4(%arg0: i32, %arg1: i32) -> (i32, i32) {
    %c0_i32 = arith.constant 0 : i32
    %c0_i32_0 = arith.constant 0 : i32
    return %c0_i32, %arg1 : i32, i32
  }
  func.func @transform_5(%arg0: i32, %arg1: i32) -> (i32, i32) {
    %c0_i32 = arith.constant 0 : i32
    return %arg0, %arg1 : i32, i32
  }
}

module attributes {stable_mosaic.version = 11 : i64} {
  func.func @_win_attn_kernel(%arg0: i32, %arg1: i32, %arg2: memref<1x2x4x48xbf16, #tpu.memory_space<vmem>>, %arg3: memref<2x4x4xf32, #tpu.memory_space<vmem>>, %arg4: memref<1x2x4x16xbf16, #tpu.memory_space<vmem>>) attributes {dimension_semantics = [#tpu.dimension_semantics<parallel>, #tpu.dimension_semantics<parallel>], iteration_bounds = array<i64: 2, 2>, scalar_prefetch = 0 : i64, scratch_operands = 0 : i64, tpu.core_type = #tpu.core_type<tc>, window_params = [{transform_indices = @transform_0, window_bounds = array<i64: 1, 2, 4, 48>}, {pipeline_mode = #tpu.pipeline_mode<synchronous>, transform_indices = @transform_1, window_bounds = array<i64: 2, 4, 4>}, {transform_indices = @transform_2, window_bounds = array<i64: 1, 2, 4, 16>}]} {
    %c0 = arith.constant 0 : index
    %c0_0 = arith.constant 0 : index
    %c0_1 = arith.constant 0 : index
    %c0_2 = arith.constant 0 : index
    %0 = vector.load %arg2[%c0, %c0_0, %c0_1, %c0_2] : memref<1x2x4x48xbf16, #tpu.memory_space<vmem>>, vector<1x2x2x48xbf16>
    %1 = vector.shape_cast %0 : vector<1x2x2x48xbf16> to vector<4x48xbf16>
    %2 = vector.extract_strided_slice %1 {offsets = [0, 0], sizes = [4, 8], strides = [1, 1]} : vector<4x48xbf16> to vector<4x8xbf16>
    %3 = vector.extract_strided_slice %1 {offsets = [0, 16], sizes = [4, 8], strides = [1, 1]} : vector<4x48xbf16> to vector<4x8xbf16>
    %4 = vector.extract_strided_slice %1 {offsets = [0, 32], sizes = [4, 8], strides = [1, 1]} : vector<4x48xbf16> to vector<4x8xbf16>
    %cst = arith.constant dense<0.000000e+00> : vector<4x4xf32>
    %5 = tpu.matmul %2, %3, %cst {dimension_numbers = #tpu.dot_dimension_numbers<[1], [1], [0], [0], [0, 0, 1, 0], [], []>} : vector<4x8xbf16>, vector<4x8xbf16>, vector<4x4xf32> -> vector<4x4xf32>
    %cst_3 = arith.constant 0.353553385 : f32
    %6 = vector.broadcast %cst_3 : f32 to vector<4x4xf32>
    %7 = arith.mulf %5, %6 : vector<4x4xf32>
    %c0_4 = arith.constant 0 : index
    %c0_5 = arith.constant 0 : index
    %c0_6 = arith.constant 0 : index
    %8 = vector.load %arg3[%c0_4, %c0_5, %c0_6] : memref<2x4x4xf32, #tpu.memory_space<vmem>>, vector<1x4x4xf32>
    %9 = vector.shape_cast %8 : vector<1x4x4xf32> to vector<4x4xf32>
    %10 = arith.addf %7, %9 : vector<4x4xf32>
    %cst_7 = arith.constant dense<0xFF800000> : vector<4xf32>
    %11 = vector.multi_reduction <maximumf>, %10, %cst_7 [1] : vector<4x4xf32> to vector<4xf32>
    %12 = vector.shape_cast %11 : vector<4xf32> to vector<4x1xf32>
    %13 = vector.broadcast %12 : vector<4x1xf32> to vector<4x4xf32>
    %14 = arith.subf %10, %13 : vector<4x4xf32>
    %15 = math.exp %14 : vector<4x4xf32>
    %cst_8 = arith.constant dense<0.000000e+00> : vector<4xf32>
    %16 = vector.multi_reduction <add>, %15, %cst_8 [1] : vector<4x4xf32> to vector<4xf32>
    %17 = vector.shape_cast %16 : vector<4xf32> to vector<4x1xf32>
    %18 = arith.truncf %15 : vector<4x4xf32> to vector<4x4xbf16>
    %cst_9 = arith.constant dense<0.000000e+00> : vector<4x8xf32>
    %19 = tpu.matmul %18, %4, %cst_9 {dimension_numbers = #tpu.dot_dimension_numbers<[1], [0], [0], [1], [0, 0, 1, 1], [], []>} : vector<4x4xbf16>, vector<4x8xbf16>, vector<4x8xf32> -> vector<4x8xf32>
    %20 = tpu.reciprocal %17 {approx = true} : vector<4x1xf32> -> vector<4x1xf32>
    %21 = vector.broadcast %20 : vector<4x1xf32> to vector<4x8xf32>
    %22 = arith.mulf %19, %21 : vector<4x8xf32>
    %23 = vector.extract_strided_slice %1 {offsets = [0, 8], sizes = [4, 8], strides = [1, 1]} : vector<4x48xbf16> to vector<4x8xbf16>
    %24 = vector.extract_strided_slice %1 {offsets = [0, 24], sizes = [4, 8], strides = [1, 1]} : vector<4x48xbf16> to vector<4x8xbf16>
    %25 = vector.extract_strided_slice %1 {offsets = [0, 40], sizes = [4, 8], strides = [1, 1]} : vector<4x48xbf16> to vector<4x8xbf16>
    %cst_10 = arith.constant dense<0.000000e+00> : vector<4x4xf32>
    %26 = tpu.matmul %23, %24, %cst_10 {dimension_numbers = #tpu.dot_dimension_numbers<[1], [1], [0], [0], [0, 0, 1, 0], [], []>} : vector<4x8xbf16>, vector<4x8xbf16>, vector<4x4xf32> -> vector<4x4xf32>
    %cst_11 = arith.constant 0.353553385 : f32
    %27 = vector.broadcast %cst_11 : f32 to vector<4x4xf32>
    %28 = arith.mulf %26, %27 : vector<4x4xf32>
    %c1 = arith.constant 1 : index
    %c0_12 = arith.constant 0 : index
    %c0_13 = arith.constant 0 : index
    %29 = vector.load %arg3[%c1, %c0_12, %c0_13] : memref<2x4x4xf32, #tpu.memory_space<vmem>>, vector<1x4x4xf32>
    %30 = vector.shape_cast %29 : vector<1x4x4xf32> to vector<4x4xf32>
    %31 = arith.addf %28, %30 : vector<4x4xf32>
    %cst_14 = arith.constant dense<0xFF800000> : vector<4xf32>
    %32 = vector.multi_reduction <maximumf>, %31, %cst_14 [1] : vector<4x4xf32> to vector<4xf32>
    %33 = vector.shape_cast %32 : vector<4xf32> to vector<4x1xf32>
    %34 = vector.broadcast %33 : vector<4x1xf32> to vector<4x4xf32>
    %35 = arith.subf %31, %34 : vector<4x4xf32>
    %36 = math.exp %35 : vector<4x4xf32>
    %cst_15 = arith.constant dense<0.000000e+00> : vector<4xf32>
    %37 = vector.multi_reduction <add>, %36, %cst_15 [1] : vector<4x4xf32> to vector<4xf32>
    %38 = vector.shape_cast %37 : vector<4xf32> to vector<4x1xf32>
    %39 = arith.truncf %36 : vector<4x4xf32> to vector<4x4xbf16>
    %cst_16 = arith.constant dense<0.000000e+00> : vector<4x8xf32>
    %40 = tpu.matmul %39, %25, %cst_16 {dimension_numbers = #tpu.dot_dimension_numbers<[1], [0], [0], [1], [0, 0, 1, 1], [], []>} : vector<4x4xbf16>, vector<4x8xbf16>, vector<4x8xf32> -> vector<4x8xf32>
    %41 = tpu.reciprocal %38 {approx = true} : vector<4x1xf32> -> vector<4x1xf32>
    %42 = vector.broadcast %41 : vector<4x1xf32> to vector<4x8xf32>
    %43 = arith.mulf %40, %42 : vector<4x8xf32>
    %44 = tpu.concatenate %22, %43 in 1 : vector<4x8xf32>, vector<4x8xf32> -> vector<4x16xf32>
    %45 = vector.shape_cast %44 : vector<4x16xf32> to vector<1x2x2x16xf32>
    %46 = arith.truncf %45 : vector<1x2x2x16xf32> to vector<1x2x2x16xbf16>
    %c0_17 = arith.constant 0 : index
    %c0_18 = arith.constant 0 : index
    %c0_19 = arith.constant 0 : index
    %c0_20 = arith.constant 0 : index
    %47 = vector.load %arg4[%c0_17, %c0_18, %c0_19, %c0_20] : memref<1x2x4x16xbf16, #tpu.memory_space<vmem>>, vector<1x2x2x16xbf16>
    tpu.vector_store %arg4[%c0_17, %c0_18, %c0_19, %c0_20], %46 {strides = array<i32>} : memref<1x2x4x16xbf16, #tpu.memory_space<vmem>>, vector<1x2x2x16xbf16>,
    %c0_21 = arith.constant 0 : index
    %c0_22 = arith.constant 0 : index
    %c2 = arith.constant 2 : index
    %c0_23 = arith.constant 0 : index
    %48 = vector.load %arg2[%c0_21, %c0_22, %c2, %c0_23] : memref<1x2x4x48xbf16, #tpu.memory_space<vmem>>, vector<1x2x2x48xbf16>
    %49 = vector.shape_cast %48 : vector<1x2x2x48xbf16> to vector<4x48xbf16>
    %50 = vector.extract_strided_slice %49 {offsets = [0, 0], sizes = [4, 8], strides = [1, 1]} : vector<4x48xbf16> to vector<4x8xbf16>
    %51 = vector.extract_strided_slice %49 {offsets = [0, 16], sizes = [4, 8], strides = [1, 1]} : vector<4x48xbf16> to vector<4x8xbf16>
    %52 = vector.extract_strided_slice %49 {offsets = [0, 32], sizes = [4, 8], strides = [1, 1]} : vector<4x48xbf16> to vector<4x8xbf16>
    %cst_24 = arith.constant dense<0.000000e+00> : vector<4x4xf32>
    %53 = tpu.matmul %50, %51, %cst_24 {dimension_numbers = #tpu.dot_dimension_numbers<[1], [1], [0], [0], [0, 0, 1, 0], [], []>} : vector<4x8xbf16>, vector<4x8xbf16>, vector<4x4xf32> -> vector<4x4xf32>
    %cst_25 = arith.constant 0.353553385 : f32
    %54 = vector.broadcast %cst_25 : f32 to vector<4x4xf32>
    %55 = arith.mulf %53, %54 : vector<4x4xf32>
    %c0_26 = arith.constant 0 : index
    %c0_27 = arith.constant 0 : index
    %c0_28 = arith.constant 0 : index
    %56 = vector.load %arg3[%c0_26, %c0_27, %c0_28] : memref<2x4x4xf32, #tpu.memory_space<vmem>>, vector<1x4x4xf32>
    %57 = vector.shape_cast %56 : vector<1x4x4xf32> to vector<4x4xf32>
    %58 = arith.addf %55, %57 : vector<4x4xf32>
    %cst_29 = arith.constant dense<0xFF800000> : vector<4xf32>
    %59 = vector.multi_reduction <maximumf>, %58, %cst_29 [1] : vector<4x4xf32> to vector<4xf32>
    %60 = vector.shape_cast %59 : vector<4xf32> to vector<4x1xf32>
    %61 = vector.broadcast %60 : vector<4x1xf32> to vector<4x4xf32>
    %62 = arith.subf %58, %61 : vector<4x4xf32>
    %63 = math.exp %62 : vector<4x4xf32>
    %cst_30 = arith.constant dense<0.000000e+00> : vector<4xf32>
    %64 = vector.multi_reduction <add>, %63, %cst_30 [1] : vector<4x4xf32> to vector<4xf32>
    %65 = vector.shape_cast %64 : vector<4xf32> to vector<4x1xf32>
    %66 = arith.truncf %63 : vector<4x4xf32> to vector<4x4xbf16>
    %cst_31 = arith.constant dense<0.000000e+00> : vector<4x8xf32>
    %67 = tpu.matmul %66, %52, %cst_31 {dimension_numbers = #tpu.dot_dimension_numbers<[1], [0], [0], [1], [0, 0, 1, 1], [], []>} : vector<4x4xbf16>, vector<4x8xbf16>, vector<4x8xf32> -> vector<4x8xf32>
    %68 = tpu.reciprocal %65 {approx = true} : vector<4x1xf32> -> vector<4x1xf32>
    %69 = vector.broadcast %68 : vector<4x1xf32> to vector<4x8xf32>
    %70 = arith.mulf %67, %69 : vector<4x8xf32>
    %71 = vector.extract_strided_slice %49 {offsets = [0, 8], sizes = [4, 8], strides = [1, 1]} : vector<4x48xbf16> to vector<4x8xbf16>
    %72 = vector.extract_strided_slice %49 {offsets = [0, 24], sizes = [4, 8], strides = [1, 1]} : vector<4x48xbf16> to vector<4x8xbf16>
    %73 = vector.extract_strided_slice %49 {offsets = [0, 40], sizes = [4, 8], strides = [1, 1]} : vector<4x48xbf16> to vector<4x8xbf16>
    %cst_32 = arith.constant dense<0.000000e+00> : vector<4x4xf32>
    %74 = tpu.matmul %71, %72, %cst_32 {dimension_numbers = #tpu.dot_dimension_numbers<[1], [1], [0], [0], [0, 0, 1, 0], [], []>} : vector<4x8xbf16>, vector<4x8xbf16>, vector<4x4xf32> -> vector<4x4xf32>
    %cst_33 = arith.constant 0.353553385 : f32
    %75 = vector.broadcast %cst_33 : f32 to vector<4x4xf32>
    %76 = arith.mulf %74, %75 : vector<4x4xf32>
    %c1_34 = arith.constant 1 : index
    %c0_35 = arith.constant 0 : index
    %c0_36 = arith.constant 0 : index
    %77 = vector.load %arg3[%c1_34, %c0_35, %c0_36] : memref<2x4x4xf32, #tpu.memory_space<vmem>>, vector<1x4x4xf32>
    %78 = vector.shape_cast %77 : vector<1x4x4xf32> to vector<4x4xf32>
    %79 = arith.addf %76, %78 : vector<4x4xf32>
    %cst_37 = arith.constant dense<0xFF800000> : vector<4xf32>
    %80 = vector.multi_reduction <maximumf>, %79, %cst_37 [1] : vector<4x4xf32> to vector<4xf32>
    %81 = vector.shape_cast %80 : vector<4xf32> to vector<4x1xf32>
    %82 = vector.broadcast %81 : vector<4x1xf32> to vector<4x4xf32>
    %83 = arith.subf %79, %82 : vector<4x4xf32>
    %84 = math.exp %83 : vector<4x4xf32>
    %cst_38 = arith.constant dense<0.000000e+00> : vector<4xf32>
    %85 = vector.multi_reduction <add>, %84, %cst_38 [1] : vector<4x4xf32> to vector<4xf32>
    %86 = vector.shape_cast %85 : vector<4xf32> to vector<4x1xf32>
    %87 = arith.truncf %84 : vector<4x4xf32> to vector<4x4xbf16>
    %cst_39 = arith.constant dense<0.000000e+00> : vector<4x8xf32>
    %88 = tpu.matmul %87, %73, %cst_39 {dimension_numbers = #tpu.dot_dimension_numbers<[1], [0], [0], [1], [0, 0, 1, 1], [], []>} : vector<4x4xbf16>, vector<4x8xbf16>, vector<4x8xf32> -> vector<4x8xf32>
    %89 = tpu.reciprocal %86 {approx = true} : vector<4x1xf32> -> vector<4x1xf32>
    %90 = vector.broadcast %89 : vector<4x1xf32> to vector<4x8xf32>
    %91 = arith.mulf %88, %90 : vector<4x8xf32>
    %92 = tpu.concatenate %70, %91 in 1 : vector<4x8xf32>, vector<4x8xf32> -> vector<4x16xf32>
    %93 = vector.shape_cast %92 : vector<4x16xf32> to vector<1x2x2x16xf32>
    %94 = arith.truncf %93 : vector<1x2x2x16xf32> to vector<1x2x2x16xbf16>
    %c0_40 = arith.constant 0 : index
    %c0_41 = arith.constant 0 : index
    %c2_42 = arith.constant 2 : index
    %c0_43 = arith.constant 0 : index
    %95 = vector.load %arg4[%c0_40, %c0_41, %c2_42, %c0_43] : memref<1x2x4x16xbf16, #tpu.memory_space<vmem>>, vector<1x2x2x16xbf16>
    tpu.vector_store %arg4[%c0_40, %c0_41, %c2_42, %c0_43], %94 {strides = array<i32>} : memref<1x2x4x16xbf16, #tpu.memory_space<vmem>>, vector<1x2x2x16xbf16>,
    return
  }
  func.func @transform_0(%arg0: i32, %arg1: i32) -> (i32, i32, i32, i32) {
    %c0_i32 = arith.constant 0 : i32
    %c0_i32_0 = arith.constant 0 : i32
    %c0_i32_1 = arith.constant 0 : i32
    return %arg0, %arg1, %c0_i32, %c0_i32_0 : i32, i32, i32, i32
  }
  func.func @transform_1(%arg0: i32, %arg1: i32) -> (i32, i32, i32) {
    %c0_i32 = arith.constant 0 : i32
    %c0_i32_0 = arith.constant 0 : i32
    %c0_i32_1 = arith.constant 0 : i32
    %c0_i32_2 = arith.constant 0 : i32
    return %c0_i32, %c0_i32_0, %c0_i32_1 : i32, i32, i32
  }
  func.func @transform_2(%arg0: i32, %arg1: i32) -> (i32, i32, i32, i32) {
    %c0_i32 = arith.constant 0 : i32
    %c0_i32_0 = arith.constant 0 : i32
    %c0_i32_1 = arith.constant 0 : i32
    return %arg0, %arg1, %c0_i32, %c0_i32_0 : i32, i32, i32, i32
  }
}

module attributes {stable_mosaic.version = 11 : i64} {
  func.func @_matmul_kernel(%arg0: i32, %arg1: i32, %arg2: i32, %arg3: memref<32x64xbf16, #tpu.memory_space<vmem>>, %arg4: memref<64x16xbf16, #tpu.memory_space<vmem>>, %arg5: memref<1x16xf32, #tpu.memory_space<vmem>>, %arg6: memref<32x16xf32, #tpu.memory_space<vmem>>, %arg7: memref<32x16xf32, #tpu.memory_space<vmem>>) attributes {dimension_semantics = [#tpu.dimension_semantics<parallel>, #tpu.dimension_semantics<parallel>, #tpu.dimension_semantics<arbitrary>], iteration_bounds = array<i64: 1, 1, 1>, scalar_prefetch = 0 : i64, scratch_operands = 0 : i64, tpu.core_type = #tpu.core_type<tc>, window_params = [{transform_indices = @transform_0, window_bounds = array<i64: 32, 64>}, {transform_indices = @transform_1, window_bounds = array<i64: 64, 16>}, {transform_indices = @transform_2, window_bounds = array<i64: 1, 16>}, {transform_indices = @transform_3, window_bounds = array<i64: 32, 16>}, {transform_indices = @transform_4, window_bounds = array<i64: 32, 16>}]} {
    %c0_i32 = arith.constant 0 : i32
    %0 = arith.cmpi eq, %arg2, %c0_i32 : i32
    %1 = arith.extui %0 : i1 to i32
    %c0_i32_0 = arith.constant 0 : i32
    %2 = arith.cmpi ne, %1, %c0_i32_0 : i32
    scf.if %2 {
      %c0_8 = arith.constant 0 : index
      %c0_9 = arith.constant 0 : index
      %9 = vector.load %arg5[%c0_8, %c0_9] : memref<1x16xf32, #tpu.memory_space<vmem>>, vector<1x16xf32>
      %10 = vector.shape_cast %9 : vector<1x16xf32> to vector<1x16xf32>
      %11 = vector.broadcast %10 : vector<1x16xf32> to vector<32x16xf32>
      %c0_10 = arith.constant 0 : index
      %c0_11 = arith.constant 0 : index
      %12 = vector.load %arg6[%c0_10, %c0_11] : memref<32x16xf32, #tpu.memory_space<vmem>>, vector<32x16xf32>
      %13 = arith.addf %11, %12 : vector<32x16xf32>
      %c0_12 = arith.constant 0 : index
      %c0_13 = arith.constant 0 : index
      %14 = vector.load %arg7[%c0_12, %c0_13] : memref<32x16xf32, #tpu.memory_space<vmem>>, vector<32x16xf32>
      tpu.vector_store %arg7[%c0_12, %c0_13], %13 {strides = array<i32>} : memref<32x16xf32, #tpu.memory_space<vmem>>, vector<32x16xf32>,
    } else {
    }
    %c0 = arith.constant 0 : index
    %c0_1 = arith.constant 0 : index
    %3 = vector.load %arg7[%c0, %c0_1] : memref<32x16xf32, #tpu.memory_space<vmem>>, vector<32x16xf32>
    %c0_2 = arith.constant 0 : index
    %c0_3 = arith.constant 0 : index
    %4 = vector.load %arg3[%c0_2, %c0_3] : memref<32x64xbf16, #tpu.memory_space<vmem>>, vector<32x64xbf16>
    %c0_4 = arith.constant 0 : index
    %c0_5 = arith.constant 0 : index
    %5 = vector.load %arg4[%c0_4, %c0_5] : memref<64x16xbf16, #tpu.memory_space<vmem>>, vector<64x16xbf16>
    %cst = arith.constant dense<0.000000e+00> : vector<32x16xf32>
    %6 = tpu.matmul %4, %5, %cst {dimension_numbers = #tpu.dot_dimension_numbers<[1], [0], [0], [1], [0, 0, 1, 1], [], []>} : vector<32x64xbf16>, vector<64x16xbf16>, vector<32x16xf32> -> vector<32x16xf32>
    %7 = arith.addf %3, %6 : vector<32x16xf32>
    %c0_6 = arith.constant 0 : index
    %c0_7 = arith.constant 0 : index
    %8 = vector.load %arg7[%c0_6, %c0_7] : memref<32x16xf32, #tpu.memory_space<vmem>>, vector<32x16xf32>
    tpu.vector_store %arg7[%c0_6, %c0_7], %7 {strides = array<i32>} : memref<32x16xf32, #tpu.memory_space<vmem>>, vector<32x16xf32>,
    return
  }
  func.func @transform_0(%arg0: i32, %arg1: i32, %arg2: i32) -> (i32, i32) {
    %c0_i32 = arith.constant 0 : i32
    return %arg0, %arg2 : i32, i32
  }
  func.func @transform_1(%arg0: i32, %arg1: i32, %arg2: i32) -> (i32, i32) {
    %c0_i32 = arith.constant 0 : i32
    return %arg2, %arg1 : i32, i32
  }
  func.func @transform_2(%arg0: i32, %arg1: i32, %arg2: i32) -> (i32, i32) {
    %c0_i32 = arith.constant 0 : i32
    %c0_i32_0 = arith.constant 0 : i32
    return %c0_i32, %arg1 : i32, i32
  }
  func.func @transform_3(%arg0: i32, %arg1: i32, %arg2: i32) -> (i32, i32) {
    %c0_i32 = arith.constant 0 : i32
    return %arg0, %arg1 : i32, i32
  }
  func.func @transform_4(%arg0: i32, %arg1: i32, %arg2: i32) -> (i32, i32) {
    %c0_i32 = arith.constant 0 : i32
    return %arg0, %arg1 : i32, i32
  }
}

module attributes {stable_mosaic.version = 11 : i64} {
  func.func @_ln_matmul_kernel(%arg0: i32, %arg1: i32, %arg2: memref<32x16xf32, #tpu.memory_space<vmem>>, %arg3: memref<1x16xf32, #tpu.memory_space<vmem>>, %arg4: memref<1x16xf32, #tpu.memory_space<vmem>>, %arg5: memref<16x64xbf16, #tpu.memory_space<vmem>>, %arg6: memref<1x64xf32, #tpu.memory_space<vmem>>, %arg7: memref<32x64xbf16, #tpu.memory_space<vmem>>, %arg8: memref<32x16xbf16, #tpu.memory_space<vmem>>) attributes {dimension_semantics = [#tpu.dimension_semantics<parallel>, #tpu.dimension_semantics<arbitrary>], iteration_bounds = array<i64: 1, 1>, scalar_prefetch = 0 : i64, scratch_operands = 1 : i64, tpu.core_type = #tpu.core_type<tc>, window_params = [{transform_indices = @transform_0, window_bounds = array<i64: 32, 16>}, {pipeline_mode = #tpu.pipeline_mode<synchronous>, transform_indices = @transform_1, window_bounds = array<i64: 1, 16>}, {pipeline_mode = #tpu.pipeline_mode<synchronous>, transform_indices = @transform_2, window_bounds = array<i64: 1, 16>}, {transform_indices = @transform_3, window_bounds = array<i64: 16, 64>}, {transform_indices = @transform_4, window_bounds = array<i64: 1, 64>}, {transform_indices = @transform_5, window_bounds = array<i64: 32, 64>}]} {
    %c0_i32 = arith.constant 0 : i32
    %0 = arith.cmpi eq, %arg1, %c0_i32 : i32
    %1 = arith.extui %0 : i1 to i32
    %c0_i32_0 = arith.constant 0 : i32
    %2 = arith.cmpi ne, %1, %c0_i32_0 : i32
    scf.if %2 {
      %c0_23 = arith.constant 0 : index
      %c0_24 = arith.constant 0 : index
      %51 = vector.load %arg2[%c0_23, %c0_24] : memref<32x16xf32, #tpu.memory_space<vmem>>, vector<32x16xf32>
      %cst_25 = arith.constant dense<0.000000e+00> : vector<32xf32>
      %52 = vector.multi_reduction <add>, %51, %cst_25 [1] : vector<32x16xf32> to vector<32xf32>
      %53 = vector.shape_cast %52 : vector<32xf32> to vector<32x1xf32>
      %cst_26 = arith.constant 1.600000e+01 : f32
      %54 = vector.broadcast %cst_26 : f32 to vector<32x1xf32>
      %55 = arith.divf %53, %54 : vector<32x1xf32>
      %56 = vector.broadcast %55 : vector<32x1xf32> to vector<32x16xf32>
      %57 = arith.subf %51, %56 : vector<32x16xf32>
      %58 = arith.mulf %57, %57 : vector<32x16xf32>
      %cst_27 = arith.constant dense<0.000000e+00> : vector<32xf32>
      %59 = vector.multi_reduction <add>, %58, %cst_27 [1] : vector<32x16xf32> to vector<32xf32>
      %60 = vector.shape_cast %59 : vector<32xf32> to vector<32x1xf32>
      %cst_28 = arith.constant 1.600000e+01 : f32
      %61 = vector.broadcast %cst_28 : f32 to vector<32x1xf32>
      %62 = arith.divf %60, %61 : vector<32x1xf32>
      %cst_29 = arith.constant 9.99999974E-6 : f32
      %63 = vector.broadcast %cst_29 : f32 to vector<32x1xf32>
      %64 = arith.addf %62, %63 : vector<32x1xf32>
      %65 = math.rsqrt %64 : vector<32x1xf32>
      %66 = vector.broadcast %65 : vector<32x1xf32> to vector<32x16xf32>
      %67 = arith.mulf %57, %66 : vector<32x16xf32>
      %c0_30 = arith.constant 0 : index
      %c0_31 = arith.constant 0 : index
      %68 = vector.load %arg3[%c0_30, %c0_31] : memref<1x16xf32, #tpu.memory_space<vmem>>, vector<1x16xf32>
      %69 = vector.broadcast %68 : vector<1x16xf32> to vector<32x16xf32>
      %70 = arith.mulf %67, %69 : vector<32x16xf32>
      %c0_32 = arith.constant 0 : index
      %c0_33 = arith.constant 0 : index
      %71 = vector.load %arg4[%c0_32, %c0_33] : memref<1x16xf32, #tpu.memory_space<vmem>>, vector<1x16xf32>
      %72 = vector.broadcast %71 : vector<1x16xf32> to vector<32x16xf32>
      %73 = arith.addf %70, %72 : vector<32x16xf32>
      %74 = arith.truncf %73 : vector<32x16xf32> to vector<32x16xbf16>
      %c0_34 = arith.constant 0 : index
      %c0_35 = arith.constant 0 : index
      %75 = vector.load %arg8[%c0_34, %c0_35] : memref<32x16xbf16, #tpu.memory_space<vmem>>, vector<32x16xbf16>
      tpu.vector_store %arg8[%c0_34, %c0_35], %74 {strides = array<i32>} : memref<32x16xbf16, #tpu.memory_space<vmem>>, vector<32x16xbf16>,
    } else {
    }
    %c0 = arith.constant 0 : index
    %c0_1 = arith.constant 0 : index
    %3 = vector.load %arg8[%c0, %c0_1] : memref<32x16xbf16, #tpu.memory_space<vmem>>, vector<32x16xbf16>
    %c0_2 = arith.constant 0 : index
    %c0_3 = arith.constant 0 : index
    %4 = vector.load %arg5[%c0_2, %c0_3] : memref<16x64xbf16, #tpu.memory_space<vmem>>, vector<16x64xbf16>
    %cst = arith.constant dense<0.000000e+00> : vector<32x64xf32>
    %5 = tpu.matmul %3, %4, %cst {dimension_numbers = #tpu.dot_dimension_numbers<[1], [0], [0], [1], [0, 0, 1, 1], [], []>} : vector<32x16xbf16>, vector<16x64xbf16>, vector<32x64xf32> -> vector<32x64xf32>
    %c0_4 = arith.constant 0 : index
    %c0_5 = arith.constant 0 : index
    %6 = vector.load %arg6[%c0_4, %c0_5] : memref<1x64xf32, #tpu.memory_space<vmem>>, vector<1x64xf32>
    %7 = vector.broadcast %6 : vector<1x64xf32> to vector<32x64xf32>
    %8 = arith.addf %5, %7 : vector<32x64xf32>
    %cst_6 = arith.constant 0.707106769 : f32
    %9 = vector.broadcast %cst_6 : f32 to vector<32x64xf32>
    %10 = arith.mulf %8, %9 : vector<32x64xf32>
    %cst_7 = arith.constant 0.000000e+00 : f32
    %11 = vector.broadcast %cst_7 : f32 to vector<32x64xf32>
    %12 = arith.cmpf oge, %10, %11 : vector<32x64xf32>
    %cst_8 = arith.constant 1.000000e+00 : f32
    %cst_9 = arith.constant -1.000000e+00 : f32
    %13 = vector.broadcast %cst_8 : f32 to vector<32x64xf32>
    %14 = vector.broadcast %cst_9 : f32 to vector<32x64xf32>
    %15 = arith.select %12, %13, %14 : vector<32x64xi1>, vector<32x64xf32>
    %16 = math.absf %10 : vector<32x64xf32>
    %cst_10 = arith.constant 0.327591091 : f32
    %17 = vector.broadcast %cst_10 : f32 to vector<32x64xf32>
    %18 = arith.mulf %17, %16 : vector<32x64xf32>
    %cst_11 = arith.constant 1.000000e+00 : f32
    %19 = vector.broadcast %cst_11 : f32 to vector<32x64xf32>
    %20 = arith.addf %19, %18 : vector<32x64xf32>
    %21 = tpu.reciprocal %20 {approx = true} : vector<32x64xf32> -> vector<32x64xf32>
    %cst_12 = arith.constant 1.06140542 : f32
    %22 = vector.broadcast %cst_12 : f32 to vector<32x64xf32>
    %23 = arith.mulf %22, %21 : vector<32x64xf32>
    %cst_13 = arith.constant -1.45315206 : f32
    %24 = vector.broadcast %cst_13 : f32 to vector<32x64xf32>
    %25 = arith.addf %23, %24 : vector<32x64xf32>
    %26 = arith.mulf %25, %21 : vector<32x64xf32>
    %cst_14 = arith.constant 1.42141378 : f32
    %27 = vector.broadcast %cst_14 : f32 to vector<32x64xf32>
    %28 = arith.addf %26, %27 : vector<32x64xf32>
    %29 = arith.mulf %28, %21 : vector<32x64xf32>
    %cst_15 = arith.constant -0.284496725 : f32
    %30 = vector.broadcast %cst_15 : f32 to vector<32x64xf32>
    %31 = arith.addf %29, %30 : vector<32x64xf32>
    %32 = arith.mulf %31, %21 : vector<32x64xf32>
    %cst_16 = arith.constant 0.254829586 : f32
    %33 = vector.broadcast %cst_16 : f32 to vector<32x64xf32>
    %34 = arith.addf %32, %33 : vector<32x64xf32>
    %35 = arith.mulf %34, %21 : vector<32x64xf32>
    %cst_17 = arith.constant 0.000000e+00 : f32
    %36 = vector.broadcast %cst_17 : f32 to vector<32x64xf32>
    %37 = arith.subf %36, %16 : vector<32x64xf32>
    %38 = arith.mulf %37, %16 : vector<32x64xf32>
    %39 = math.exp %38 : vector<32x64xf32>
    %40 = arith.mulf %35, %39 : vector<32x64xf32>
    %cst_18 = arith.constant 1.000000e+00 : f32
    %41 = vector.broadcast %cst_18 : f32 to vector<32x64xf32>
    %42 = arith.subf %41, %40 : vector<32x64xf32>
    %43 = arith.mulf %15, %42 : vector<32x64xf32>
    %cst_19 = arith.constant 5.000000e-01 : f32
    %44 = vector.broadcast %cst_19 : f32 to vector<32x64xf32>
    %45 = arith.mulf %44, %8 : vector<32x64xf32>
    %cst_20 = arith.constant 1.000000e+00 : f32
    %46 = vector.broadcast %cst_20 : f32 to vector<32x64xf32>
    %47 = arith.addf %46, %43 : vector<32x64xf32>
    %48 = arith.mulf %45, %47 : vector<32x64xf32>
    %49 = arith.truncf %48 : vector<32x64xf32> to vector<32x64xbf16>
    %c0_21 = arith.constant 0 : index
    %c0_22 = arith.constant 0 : index
    %50 = vector.load %arg7[%c0_21, %c0_22] : memref<32x64xbf16, #tpu.memory_space<vmem>>, vector<32x64xbf16>
    tpu.vector_store %arg7[%c0_21, %c0_22], %49 {strides = array<i32>} : memref<32x64xbf16, #tpu.memory_space<vmem>>, vector<32x64xbf16>,
    return
  }
  func.func @transform_0(%arg0: i32, %arg1: i32) -> (i32, i32) {
    %c0_i32 = arith.constant 0 : i32
    %c0_i32_0 = arith.constant 0 : i32
    return %arg0, %c0_i32 : i32, i32
  }
  func.func @transform_1(%arg0: i32, %arg1: i32) -> (i32, i32) {
    %c0_i32 = arith.constant 0 : i32
    %c0_i32_0 = arith.constant 0 : i32
    %c0_i32_1 = arith.constant 0 : i32
    return %c0_i32, %c0_i32_0 : i32, i32
  }
  func.func @transform_2(%arg0: i32, %arg1: i32) -> (i32, i32) {
    %c0_i32 = arith.constant 0 : i32
    %c0_i32_0 = arith.constant 0 : i32
    %c0_i32_1 = arith.constant 0 : i32
    return %c0_i32, %c0_i32_0 : i32, i32
  }
  func.func @transform_3(%arg0: i32, %arg1: i32) -> (i32, i32) {
    %c0_i32 = arith.constant 0 : i32
    %c0_i32_0 = arith.constant 0 : i32
    return %c0_i32, %arg1 : i32, i32
  }
  func.func @transform_4(%arg0: i32, %arg1: i32) -> (i32, i32) {
    %c0_i32 = arith.constant 0 : i32
    %c0_i32_0 = arith.constant 0 : i32
    return %c0_i32, %arg1 : i32, i32
  }
  func.func @transform_5(%arg0: i32, %arg1: i32) -> (i32, i32) {
    %c0_i32 = arith.constant 0 : i32
    return %arg0, %arg1 : i32, i32
  }
}

module attributes {stable_mosaic.version = 11 : i64} {
  func.func @_win_attn_kernel(%arg0: i32, %arg1: i32, %arg2: memref<1x2x4x48xbf16, #tpu.memory_space<vmem>>, %arg3: memref<2x4x4xf32, #tpu.memory_space<vmem>>, %arg4: memref<1x2x4x4xf32, #tpu.memory_space<vmem>>, %arg5: memref<1x2x4x16xbf16, #tpu.memory_space<vmem>>) attributes {dimension_semantics = [#tpu.dimension_semantics<parallel>, #tpu.dimension_semantics<parallel>], iteration_bounds = array<i64: 2, 2>, scalar_prefetch = 0 : i64, scratch_operands = 0 : i64, tpu.core_type = #tpu.core_type<tc>, window_params = [{transform_indices = @transform_0, window_bounds = array<i64: 1, 2, 4, 48>}, {pipeline_mode = #tpu.pipeline_mode<synchronous>, transform_indices = @transform_1, window_bounds = array<i64: 2, 4, 4>}, {transform_indices = @transform_2, window_bounds = array<i64: 1, 2, 4, 4>}, {transform_indices = @transform_3, window_bounds = array<i64: 1, 2, 4, 16>}]} {
    %c0 = arith.constant 0 : index
    %c0_0 = arith.constant 0 : index
    %c0_1 = arith.constant 0 : index
    %c0_2 = arith.constant 0 : index
    %0 = vector.load %arg2[%c0, %c0_0, %c0_1, %c0_2] : memref<1x2x4x48xbf16, #tpu.memory_space<vmem>>, vector<1x2x2x48xbf16>
    %1 = vector.shape_cast %0 : vector<1x2x2x48xbf16> to vector<4x48xbf16>
    %c0_3 = arith.constant 0 : index
    %c0_4 = arith.constant 0 : index
    %c0_5 = arith.constant 0 : index
    %c0_6 = arith.constant 0 : index
    %2 = vector.load %arg4[%c0_3, %c0_4, %c0_5, %c0_6] : memref<1x2x4x4xf32, #tpu.memory_space<vmem>>, vector<1x1x4x4xf32>
    %3 = vector.shape_cast %2 : vector<1x1x4x4xf32> to vector<4x4xf32>
    %4 = vector.extract_strided_slice %1 {offsets = [0, 0], sizes = [4, 8], strides = [1, 1]} : vector<4x48xbf16> to vector<4x8xbf16>
    %5 = vector.extract_strided_slice %1 {offsets = [0, 16], sizes = [4, 8], strides = [1, 1]} : vector<4x48xbf16> to vector<4x8xbf16>
    %6 = vector.extract_strided_slice %1 {offsets = [0, 32], sizes = [4, 8], strides = [1, 1]} : vector<4x48xbf16> to vector<4x8xbf16>
    %cst = arith.constant dense<0.000000e+00> : vector<4x4xf32>
    %7 = tpu.matmul %4, %5, %cst {dimension_numbers = #tpu.dot_dimension_numbers<[1], [1], [0], [0], [0, 0, 1, 0], [], []>} : vector<4x8xbf16>, vector<4x8xbf16>, vector<4x4xf32> -> vector<4x4xf32>
    %cst_7 = arith.constant 0.353553385 : f32
    %8 = vector.broadcast %cst_7 : f32 to vector<4x4xf32>
    %9 = arith.mulf %7, %8 : vector<4x4xf32>
    %c0_8 = arith.constant 0 : index
    %c0_9 = arith.constant 0 : index
    %c0_10 = arith.constant 0 : index
    %10 = vector.load %arg3[%c0_8, %c0_9, %c0_10] : memref<2x4x4xf32, #tpu.memory_space<vmem>>, vector<1x4x4xf32>
    %11 = vector.shape_cast %10 : vector<1x4x4xf32> to vector<4x4xf32>
    %12 = arith.addf %9, %11 : vector<4x4xf32>
    %13 = arith.addf %12, %3 : vector<4x4xf32>
    %cst_11 = arith.constant dense<0xFF800000> : vector<4xf32>
    %14 = vector.multi_reduction <maximumf>, %13, %cst_11 [1] : vector<4x4xf32> to vector<4xf32>
    %15 = vector.shape_cast %14 : vector<4xf32> to vector<4x1xf32>
    %16 = vector.broadcast %15 : vector<4x1xf32> to vector<4x4xf32>
    %17 = arith.subf %13, %16 : vector<4x4xf32>
    %18 = math.exp %17 : vector<4x4xf32>
    %cst_12 = arith.constant dense<0.000000e+00> : vector<4xf32>
    %19 = vector.multi_reduction <add>, %18, %cst_12 [1] : vector<4x4xf32> to vector<4xf32>
    %20 = vector.shape_cast %19 : vector<4xf32> to vector<4x1xf32>
    %21 = arith.truncf %18 : vector<4x4xf32> to vector<4x4xbf16>
    %cst_13 = arith.constant dense<0.000000e+00> : vector<4x8xf32>
    %22 = tpu.matmul %21, %6, %cst_13 {dimension_numbers = #tpu.dot_dimension_numbers<[1], [0], [0], [1], [0, 0, 1, 1], [], []>} : vector<4x4xbf16>, vector<4x8xbf16>, vector<4x8xf32> -> vector<4x8xf32>
    %23 = tpu.reciprocal %20 {approx = true} : vector<4x1xf32> -> vector<4x1xf32>
    %24 = vector.broadcast %23 : vector<4x1xf32> to vector<4x8xf32>
    %25 = arith.mulf %22, %24 : vector<4x8xf32>
    %26 = vector.extract_strided_slice %1 {offsets = [0, 8], sizes = [4, 8], strides = [1, 1]} : vector<4x48xbf16> to vector<4x8xbf16>
    %27 = vector.extract_strided_slice %1 {offsets = [0, 24], sizes = [4, 8], strides = [1, 1]} : vector<4x48xbf16> to vector<4x8xbf16>
    %28 = vector.extract_strided_slice %1 {offsets = [0, 40], sizes = [4, 8], strides = [1, 1]} : vector<4x48xbf16> to vector<4x8xbf16>
    %cst_14 = arith.constant dense<0.000000e+00> : vector<4x4xf32>
    %29 = tpu.matmul %26, %27, %cst_14 {dimension_numbers = #tpu.dot_dimension_numbers<[1], [1], [0], [0], [0, 0, 1, 0], [], []>} : vector<4x8xbf16>, vector<4x8xbf16>, vector<4x4xf32> -> vector<4x4xf32>
    %cst_15 = arith.constant 0.353553385 : f32
    %30 = vector.broadcast %cst_15 : f32 to vector<4x4xf32>
    %31 = arith.mulf %29, %30 : vector<4x4xf32>
    %c1 = arith.constant 1 : index
    %c0_16 = arith.constant 0 : index
    %c0_17 = arith.constant 0 : index
    %32 = vector.load %arg3[%c1, %c0_16, %c0_17] : memref<2x4x4xf32, #tpu.memory_space<vmem>>, vector<1x4x4xf32>
    %33 = vector.shape_cast %32 : vector<1x4x4xf32> to vector<4x4xf32>
    %34 = arith.addf %31, %33 : vector<4x4xf32>
    %35 = arith.addf %34, %3 : vector<4x4xf32>
    %cst_18 = arith.constant dense<0xFF800000> : vector<4xf32>
    %36 = vector.multi_reduction <maximumf>, %35, %cst_18 [1] : vector<4x4xf32> to vector<4xf32>
    %37 = vector.shape_cast %36 : vector<4xf32> to vector<4x1xf32>
    %38 = vector.broadcast %37 : vector<4x1xf32> to vector<4x4xf32>
    %39 = arith.subf %35, %38 : vector<4x4xf32>
    %40 = math.exp %39 : vector<4x4xf32>
    %cst_19 = arith.constant dense<0.000000e+00> : vector<4xf32>
    %41 = vector.multi_reduction <add>, %40, %cst_19 [1] : vector<4x4xf32> to vector<4xf32>
    %42 = vector.shape_cast %41 : vector<4xf32> to vector<4x1xf32>
    %43 = arith.truncf %40 : vector<4x4xf32> to vector<4x4xbf16>
    %cst_20 = arith.constant dense<0.000000e+00> : vector<4x8xf32>
    %44 = tpu.matmul %43, %28, %cst_20 {dimension_numbers = #tpu.dot_dimension_numbers<[1], [0], [0], [1], [0, 0, 1, 1], [], []>} : vector<4x4xbf16>, vector<4x8xbf16>, vector<4x8xf32> -> vector<4x8xf32>
    %45 = tpu.reciprocal %42 {approx = true} : vector<4x1xf32> -> vector<4x1xf32>
    %46 = vector.broadcast %45 : vector<4x1xf32> to vector<4x8xf32>
    %47 = arith.mulf %44, %46 : vector<4x8xf32>
    %48 = tpu.concatenate %25, %47 in 1 : vector<4x8xf32>, vector<4x8xf32> -> vector<4x16xf32>
    %49 = vector.shape_cast %48 : vector<4x16xf32> to vector<1x2x2x16xf32>
    %50 = arith.truncf %49 : vector<1x2x2x16xf32> to vector<1x2x2x16xbf16>
    %c0_21 = arith.constant 0 : index
    %c0_22 = arith.constant 0 : index
    %c0_23 = arith.constant 0 : index
    %c0_24 = arith.constant 0 : index
    %51 = vector.load %arg5[%c0_21, %c0_22, %c0_23, %c0_24] : memref<1x2x4x16xbf16, #tpu.memory_space<vmem>>, vector<1x2x2x16xbf16>
    tpu.vector_store %arg5[%c0_21, %c0_22, %c0_23, %c0_24], %50 {strides = array<i32>} : memref<1x2x4x16xbf16, #tpu.memory_space<vmem>>, vector<1x2x2x16xbf16>,
    %c0_25 = arith.constant 0 : index
    %c0_26 = arith.constant 0 : index
    %c2 = arith.constant 2 : index
    %c0_27 = arith.constant 0 : index
    %52 = vector.load %arg2[%c0_25, %c0_26, %c2, %c0_27] : memref<1x2x4x48xbf16, #tpu.memory_space<vmem>>, vector<1x2x2x48xbf16>
    %53 = vector.shape_cast %52 : vector<1x2x2x48xbf16> to vector<4x48xbf16>
    %c0_28 = arith.constant 0 : index
    %c1_29 = arith.constant 1 : index
    %c0_30 = arith.constant 0 : index
    %c0_31 = arith.constant 0 : index
    %54 = vector.load %arg4[%c0_28, %c1_29, %c0_30, %c0_31] : memref<1x2x4x4xf32, #tpu.memory_space<vmem>>, vector<1x1x4x4xf32>
    %55 = vector.shape_cast %54 : vector<1x1x4x4xf32> to vector<4x4xf32>
    %56 = vector.extract_strided_slice %53 {offsets = [0, 0], sizes = [4, 8], strides = [1, 1]} : vector<4x48xbf16> to vector<4x8xbf16>
    %57 = vector.extract_strided_slice %53 {offsets = [0, 16], sizes = [4, 8], strides = [1, 1]} : vector<4x48xbf16> to vector<4x8xbf16>
    %58 = vector.extract_strided_slice %53 {offsets = [0, 32], sizes = [4, 8], strides = [1, 1]} : vector<4x48xbf16> to vector<4x8xbf16>
    %cst_32 = arith.constant dense<0.000000e+00> : vector<4x4xf32>
    %59 = tpu.matmul %56, %57, %cst_32 {dimension_numbers = #tpu.dot_dimension_numbers<[1], [1], [0], [0], [0, 0, 1, 0], [], []>} : vector<4x8xbf16>, vector<4x8xbf16>, vector<4x4xf32> -> vector<4x4xf32>
    %cst_33 = arith.constant 0.353553385 : f32
    %60 = vector.broadcast %cst_33 : f32 to vector<4x4xf32>
    %61 = arith.mulf %59, %60 : vector<4x4xf32>
    %c0_34 = arith.constant 0 : index
    %c0_35 = arith.constant 0 : index
    %c0_36 = arith.constant 0 : index
    %62 = vector.load %arg3[%c0_34, %c0_35, %c0_36] : memref<2x4x4xf32, #tpu.memory_space<vmem>>, vector<1x4x4xf32>
    %63 = vector.shape_cast %62 : vector<1x4x4xf32> to vector<4x4xf32>
    %64 = arith.addf %61, %63 : vector<4x4xf32>
    %65 = arith.addf %64, %55 : vector<4x4xf32>
    %cst_37 = arith.constant dense<0xFF800000> : vector<4xf32>
    %66 = vector.multi_reduction <maximumf>, %65, %cst_37 [1] : vector<4x4xf32> to vector<4xf32>
    %67 = vector.shape_cast %66 : vector<4xf32> to vector<4x1xf32>
    %68 = vector.broadcast %67 : vector<4x1xf32> to vector<4x4xf32>
    %69 = arith.subf %65, %68 : vector<4x4xf32>
    %70 = math.exp %69 : vector<4x4xf32>
    %cst_38 = arith.constant dense<0.000000e+00> : vector<4xf32>
    %71 = vector.multi_reduction <add>, %70, %cst_38 [1] : vector<4x4xf32> to vector<4xf32>
    %72 = vector.shape_cast %71 : vector<4xf32> to vector<4x1xf32>
    %73 = arith.truncf %70 : vector<4x4xf32> to vector<4x4xbf16>
    %cst_39 = arith.constant dense<0.000000e+00> : vector<4x8xf32>
    %74 = tpu.matmul %73, %58, %cst_39 {dimension_numbers = #tpu.dot_dimension_numbers<[1], [0], [0], [1], [0, 0, 1, 1], [], []>} : vector<4x4xbf16>, vector<4x8xbf16>, vector<4x8xf32> -> vector<4x8xf32>
    %75 = tpu.reciprocal %72 {approx = true} : vector<4x1xf32> -> vector<4x1xf32>
    %76 = vector.broadcast %75 : vector<4x1xf32> to vector<4x8xf32>
    %77 = arith.mulf %74, %76 : vector<4x8xf32>
    %78 = vector.extract_strided_slice %53 {offsets = [0, 8], sizes = [4, 8], strides = [1, 1]} : vector<4x48xbf16> to vector<4x8xbf16>
    %79 = vector.extract_strided_slice %53 {offsets = [0, 24], sizes = [4, 8], strides = [1, 1]} : vector<4x48xbf16> to vector<4x8xbf16>
    %80 = vector.extract_strided_slice %53 {offsets = [0, 40], sizes = [4, 8], strides = [1, 1]} : vector<4x48xbf16> to vector<4x8xbf16>
    %cst_40 = arith.constant dense<0.000000e+00> : vector<4x4xf32>
    %81 = tpu.matmul %78, %79, %cst_40 {dimension_numbers = #tpu.dot_dimension_numbers<[1], [1], [0], [0], [0, 0, 1, 0], [], []>} : vector<4x8xbf16>, vector<4x8xbf16>, vector<4x4xf32> -> vector<4x4xf32>
    %cst_41 = arith.constant 0.353553385 : f32
    %82 = vector.broadcast %cst_41 : f32 to vector<4x4xf32>
    %83 = arith.mulf %81, %82 : vector<4x4xf32>
    %c1_42 = arith.constant 1 : index
    %c0_43 = arith.constant 0 : index
    %c0_44 = arith.constant 0 : index
    %84 = vector.load %arg3[%c1_42, %c0_43, %c0_44] : memref<2x4x4xf32, #tpu.memory_space<vmem>>, vector<1x4x4xf32>
    %85 = vector.shape_cast %84 : vector<1x4x4xf32> to vector<4x4xf32>
    %86 = arith.addf %83, %85 : vector<4x4xf32>
    %87 = arith.addf %86, %55 : vector<4x4xf32>
    %cst_45 = arith.constant dense<0xFF800000> : vector<4xf32>
    %88 = vector.multi_reduction <maximumf>, %87, %cst_45 [1] : vector<4x4xf32> to vector<4xf32>
    %89 = vector.shape_cast %88 : vector<4xf32> to vector<4x1xf32>
    %90 = vector.broadcast %89 : vector<4x1xf32> to vector<4x4xf32>
    %91 = arith.subf %87, %90 : vector<4x4xf32>
    %92 = math.exp %91 : vector<4x4xf32>
    %cst_46 = arith.constant dense<0.000000e+00> : vector<4xf32>
    %93 = vector.multi_reduction <add>, %92, %cst_46 [1] : vector<4x4xf32> to vector<4xf32>
    %94 = vector.shape_cast %93 : vector<4xf32> to vector<4x1xf32>
    %95 = arith.truncf %92 : vector<4x4xf32> to vector<4x4xbf16>
    %cst_47 = arith.constant dense<0.000000e+00> : vector<4x8xf32>
    %96 = tpu.matmul %95, %80, %cst_47 {dimension_numbers = #tpu.dot_dimension_numbers<[1], [0], [0], [1], [0, 0, 1, 1], [], []>} : vector<4x4xbf16>, vector<4x8xbf16>, vector<4x8xf32> -> vector<4x8xf32>
    %97 = tpu.reciprocal %94 {approx = true} : vector<4x1xf32> -> vector<4x1xf32>
    %98 = vector.broadcast %97 : vector<4x1xf32> to vector<4x8xf32>
    %99 = arith.mulf %96, %98 : vector<4x8xf32>
    %100 = tpu.concatenate %77, %99 in 1 : vector<4x8xf32>, vector<4x8xf32> -> vector<4x16xf32>
    %101 = vector.shape_cast %100 : vector<4x16xf32> to vector<1x2x2x16xf32>
    %102 = arith.truncf %101 : vector<1x2x2x16xf32> to vector<1x2x2x16xbf16>
    %c0_48 = arith.constant 0 : index
    %c0_49 = arith.constant 0 : index
    %c2_50 = arith.constant 2 : index
    %c0_51 = arith.constant 0 : index
    %103 = vector.load %arg5[%c0_48, %c0_49, %c2_50, %c0_51] : memref<1x2x4x16xbf16, #tpu.memory_space<vmem>>, vector<1x2x2x16xbf16>
    tpu.vector_store %arg5[%c0_48, %c0_49, %c2_50, %c0_51], %102 {strides = array<i32>} : memref<1x2x4x16xbf16, #tpu.memory_space<vmem>>, vector<1x2x2x16xbf16>,
    return
  }
  func.func @transform_0(%arg0: i32, %arg1: i32) -> (i32, i32, i32, i32) {
    %c0_i32 = arith.constant 0 : i32
    %c0_i32_0 = arith.constant 0 : i32
    %c0_i32_1 = arith.constant 0 : i32
    return %arg0, %arg1, %c0_i32, %c0_i32_0 : i32, i32, i32, i32
  }
  func.func @transform_1(%arg0: i32, %arg1: i32) -> (i32, i32, i32) {
    %c0_i32 = arith.constant 0 : i32
    %c0_i32_0 = arith.constant 0 : i32
    %c0_i32_1 = arith.constant 0 : i32
    %c0_i32_2 = arith.constant 0 : i32
    return %c0_i32, %c0_i32_0, %c0_i32_1 : i32, i32, i32
  }
  func.func @transform_2(%arg0: i32, %arg1: i32) -> (i32, i32, i32, i32) {
    %c0_i32 = arith.constant 0 : i32
    %c0_i32_0 = arith.constant 0 : i32
    %c0_i32_1 = arith.constant 0 : i32
    %c0_i32_2 = arith.constant 0 : i32
    return %arg1, %c0_i32, %c0_i32_0, %c0_i32_1 : i32, i32, i32, i32
  }
  func.func @transform_3(%arg0: i32, %arg1: i32) -> (i32, i32, i32, i32) {
    %c0_i32 = arith.constant 0 : i32
    %c0_i32_0 = arith.constant 0 : i32
    %c0_i32_1 = arith.constant 0 : i32
    return %arg0, %arg1, %c0_i32, %c0_i32_0 : i32, i32, i32, i32
  }
}

module attributes {stable_mosaic.version = 11 : i64} {
  func.func @_ln_matmul_kernel(%arg0: i32, %arg1: i32, %arg2: memref<8x32xf32, #tpu.memory_space<vmem>>, %arg3: memref<1x32xf32, #tpu.memory_space<vmem>>, %arg4: memref<1x32xf32, #tpu.memory_space<vmem>>, %arg5: memref<32x96xbf16, #tpu.memory_space<vmem>>, %arg6: memref<1x96xf32, #tpu.memory_space<vmem>>, %arg7: memref<8x96xbf16, #tpu.memory_space<vmem>>, %arg8: memref<8x32xbf16, #tpu.memory_space<vmem>>) attributes {dimension_semantics = [#tpu.dimension_semantics<parallel>, #tpu.dimension_semantics<arbitrary>], iteration_bounds = array<i64: 1, 1>, scalar_prefetch = 0 : i64, scratch_operands = 1 : i64, tpu.core_type = #tpu.core_type<tc>, window_params = [{transform_indices = @transform_0, window_bounds = array<i64: 8, 32>}, {pipeline_mode = #tpu.pipeline_mode<synchronous>, transform_indices = @transform_1, window_bounds = array<i64: 1, 32>}, {pipeline_mode = #tpu.pipeline_mode<synchronous>, transform_indices = @transform_2, window_bounds = array<i64: 1, 32>}, {transform_indices = @transform_3, window_bounds = array<i64: 32, 96>}, {transform_indices = @transform_4, window_bounds = array<i64: 1, 96>}, {transform_indices = @transform_5, window_bounds = array<i64: 8, 96>}]} {
    %c0_i32 = arith.constant 0 : i32
    %0 = arith.cmpi eq, %arg1, %c0_i32 : i32
    %1 = arith.extui %0 : i1 to i32
    %c0_i32_0 = arith.constant 0 : i32
    %2 = arith.cmpi ne, %1, %c0_i32_0 : i32
    scf.if %2 {
      %c0_8 = arith.constant 0 : index
      %c0_9 = arith.constant 0 : index
      %11 = vector.load %arg2[%c0_8, %c0_9] : memref<8x32xf32, #tpu.memory_space<vmem>>, vector<8x32xf32>
      %cst_10 = arith.constant dense<0.000000e+00> : vector<8xf32>
      %12 = vector.multi_reduction <add>, %11, %cst_10 [1] : vector<8x32xf32> to vector<8xf32>
      %13 = vector.shape_cast %12 : vector<8xf32> to vector<8x1xf32>
      %cst_11 = arith.constant 3.200000e+01 : f32
      %14 = vector.broadcast %cst_11 : f32 to vector<8x1xf32>
      %15 = arith.divf %13, %14 : vector<8x1xf32>
      %16 = vector.broadcast %15 : vector<8x1xf32> to vector<8x32xf32>
      %17 = arith.subf %11, %16 : vector<8x32xf32>
      %18 = arith.mulf %17, %17 : vector<8x32xf32>
      %cst_12 = arith.constant dense<0.000000e+00> : vector<8xf32>
      %19 = vector.multi_reduction <add>, %18, %cst_12 [1] : vector<8x32xf32> to vector<8xf32>
      %20 = vector.shape_cast %19 : vector<8xf32> to vector<8x1xf32>
      %cst_13 = arith.constant 3.200000e+01 : f32
      %21 = vector.broadcast %cst_13 : f32 to vector<8x1xf32>
      %22 = arith.divf %20, %21 : vector<8x1xf32>
      %cst_14 = arith.constant 9.99999974E-6 : f32
      %23 = vector.broadcast %cst_14 : f32 to vector<8x1xf32>
      %24 = arith.addf %22, %23 : vector<8x1xf32>
      %25 = math.rsqrt %24 : vector<8x1xf32>
      %26 = vector.broadcast %25 : vector<8x1xf32> to vector<8x32xf32>
      %27 = arith.mulf %17, %26 : vector<8x32xf32>
      %c0_15 = arith.constant 0 : index
      %c0_16 = arith.constant 0 : index
      %28 = vector.load %arg3[%c0_15, %c0_16] : memref<1x32xf32, #tpu.memory_space<vmem>>, vector<1x32xf32>
      %29 = vector.broadcast %28 : vector<1x32xf32> to vector<8x32xf32>
      %30 = arith.mulf %27, %29 : vector<8x32xf32>
      %c0_17 = arith.constant 0 : index
      %c0_18 = arith.constant 0 : index
      %31 = vector.load %arg4[%c0_17, %c0_18] : memref<1x32xf32, #tpu.memory_space<vmem>>, vector<1x32xf32>
      %32 = vector.broadcast %31 : vector<1x32xf32> to vector<8x32xf32>
      %33 = arith.addf %30, %32 : vector<8x32xf32>
      %34 = arith.truncf %33 : vector<8x32xf32> to vector<8x32xbf16>
      %c0_19 = arith.constant 0 : index
      %c0_20 = arith.constant 0 : index
      %35 = vector.load %arg8[%c0_19, %c0_20] : memref<8x32xbf16, #tpu.memory_space<vmem>>, vector<8x32xbf16>
      tpu.vector_store %arg8[%c0_19, %c0_20], %34 {strides = array<i32>} : memref<8x32xbf16, #tpu.memory_space<vmem>>, vector<8x32xbf16>,
    } else {
    }
    %c0 = arith.constant 0 : index
    %c0_1 = arith.constant 0 : index
    %3 = vector.load %arg8[%c0, %c0_1] : memref<8x32xbf16, #tpu.memory_space<vmem>>, vector<8x32xbf16>
    %c0_2 = arith.constant 0 : index
    %c0_3 = arith.constant 0 : index
    %4 = vector.load %arg5[%c0_2, %c0_3] : memref<32x96xbf16, #tpu.memory_space<vmem>>, vector<32x96xbf16>
    %cst = arith.constant dense<0.000000e+00> : vector<8x96xf32>
    %5 = tpu.matmul %3, %4, %cst {dimension_numbers = #tpu.dot_dimension_numbers<[1], [0], [0], [1], [0, 0, 1, 1], [], []>} : vector<8x32xbf16>, vector<32x96xbf16>, vector<8x96xf32> -> vector<8x96xf32>
    %c0_4 = arith.constant 0 : index
    %c0_5 = arith.constant 0 : index
    %6 = vector.load %arg6[%c0_4, %c0_5] : memref<1x96xf32, #tpu.memory_space<vmem>>, vector<1x96xf32>
    %7 = vector.broadcast %6 : vector<1x96xf32> to vector<8x96xf32>
    %8 = arith.addf %5, %7 : vector<8x96xf32>
    %9 = arith.truncf %8 : vector<8x96xf32> to vector<8x96xbf16>
    %c0_6 = arith.constant 0 : index
    %c0_7 = arith.constant 0 : index
    %10 = vector.load %arg7[%c0_6, %c0_7] : memref<8x96xbf16, #tpu.memory_space<vmem>>, vector<8x96xbf16>
    tpu.vector_store %arg7[%c0_6, %c0_7], %9 {strides = array<i32>} : memref<8x96xbf16, #tpu.memory_space<vmem>>, vector<8x96xbf16>,
    return
  }
  func.func @transform_0(%arg0: i32, %arg1: i32) -> (i32, i32) {
    %c0_i32 = arith.constant 0 : i32
    %c0_i32_0 = arith.constant 0 : i32
    return %arg0, %c0_i32 : i32, i32
  }
  func.func @transform_1(%arg0: i32, %arg1: i32) -> (i32, i32) {
    %c0_i32 = arith.constant 0 : i32
    %c0_i32_0 = arith.constant 0 : i32
    %c0_i32_1 = arith.constant 0 : i32
    return %c0_i32, %c0_i32_0 : i32, i32
  }
  func.func @transform_2(%arg0: i32, %arg1: i32) -> (i32, i32) {
    %c0_i32 = arith.constant 0 : i32
    %c0_i32_0 = arith.constant 0 : i32
    %c0_i32_1 = arith.constant 0 : i32
    return %c0_i32, %c0_i32_0 : i32, i32
  }
  func.func @transform_3(%arg0: i32, %arg1: i32) -> (i32, i32) {
    %c0_i32 = arith.constant 0 : i32
    %c0_i32_0 = arith.constant 0 : i32
    return %c0_i32, %arg1 : i32, i32
  }
  func.func @transform_4(%arg0: i32, %arg1: i32) -> (i32, i32) {
    %c0_i32 = arith.constant 0 : i32
    %c0_i32_0 = arith.constant 0 : i32
    return %c0_i32, %arg1 : i32, i32
  }
  func.func @transform_5(%arg0: i32, %arg1: i32) -> (i32, i32) {
    %c0_i32 = arith.constant 0 : i32
    return %arg0, %arg1 : i32, i32
  }
}

module attributes {stable_mosaic.version = 11 : i64} {
  func.func @_ln_matmul_kernel(%arg0: i32, %arg1: i32, %arg2: memref<8x64xf32, #tpu.memory_space<vmem>>, %arg3: memref<1x64xf32, #tpu.memory_space<vmem>>, %arg4: memref<1x64xf32, #tpu.memory_space<vmem>>, %arg5: memref<64x32xbf16, #tpu.memory_space<vmem>>, %arg6: memref<1x32xf32, #tpu.memory_space<vmem>>, %arg7: memref<8x32xf32, #tpu.memory_space<vmem>>, %arg8: memref<8x64xbf16, #tpu.memory_space<vmem>>) attributes {dimension_semantics = [#tpu.dimension_semantics<parallel>, #tpu.dimension_semantics<arbitrary>], iteration_bounds = array<i64: 1, 1>, scalar_prefetch = 0 : i64, scratch_operands = 1 : i64, tpu.core_type = #tpu.core_type<tc>, window_params = [{transform_indices = @transform_0, window_bounds = array<i64: 8, 64>}, {pipeline_mode = #tpu.pipeline_mode<synchronous>, transform_indices = @transform_1, window_bounds = array<i64: 1, 64>}, {pipeline_mode = #tpu.pipeline_mode<synchronous>, transform_indices = @transform_2, window_bounds = array<i64: 1, 64>}, {transform_indices = @transform_3, window_bounds = array<i64: 64, 32>}, {transform_indices = @transform_4, window_bounds = array<i64: 1, 32>}, {transform_indices = @transform_5, window_bounds = array<i64: 8, 32>}]} {
    %c0_i32 = arith.constant 0 : i32
    %0 = arith.cmpi eq, %arg1, %c0_i32 : i32
    %1 = arith.extui %0 : i1 to i32
    %c0_i32_0 = arith.constant 0 : i32
    %2 = arith.cmpi ne, %1, %c0_i32_0 : i32
    scf.if %2 {
      %c0_8 = arith.constant 0 : index
      %c0_9 = arith.constant 0 : index
      %10 = vector.load %arg2[%c0_8, %c0_9] : memref<8x64xf32, #tpu.memory_space<vmem>>, vector<8x64xf32>
      %cst_10 = arith.constant dense<0.000000e+00> : vector<8xf32>
      %11 = vector.multi_reduction <add>, %10, %cst_10 [1] : vector<8x64xf32> to vector<8xf32>
      %12 = vector.shape_cast %11 : vector<8xf32> to vector<8x1xf32>
      %cst_11 = arith.constant 6.400000e+01 : f32
      %13 = vector.broadcast %cst_11 : f32 to vector<8x1xf32>
      %14 = arith.divf %12, %13 : vector<8x1xf32>
      %15 = vector.broadcast %14 : vector<8x1xf32> to vector<8x64xf32>
      %16 = arith.subf %10, %15 : vector<8x64xf32>
      %17 = arith.mulf %16, %16 : vector<8x64xf32>
      %cst_12 = arith.constant dense<0.000000e+00> : vector<8xf32>
      %18 = vector.multi_reduction <add>, %17, %cst_12 [1] : vector<8x64xf32> to vector<8xf32>
      %19 = vector.shape_cast %18 : vector<8xf32> to vector<8x1xf32>
      %cst_13 = arith.constant 6.400000e+01 : f32
      %20 = vector.broadcast %cst_13 : f32 to vector<8x1xf32>
      %21 = arith.divf %19, %20 : vector<8x1xf32>
      %cst_14 = arith.constant 9.99999974E-6 : f32
      %22 = vector.broadcast %cst_14 : f32 to vector<8x1xf32>
      %23 = arith.addf %21, %22 : vector<8x1xf32>
      %24 = math.rsqrt %23 : vector<8x1xf32>
      %25 = vector.broadcast %24 : vector<8x1xf32> to vector<8x64xf32>
      %26 = arith.mulf %16, %25 : vector<8x64xf32>
      %c0_15 = arith.constant 0 : index
      %c0_16 = arith.constant 0 : index
      %27 = vector.load %arg3[%c0_15, %c0_16] : memref<1x64xf32, #tpu.memory_space<vmem>>, vector<1x64xf32>
      %28 = vector.broadcast %27 : vector<1x64xf32> to vector<8x64xf32>
      %29 = arith.mulf %26, %28 : vector<8x64xf32>
      %c0_17 = arith.constant 0 : index
      %c0_18 = arith.constant 0 : index
      %30 = vector.load %arg4[%c0_17, %c0_18] : memref<1x64xf32, #tpu.memory_space<vmem>>, vector<1x64xf32>
      %31 = vector.broadcast %30 : vector<1x64xf32> to vector<8x64xf32>
      %32 = arith.addf %29, %31 : vector<8x64xf32>
      %33 = arith.truncf %32 : vector<8x64xf32> to vector<8x64xbf16>
      %c0_19 = arith.constant 0 : index
      %c0_20 = arith.constant 0 : index
      %34 = vector.load %arg8[%c0_19, %c0_20] : memref<8x64xbf16, #tpu.memory_space<vmem>>, vector<8x64xbf16>
      tpu.vector_store %arg8[%c0_19, %c0_20], %33 {strides = array<i32>} : memref<8x64xbf16, #tpu.memory_space<vmem>>, vector<8x64xbf16>,
    } else {
    }
    %c0 = arith.constant 0 : index
    %c0_1 = arith.constant 0 : index
    %3 = vector.load %arg8[%c0, %c0_1] : memref<8x64xbf16, #tpu.memory_space<vmem>>, vector<8x64xbf16>
    %c0_2 = arith.constant 0 : index
    %c0_3 = arith.constant 0 : index
    %4 = vector.load %arg5[%c0_2, %c0_3] : memref<64x32xbf16, #tpu.memory_space<vmem>>, vector<64x32xbf16>
    %cst = arith.constant dense<0.000000e+00> : vector<8x32xf32>
    %5 = tpu.matmul %3, %4, %cst {dimension_numbers = #tpu.dot_dimension_numbers<[1], [0], [0], [1], [0, 0, 1, 1], [], []>} : vector<8x64xbf16>, vector<64x32xbf16>, vector<8x32xf32> -> vector<8x32xf32>
    %c0_4 = arith.constant 0 : index
    %c0_5 = arith.constant 0 : index
    %6 = vector.load %arg6[%c0_4, %c0_5] : memref<1x32xf32, #tpu.memory_space<vmem>>, vector<1x32xf32>
    %7 = vector.broadcast %6 : vector<1x32xf32> to vector<8x32xf32>
    %8 = arith.addf %5, %7 : vector<8x32xf32>
    %c0_6 = arith.constant 0 : index
    %c0_7 = arith.constant 0 : index
    %9 = vector.load %arg7[%c0_6, %c0_7] : memref<8x32xf32, #tpu.memory_space<vmem>>, vector<8x32xf32>
    tpu.vector_store %arg7[%c0_6, %c0_7], %8 {strides = array<i32>} : memref<8x32xf32, #tpu.memory_space<vmem>>, vector<8x32xf32>,
    return
  }
  func.func @transform_0(%arg0: i32, %arg1: i32) -> (i32, i32) {
    %c0_i32 = arith.constant 0 : i32
    %c0_i32_0 = arith.constant 0 : i32
    return %arg0, %c0_i32 : i32, i32
  }
  func.func @transform_1(%arg0: i32, %arg1: i32) -> (i32, i32) {
    %c0_i32 = arith.constant 0 : i32
    %c0_i32_0 = arith.constant 0 : i32
    %c0_i32_1 = arith.constant 0 : i32
    return %c0_i32, %c0_i32_0 : i32, i32
  }
  func.func @transform_2(%arg0: i32, %arg1: i32) -> (i32, i32) {
    %c0_i32 = arith.constant 0 : i32
    %c0_i32_0 = arith.constant 0 : i32
    %c0_i32_1 = arith.constant 0 : i32
    return %c0_i32, %c0_i32_0 : i32, i32
  }
  func.func @transform_3(%arg0: i32, %arg1: i32) -> (i32, i32) {
    %c0_i32 = arith.constant 0 : i32
    %c0_i32_0 = arith.constant 0 : i32
    return %c0_i32, %arg1 : i32, i32
  }
  func.func @transform_4(%arg0: i32, %arg1: i32) -> (i32, i32) {
    %c0_i32 = arith.constant 0 : i32
    %c0_i32_0 = arith.constant 0 : i32
    return %c0_i32, %arg1 : i32, i32
  }
  func.func @transform_5(%arg0: i32, %arg1: i32) -> (i32, i32) {
    %c0_i32 = arith.constant 0 : i32
    return %arg0, %arg1 : i32, i32
  }
}

module attributes {stable_mosaic.version = 11 : i64} {
  func.func @_win_attn_kernel(%arg0: i32, %arg1: i32, %arg2: memref<1x2x2x96xbf16, #tpu.memory_space<vmem>>, %arg3: memref<4x4x4xf32, #tpu.memory_space<vmem>>, %arg4: memref<1x2x2x32xbf16, #tpu.memory_space<vmem>>) attributes {dimension_semantics = [#tpu.dimension_semantics<parallel>, #tpu.dimension_semantics<parallel>], iteration_bounds = array<i64: 2, 1>, scalar_prefetch = 0 : i64, scratch_operands = 0 : i64, tpu.core_type = #tpu.core_type<tc>, window_params = [{transform_indices = @transform_0, window_bounds = array<i64: 1, 2, 2, 96>}, {pipeline_mode = #tpu.pipeline_mode<synchronous>, transform_indices = @transform_1, window_bounds = array<i64: 4, 4, 4>}, {transform_indices = @transform_2, window_bounds = array<i64: 1, 2, 2, 32>}]} {
    %c0 = arith.constant 0 : index
    %c0_0 = arith.constant 0 : index
    %c0_1 = arith.constant 0 : index
    %c0_2 = arith.constant 0 : index
    %0 = vector.load %arg2[%c0, %c0_0, %c0_1, %c0_2] : memref<1x2x2x96xbf16, #tpu.memory_space<vmem>>, vector<1x2x2x96xbf16>
    %1 = vector.shape_cast %0 : vector<1x2x2x96xbf16> to vector<4x96xbf16>
    %2 = vector.extract_strided_slice %1 {offsets = [0, 0], sizes = [4, 8], strides = [1, 1]} : vector<4x96xbf16> to vector<4x8xbf16>
    %3 = vector.extract_strided_slice %1 {offsets = [0, 32], sizes = [4, 8], strides = [1, 1]} : vector<4x96xbf16> to vector<4x8xbf16>
    %4 = vector.extract_strided_slice %1 {offsets = [0, 64], sizes = [4, 8], strides = [1, 1]} : vector<4x96xbf16> to vector<4x8xbf16>
    %cst = arith.constant dense<0.000000e+00> : vector<4x4xf32>
    %5 = tpu.matmul %2, %3, %cst {dimension_numbers = #tpu.dot_dimension_numbers<[1], [1], [0], [0], [0, 0, 1, 0], [], []>} : vector<4x8xbf16>, vector<4x8xbf16>, vector<4x4xf32> -> vector<4x4xf32>
    %cst_3 = arith.constant 0.353553385 : f32
    %6 = vector.broadcast %cst_3 : f32 to vector<4x4xf32>
    %7 = arith.mulf %5, %6 : vector<4x4xf32>
    %c0_4 = arith.constant 0 : index
    %c0_5 = arith.constant 0 : index
    %c0_6 = arith.constant 0 : index
    %8 = vector.load %arg3[%c0_4, %c0_5, %c0_6] : memref<4x4x4xf32, #tpu.memory_space<vmem>>, vector<1x4x4xf32>
    %9 = vector.shape_cast %8 : vector<1x4x4xf32> to vector<4x4xf32>
    %10 = arith.addf %7, %9 : vector<4x4xf32>
    %cst_7 = arith.constant dense<0xFF800000> : vector<4xf32>
    %11 = vector.multi_reduction <maximumf>, %10, %cst_7 [1] : vector<4x4xf32> to vector<4xf32>
    %12 = vector.shape_cast %11 : vector<4xf32> to vector<4x1xf32>
    %13 = vector.broadcast %12 : vector<4x1xf32> to vector<4x4xf32>
    %14 = arith.subf %10, %13 : vector<4x4xf32>
    %15 = math.exp %14 : vector<4x4xf32>
    %cst_8 = arith.constant dense<0.000000e+00> : vector<4xf32>
    %16 = vector.multi_reduction <add>, %15, %cst_8 [1] : vector<4x4xf32> to vector<4xf32>
    %17 = vector.shape_cast %16 : vector<4xf32> to vector<4x1xf32>
    %18 = arith.truncf %15 : vector<4x4xf32> to vector<4x4xbf16>
    %cst_9 = arith.constant dense<0.000000e+00> : vector<4x8xf32>
    %19 = tpu.matmul %18, %4, %cst_9 {dimension_numbers = #tpu.dot_dimension_numbers<[1], [0], [0], [1], [0, 0, 1, 1], [], []>} : vector<4x4xbf16>, vector<4x8xbf16>, vector<4x8xf32> -> vector<4x8xf32>
    %20 = tpu.reciprocal %17 {approx = true} : vector<4x1xf32> -> vector<4x1xf32>
    %21 = vector.broadcast %20 : vector<4x1xf32> to vector<4x8xf32>
    %22 = arith.mulf %19, %21 : vector<4x8xf32>
    %23 = vector.extract_strided_slice %1 {offsets = [0, 8], sizes = [4, 8], strides = [1, 1]} : vector<4x96xbf16> to vector<4x8xbf16>
    %24 = vector.extract_strided_slice %1 {offsets = [0, 40], sizes = [4, 8], strides = [1, 1]} : vector<4x96xbf16> to vector<4x8xbf16>
    %25 = vector.extract_strided_slice %1 {offsets = [0, 72], sizes = [4, 8], strides = [1, 1]} : vector<4x96xbf16> to vector<4x8xbf16>
    %cst_10 = arith.constant dense<0.000000e+00> : vector<4x4xf32>
    %26 = tpu.matmul %23, %24, %cst_10 {dimension_numbers = #tpu.dot_dimension_numbers<[1], [1], [0], [0], [0, 0, 1, 0], [], []>} : vector<4x8xbf16>, vector<4x8xbf16>, vector<4x4xf32> -> vector<4x4xf32>
    %cst_11 = arith.constant 0.353553385 : f32
    %27 = vector.broadcast %cst_11 : f32 to vector<4x4xf32>
    %28 = arith.mulf %26, %27 : vector<4x4xf32>
    %c1 = arith.constant 1 : index
    %c0_12 = arith.constant 0 : index
    %c0_13 = arith.constant 0 : index
    %29 = vector.load %arg3[%c1, %c0_12, %c0_13] : memref<4x4x4xf32, #tpu.memory_space<vmem>>, vector<1x4x4xf32>
    %30 = vector.shape_cast %29 : vector<1x4x4xf32> to vector<4x4xf32>
    %31 = arith.addf %28, %30 : vector<4x4xf32>
    %cst_14 = arith.constant dense<0xFF800000> : vector<4xf32>
    %32 = vector.multi_reduction <maximumf>, %31, %cst_14 [1] : vector<4x4xf32> to vector<4xf32>
    %33 = vector.shape_cast %32 : vector<4xf32> to vector<4x1xf32>
    %34 = vector.broadcast %33 : vector<4x1xf32> to vector<4x4xf32>
    %35 = arith.subf %31, %34 : vector<4x4xf32>
    %36 = math.exp %35 : vector<4x4xf32>
    %cst_15 = arith.constant dense<0.000000e+00> : vector<4xf32>
    %37 = vector.multi_reduction <add>, %36, %cst_15 [1] : vector<4x4xf32> to vector<4xf32>
    %38 = vector.shape_cast %37 : vector<4xf32> to vector<4x1xf32>
    %39 = arith.truncf %36 : vector<4x4xf32> to vector<4x4xbf16>
    %cst_16 = arith.constant dense<0.000000e+00> : vector<4x8xf32>
    %40 = tpu.matmul %39, %25, %cst_16 {dimension_numbers = #tpu.dot_dimension_numbers<[1], [0], [0], [1], [0, 0, 1, 1], [], []>} : vector<4x4xbf16>, vector<4x8xbf16>, vector<4x8xf32> -> vector<4x8xf32>
    %41 = tpu.reciprocal %38 {approx = true} : vector<4x1xf32> -> vector<4x1xf32>
    %42 = vector.broadcast %41 : vector<4x1xf32> to vector<4x8xf32>
    %43 = arith.mulf %40, %42 : vector<4x8xf32>
    %44 = vector.extract_strided_slice %1 {offsets = [0, 16], sizes = [4, 8], strides = [1, 1]} : vector<4x96xbf16> to vector<4x8xbf16>
    %45 = vector.extract_strided_slice %1 {offsets = [0, 48], sizes = [4, 8], strides = [1, 1]} : vector<4x96xbf16> to vector<4x8xbf16>
    %46 = vector.extract_strided_slice %1 {offsets = [0, 80], sizes = [4, 8], strides = [1, 1]} : vector<4x96xbf16> to vector<4x8xbf16>
    %cst_17 = arith.constant dense<0.000000e+00> : vector<4x4xf32>
    %47 = tpu.matmul %44, %45, %cst_17 {dimension_numbers = #tpu.dot_dimension_numbers<[1], [1], [0], [0], [0, 0, 1, 0], [], []>} : vector<4x8xbf16>, vector<4x8xbf16>, vector<4x4xf32> -> vector<4x4xf32>
    %cst_18 = arith.constant 0.353553385 : f32
    %48 = vector.broadcast %cst_18 : f32 to vector<4x4xf32>
    %49 = arith.mulf %47, %48 : vector<4x4xf32>
    %c2 = arith.constant 2 : index
    %c0_19 = arith.constant 0 : index
    %c0_20 = arith.constant 0 : index
    %50 = vector.load %arg3[%c2, %c0_19, %c0_20] : memref<4x4x4xf32, #tpu.memory_space<vmem>>, vector<1x4x4xf32>
    %51 = vector.shape_cast %50 : vector<1x4x4xf32> to vector<4x4xf32>
    %52 = arith.addf %49, %51 : vector<4x4xf32>
    %cst_21 = arith.constant dense<0xFF800000> : vector<4xf32>
    %53 = vector.multi_reduction <maximumf>, %52, %cst_21 [1] : vector<4x4xf32> to vector<4xf32>
    %54 = vector.shape_cast %53 : vector<4xf32> to vector<4x1xf32>
    %55 = vector.broadcast %54 : vector<4x1xf32> to vector<4x4xf32>
    %56 = arith.subf %52, %55 : vector<4x4xf32>
    %57 = math.exp %56 : vector<4x4xf32>
    %cst_22 = arith.constant dense<0.000000e+00> : vector<4xf32>
    %58 = vector.multi_reduction <add>, %57, %cst_22 [1] : vector<4x4xf32> to vector<4xf32>
    %59 = vector.shape_cast %58 : vector<4xf32> to vector<4x1xf32>
    %60 = arith.truncf %57 : vector<4x4xf32> to vector<4x4xbf16>
    %cst_23 = arith.constant dense<0.000000e+00> : vector<4x8xf32>
    %61 = tpu.matmul %60, %46, %cst_23 {dimension_numbers = #tpu.dot_dimension_numbers<[1], [0], [0], [1], [0, 0, 1, 1], [], []>} : vector<4x4xbf16>, vector<4x8xbf16>, vector<4x8xf32> -> vector<4x8xf32>
    %62 = tpu.reciprocal %59 {approx = true} : vector<4x1xf32> -> vector<4x1xf32>
    %63 = vector.broadcast %62 : vector<4x1xf32> to vector<4x8xf32>
    %64 = arith.mulf %61, %63 : vector<4x8xf32>
    %65 = vector.extract_strided_slice %1 {offsets = [0, 24], sizes = [4, 8], strides = [1, 1]} : vector<4x96xbf16> to vector<4x8xbf16>
    %66 = vector.extract_strided_slice %1 {offsets = [0, 56], sizes = [4, 8], strides = [1, 1]} : vector<4x96xbf16> to vector<4x8xbf16>
    %67 = vector.extract_strided_slice %1 {offsets = [0, 88], sizes = [4, 8], strides = [1, 1]} : vector<4x96xbf16> to vector<4x8xbf16>
    %cst_24 = arith.constant dense<0.000000e+00> : vector<4x4xf32>
    %68 = tpu.matmul %65, %66, %cst_24 {dimension_numbers = #tpu.dot_dimension_numbers<[1], [1], [0], [0], [0, 0, 1, 0], [], []>} : vector<4x8xbf16>, vector<4x8xbf16>, vector<4x4xf32> -> vector<4x4xf32>
    %cst_25 = arith.constant 0.353553385 : f32
    %69 = vector.broadcast %cst_25 : f32 to vector<4x4xf32>
    %70 = arith.mulf %68, %69 : vector<4x4xf32>
    %c3 = arith.constant 3 : index
    %c0_26 = arith.constant 0 : index
    %c0_27 = arith.constant 0 : index
    %71 = vector.load %arg3[%c3, %c0_26, %c0_27] : memref<4x4x4xf32, #tpu.memory_space<vmem>>, vector<1x4x4xf32>
    %72 = vector.shape_cast %71 : vector<1x4x4xf32> to vector<4x4xf32>
    %73 = arith.addf %70, %72 : vector<4x4xf32>
    %cst_28 = arith.constant dense<0xFF800000> : vector<4xf32>
    %74 = vector.multi_reduction <maximumf>, %73, %cst_28 [1] : vector<4x4xf32> to vector<4xf32>
    %75 = vector.shape_cast %74 : vector<4xf32> to vector<4x1xf32>
    %76 = vector.broadcast %75 : vector<4x1xf32> to vector<4x4xf32>
    %77 = arith.subf %73, %76 : vector<4x4xf32>
    %78 = math.exp %77 : vector<4x4xf32>
    %cst_29 = arith.constant dense<0.000000e+00> : vector<4xf32>
    %79 = vector.multi_reduction <add>, %78, %cst_29 [1] : vector<4x4xf32> to vector<4xf32>
    %80 = vector.shape_cast %79 : vector<4xf32> to vector<4x1xf32>
    %81 = arith.truncf %78 : vector<4x4xf32> to vector<4x4xbf16>
    %cst_30 = arith.constant dense<0.000000e+00> : vector<4x8xf32>
    %82 = tpu.matmul %81, %67, %cst_30 {dimension_numbers = #tpu.dot_dimension_numbers<[1], [0], [0], [1], [0, 0, 1, 1], [], []>} : vector<4x4xbf16>, vector<4x8xbf16>, vector<4x8xf32> -> vector<4x8xf32>
    %83 = tpu.reciprocal %80 {approx = true} : vector<4x1xf32> -> vector<4x1xf32>
    %84 = vector.broadcast %83 : vector<4x1xf32> to vector<4x8xf32>
    %85 = arith.mulf %82, %84 : vector<4x8xf32>
    %86 = tpu.concatenate %22, %43, %64, %85 in 1 : vector<4x8xf32>, vector<4x8xf32>, vector<4x8xf32>, vector<4x8xf32> -> vector<4x32xf32>
    %87 = vector.shape_cast %86 : vector<4x32xf32> to vector<1x2x2x32xf32>
    %88 = arith.truncf %87 : vector<1x2x2x32xf32> to vector<1x2x2x32xbf16>
    %c0_31 = arith.constant 0 : index
    %c0_32 = arith.constant 0 : index
    %c0_33 = arith.constant 0 : index
    %c0_34 = arith.constant 0 : index
    %89 = vector.load %arg4[%c0_31, %c0_32, %c0_33, %c0_34] : memref<1x2x2x32xbf16, #tpu.memory_space<vmem>>, vector<1x2x2x32xbf16>
    tpu.vector_store %arg4[%c0_31, %c0_32, %c0_33, %c0_34], %88 {strides = array<i32>} : memref<1x2x2x32xbf16, #tpu.memory_space<vmem>>, vector<1x2x2x32xbf16>,
    return
  }
  func.func @transform_0(%arg0: i32, %arg1: i32) -> (i32, i32, i32, i32) {
    %c0_i32 = arith.constant 0 : i32
    %c0_i32_0 = arith.constant 0 : i32
    %c0_i32_1 = arith.constant 0 : i32
    return %arg0, %arg1, %c0_i32, %c0_i32_0 : i32, i32, i32, i32
  }
  func.func @transform_1(%arg0: i32, %arg1: i32) -> (i32, i32, i32) {
    %c0_i32 = arith.constant 0 : i32
    %c0_i32_0 = arith.constant 0 : i32
    %c0_i32_1 = arith.constant 0 : i32
    %c0_i32_2 = arith.constant 0 : i32
    return %c0_i32, %c0_i32_0, %c0_i32_1 : i32, i32, i32
  }
  func.func @transform_2(%arg0: i32, %arg1: i32) -> (i32, i32, i32, i32) {
    %c0_i32 = arith.constant 0 : i32
    %c0_i32_0 = arith.constant 0 : i32
    %c0_i32_1 = arith.constant 0 : i32
    return %arg0, %arg1, %c0_i32, %c0_i32_0 : i32, i32, i32, i32
  }
}

module attributes {stable_mosaic.version = 11 : i64} {
  func.func @_matmul_kernel(%arg0: i32, %arg1: i32, %arg2: i32, %arg3: memref<8x32xbf16, #tpu.memory_space<vmem>>, %arg4: memref<32x32xbf16, #tpu.memory_space<vmem>>, %arg5: memref<1x32xf32, #tpu.memory_space<vmem>>, %arg6: memref<8x32xf32, #tpu.memory_space<vmem>>, %arg7: memref<8x32xf32, #tpu.memory_space<vmem>>) attributes {dimension_semantics = [#tpu.dimension_semantics<parallel>, #tpu.dimension_semantics<parallel>, #tpu.dimension_semantics<arbitrary>], iteration_bounds = array<i64: 1, 1, 1>, scalar_prefetch = 0 : i64, scratch_operands = 0 : i64, tpu.core_type = #tpu.core_type<tc>, window_params = [{transform_indices = @transform_0, window_bounds = array<i64: 8, 32>}, {transform_indices = @transform_1, window_bounds = array<i64: 32, 32>}, {transform_indices = @transform_2, window_bounds = array<i64: 1, 32>}, {transform_indices = @transform_3, window_bounds = array<i64: 8, 32>}, {transform_indices = @transform_4, window_bounds = array<i64: 8, 32>}]} {
    %c0_i32 = arith.constant 0 : i32
    %0 = arith.cmpi eq, %arg2, %c0_i32 : i32
    %1 = arith.extui %0 : i1 to i32
    %c0_i32_0 = arith.constant 0 : i32
    %2 = arith.cmpi ne, %1, %c0_i32_0 : i32
    scf.if %2 {
      %c0_8 = arith.constant 0 : index
      %c0_9 = arith.constant 0 : index
      %9 = vector.load %arg5[%c0_8, %c0_9] : memref<1x32xf32, #tpu.memory_space<vmem>>, vector<1x32xf32>
      %10 = vector.shape_cast %9 : vector<1x32xf32> to vector<1x32xf32>
      %11 = vector.broadcast %10 : vector<1x32xf32> to vector<8x32xf32>
      %c0_10 = arith.constant 0 : index
      %c0_11 = arith.constant 0 : index
      %12 = vector.load %arg6[%c0_10, %c0_11] : memref<8x32xf32, #tpu.memory_space<vmem>>, vector<8x32xf32>
      %13 = arith.addf %11, %12 : vector<8x32xf32>
      %c0_12 = arith.constant 0 : index
      %c0_13 = arith.constant 0 : index
      %14 = vector.load %arg7[%c0_12, %c0_13] : memref<8x32xf32, #tpu.memory_space<vmem>>, vector<8x32xf32>
      tpu.vector_store %arg7[%c0_12, %c0_13], %13 {strides = array<i32>} : memref<8x32xf32, #tpu.memory_space<vmem>>, vector<8x32xf32>,
    } else {
    }
    %c0 = arith.constant 0 : index
    %c0_1 = arith.constant 0 : index
    %3 = vector.load %arg7[%c0, %c0_1] : memref<8x32xf32, #tpu.memory_space<vmem>>, vector<8x32xf32>
    %c0_2 = arith.constant 0 : index
    %c0_3 = arith.constant 0 : index
    %4 = vector.load %arg3[%c0_2, %c0_3] : memref<8x32xbf16, #tpu.memory_space<vmem>>, vector<8x32xbf16>
    %c0_4 = arith.constant 0 : index
    %c0_5 = arith.constant 0 : index
    %5 = vector.load %arg4[%c0_4, %c0_5] : memref<32x32xbf16, #tpu.memory_space<vmem>>, vector<32x32xbf16>
    %cst = arith.constant dense<0.000000e+00> : vector<8x32xf32>
    %6 = tpu.matmul %4, %5, %cst {dimension_numbers = #tpu.dot_dimension_numbers<[1], [0], [0], [1], [0, 0, 1, 1], [], []>} : vector<8x32xbf16>, vector<32x32xbf16>, vector<8x32xf32> -> vector<8x32xf32>
    %7 = arith.addf %3, %6 : vector<8x32xf32>
    %c0_6 = arith.constant 0 : index
    %c0_7 = arith.constant 0 : index
    %8 = vector.load %arg7[%c0_6, %c0_7] : memref<8x32xf32, #tpu.memory_space<vmem>>, vector<8x32xf32>
    tpu.vector_store %arg7[%c0_6, %c0_7], %7 {strides = array<i32>} : memref<8x32xf32, #tpu.memory_space<vmem>>, vector<8x32xf32>,
    return
  }
  func.func @transform_0(%arg0: i32, %arg1: i32, %arg2: i32) -> (i32, i32) {
    %c0_i32 = arith.constant 0 : i32
    return %arg0, %arg2 : i32, i32
  }
  func.func @transform_1(%arg0: i32, %arg1: i32, %arg2: i32) -> (i32, i32) {
    %c0_i32 = arith.constant 0 : i32
    return %arg2, %arg1 : i32, i32
  }
  func.func @transform_2(%arg0: i32, %arg1: i32, %arg2: i32) -> (i32, i32) {
    %c0_i32 = arith.constant 0 : i32
    %c0_i32_0 = arith.constant 0 : i32
    return %c0_i32, %arg1 : i32, i32
  }
  func.func @transform_3(%arg0: i32, %arg1: i32, %arg2: i32) -> (i32, i32) {
    %c0_i32 = arith.constant 0 : i32
    return %arg0, %arg1 : i32, i32
  }
  func.func @transform_4(%arg0: i32, %arg1: i32, %arg2: i32) -> (i32, i32) {
    %c0_i32 = arith.constant 0 : i32
    return %arg0, %arg1 : i32, i32
  }
}

module attributes {stable_mosaic.version = 11 : i64} {
  func.func @_matmul_kernel(%arg0: i32, %arg1: i32, %arg2: i32, %arg3: memref<8x128xbf16, #tpu.memory_space<vmem>>, %arg4: memref<128x32xbf16, #tpu.memory_space<vmem>>, %arg5: memref<1x32xf32, #tpu.memory_space<vmem>>, %arg6: memref<8x32xf32, #tpu.memory_space<vmem>>, %arg7: memref<8x32xf32, #tpu.memory_space<vmem>>) attributes {dimension_semantics = [#tpu.dimension_semantics<parallel>, #tpu.dimension_semantics<parallel>, #tpu.dimension_semantics<arbitrary>], iteration_bounds = array<i64: 1, 1, 1>, scalar_prefetch = 0 : i64, scratch_operands = 0 : i64, tpu.core_type = #tpu.core_type<tc>, window_params = [{transform_indices = @transform_0, window_bounds = array<i64: 8, 128>}, {transform_indices = @transform_1, window_bounds = array<i64: 128, 32>}, {transform_indices = @transform_2, window_bounds = array<i64: 1, 32>}, {transform_indices = @transform_3, window_bounds = array<i64: 8, 32>}, {transform_indices = @transform_4, window_bounds = array<i64: 8, 32>}]} {
    %c0_i32 = arith.constant 0 : i32
    %0 = arith.cmpi eq, %arg2, %c0_i32 : i32
    %1 = arith.extui %0 : i1 to i32
    %c0_i32_0 = arith.constant 0 : i32
    %2 = arith.cmpi ne, %1, %c0_i32_0 : i32
    scf.if %2 {
      %c0_8 = arith.constant 0 : index
      %c0_9 = arith.constant 0 : index
      %9 = vector.load %arg5[%c0_8, %c0_9] : memref<1x32xf32, #tpu.memory_space<vmem>>, vector<1x32xf32>
      %10 = vector.shape_cast %9 : vector<1x32xf32> to vector<1x32xf32>
      %11 = vector.broadcast %10 : vector<1x32xf32> to vector<8x32xf32>
      %c0_10 = arith.constant 0 : index
      %c0_11 = arith.constant 0 : index
      %12 = vector.load %arg6[%c0_10, %c0_11] : memref<8x32xf32, #tpu.memory_space<vmem>>, vector<8x32xf32>
      %13 = arith.addf %11, %12 : vector<8x32xf32>
      %c0_12 = arith.constant 0 : index
      %c0_13 = arith.constant 0 : index
      %14 = vector.load %arg7[%c0_12, %c0_13] : memref<8x32xf32, #tpu.memory_space<vmem>>, vector<8x32xf32>
      tpu.vector_store %arg7[%c0_12, %c0_13], %13 {strides = array<i32>} : memref<8x32xf32, #tpu.memory_space<vmem>>, vector<8x32xf32>,
    } else {
    }
    %c0 = arith.constant 0 : index
    %c0_1 = arith.constant 0 : index
    %3 = vector.load %arg7[%c0, %c0_1] : memref<8x32xf32, #tpu.memory_space<vmem>>, vector<8x32xf32>
    %c0_2 = arith.constant 0 : index
    %c0_3 = arith.constant 0 : index
    %4 = vector.load %arg3[%c0_2, %c0_3] : memref<8x128xbf16, #tpu.memory_space<vmem>>, vector<8x128xbf16>
    %c0_4 = arith.constant 0 : index
    %c0_5 = arith.constant 0 : index
    %5 = vector.load %arg4[%c0_4, %c0_5] : memref<128x32xbf16, #tpu.memory_space<vmem>>, vector<128x32xbf16>
    %cst = arith.constant dense<0.000000e+00> : vector<8x32xf32>
    %6 = tpu.matmul %4, %5, %cst {dimension_numbers = #tpu.dot_dimension_numbers<[1], [0], [0], [1], [0, 0, 1, 1], [], []>} : vector<8x128xbf16>, vector<128x32xbf16>, vector<8x32xf32> -> vector<8x32xf32>
    %7 = arith.addf %3, %6 : vector<8x32xf32>
    %c0_6 = arith.constant 0 : index
    %c0_7 = arith.constant 0 : index
    %8 = vector.load %arg7[%c0_6, %c0_7] : memref<8x32xf32, #tpu.memory_space<vmem>>, vector<8x32xf32>
    tpu.vector_store %arg7[%c0_6, %c0_7], %7 {strides = array<i32>} : memref<8x32xf32, #tpu.memory_space<vmem>>, vector<8x32xf32>,
    return
  }
  func.func @transform_0(%arg0: i32, %arg1: i32, %arg2: i32) -> (i32, i32) {
    %c0_i32 = arith.constant 0 : i32
    return %arg0, %arg2 : i32, i32
  }
  func.func @transform_1(%arg0: i32, %arg1: i32, %arg2: i32) -> (i32, i32) {
    %c0_i32 = arith.constant 0 : i32
    return %arg2, %arg1 : i32, i32
  }
  func.func @transform_2(%arg0: i32, %arg1: i32, %arg2: i32) -> (i32, i32) {
    %c0_i32 = arith.constant 0 : i32
    %c0_i32_0 = arith.constant 0 : i32
    return %c0_i32, %arg1 : i32, i32
  }
  func.func @transform_3(%arg0: i32, %arg1: i32, %arg2: i32) -> (i32, i32) {
    %c0_i32 = arith.constant 0 : i32
    return %arg0, %arg1 : i32, i32
  }
  func.func @transform_4(%arg0: i32, %arg1: i32, %arg2: i32) -> (i32, i32) {
    %c0_i32 = arith.constant 0 : i32
    return %arg0, %arg1 : i32, i32
  }
}

module attributes {stable_mosaic.version = 11 : i64} {
  func.func @_ln_matmul_kernel(%arg0: i32, %arg1: i32, %arg2: memref<8x32xf32, #tpu.memory_space<vmem>>, %arg3: memref<1x32xf32, #tpu.memory_space<vmem>>, %arg4: memref<1x32xf32, #tpu.memory_space<vmem>>, %arg5: memref<32x128xbf16, #tpu.memory_space<vmem>>, %arg6: memref<1x128xf32, #tpu.memory_space<vmem>>, %arg7: memref<8x128xbf16, #tpu.memory_space<vmem>>, %arg8: memref<8x32xbf16, #tpu.memory_space<vmem>>) attributes {dimension_semantics = [#tpu.dimension_semantics<parallel>, #tpu.dimension_semantics<arbitrary>], iteration_bounds = array<i64: 1, 1>, scalar_prefetch = 0 : i64, scratch_operands = 1 : i64, tpu.core_type = #tpu.core_type<tc>, window_params = [{transform_indices = @transform_0, window_bounds = array<i64: 8, 32>}, {pipeline_mode = #tpu.pipeline_mode<synchronous>, transform_indices = @transform_1, window_bounds = array<i64: 1, 32>}, {pipeline_mode = #tpu.pipeline_mode<synchronous>, transform_indices = @transform_2, window_bounds = array<i64: 1, 32>}, {transform_indices = @transform_3, window_bounds = array<i64: 32, 128>}, {transform_indices = @transform_4, window_bounds = array<i64: 1, 128>}, {transform_indices = @transform_5, window_bounds = array<i64: 8, 128>}]} {
    %c0_i32 = arith.constant 0 : i32
    %0 = arith.cmpi eq, %arg1, %c0_i32 : i32
    %1 = arith.extui %0 : i1 to i32
    %c0_i32_0 = arith.constant 0 : i32
    %2 = arith.cmpi ne, %1, %c0_i32_0 : i32
    scf.if %2 {
      %c0_23 = arith.constant 0 : index
      %c0_24 = arith.constant 0 : index
      %51 = vector.load %arg2[%c0_23, %c0_24] : memref<8x32xf32, #tpu.memory_space<vmem>>, vector<8x32xf32>
      %cst_25 = arith.constant dense<0.000000e+00> : vector<8xf32>
      %52 = vector.multi_reduction <add>, %51, %cst_25 [1] : vector<8x32xf32> to vector<8xf32>
      %53 = vector.shape_cast %52 : vector<8xf32> to vector<8x1xf32>
      %cst_26 = arith.constant 3.200000e+01 : f32
      %54 = vector.broadcast %cst_26 : f32 to vector<8x1xf32>
      %55 = arith.divf %53, %54 : vector<8x1xf32>
      %56 = vector.broadcast %55 : vector<8x1xf32> to vector<8x32xf32>
      %57 = arith.subf %51, %56 : vector<8x32xf32>
      %58 = arith.mulf %57, %57 : vector<8x32xf32>
      %cst_27 = arith.constant dense<0.000000e+00> : vector<8xf32>
      %59 = vector.multi_reduction <add>, %58, %cst_27 [1] : vector<8x32xf32> to vector<8xf32>
      %60 = vector.shape_cast %59 : vector<8xf32> to vector<8x1xf32>
      %cst_28 = arith.constant 3.200000e+01 : f32
      %61 = vector.broadcast %cst_28 : f32 to vector<8x1xf32>
      %62 = arith.divf %60, %61 : vector<8x1xf32>
      %cst_29 = arith.constant 9.99999974E-6 : f32
      %63 = vector.broadcast %cst_29 : f32 to vector<8x1xf32>
      %64 = arith.addf %62, %63 : vector<8x1xf32>
      %65 = math.rsqrt %64 : vector<8x1xf32>
      %66 = vector.broadcast %65 : vector<8x1xf32> to vector<8x32xf32>
      %67 = arith.mulf %57, %66 : vector<8x32xf32>
      %c0_30 = arith.constant 0 : index
      %c0_31 = arith.constant 0 : index
      %68 = vector.load %arg3[%c0_30, %c0_31] : memref<1x32xf32, #tpu.memory_space<vmem>>, vector<1x32xf32>
      %69 = vector.broadcast %68 : vector<1x32xf32> to vector<8x32xf32>
      %70 = arith.mulf %67, %69 : vector<8x32xf32>
      %c0_32 = arith.constant 0 : index
      %c0_33 = arith.constant 0 : index
      %71 = vector.load %arg4[%c0_32, %c0_33] : memref<1x32xf32, #tpu.memory_space<vmem>>, vector<1x32xf32>
      %72 = vector.broadcast %71 : vector<1x32xf32> to vector<8x32xf32>
      %73 = arith.addf %70, %72 : vector<8x32xf32>
      %74 = arith.truncf %73 : vector<8x32xf32> to vector<8x32xbf16>
      %c0_34 = arith.constant 0 : index
      %c0_35 = arith.constant 0 : index
      %75 = vector.load %arg8[%c0_34, %c0_35] : memref<8x32xbf16, #tpu.memory_space<vmem>>, vector<8x32xbf16>
      tpu.vector_store %arg8[%c0_34, %c0_35], %74 {strides = array<i32>} : memref<8x32xbf16, #tpu.memory_space<vmem>>, vector<8x32xbf16>,
    } else {
    }
    %c0 = arith.constant 0 : index
    %c0_1 = arith.constant 0 : index
    %3 = vector.load %arg8[%c0, %c0_1] : memref<8x32xbf16, #tpu.memory_space<vmem>>, vector<8x32xbf16>
    %c0_2 = arith.constant 0 : index
    %c0_3 = arith.constant 0 : index
    %4 = vector.load %arg5[%c0_2, %c0_3] : memref<32x128xbf16, #tpu.memory_space<vmem>>, vector<32x128xbf16>
    %cst = arith.constant dense<0.000000e+00> : vector<8x128xf32>
    %5 = tpu.matmul %3, %4, %cst {dimension_numbers = #tpu.dot_dimension_numbers<[1], [0], [0], [1], [0, 0, 1, 1], [], []>} : vector<8x32xbf16>, vector<32x128xbf16>, vector<8x128xf32> -> vector<8x128xf32>
    %c0_4 = arith.constant 0 : index
    %c0_5 = arith.constant 0 : index
    %6 = vector.load %arg6[%c0_4, %c0_5] : memref<1x128xf32, #tpu.memory_space<vmem>>, vector<1x128xf32>
    %7 = vector.broadcast %6 : vector<1x128xf32> to vector<8x128xf32>
    %8 = arith.addf %5, %7 : vector<8x128xf32>
    %cst_6 = arith.constant 0.707106769 : f32
    %9 = vector.broadcast %cst_6 : f32 to vector<8x128xf32>
    %10 = arith.mulf %8, %9 : vector<8x128xf32>
    %cst_7 = arith.constant 0.000000e+00 : f32
    %11 = vector.broadcast %cst_7 : f32 to vector<8x128xf32>
    %12 = arith.cmpf oge, %10, %11 : vector<8x128xf32>
    %cst_8 = arith.constant 1.000000e+00 : f32
    %cst_9 = arith.constant -1.000000e+00 : f32
    %13 = vector.broadcast %cst_8 : f32 to vector<8x128xf32>
    %14 = vector.broadcast %cst_9 : f32 to vector<8x128xf32>
    %15 = arith.select %12, %13, %14 : vector<8x128xi1>, vector<8x128xf32>
    %16 = math.absf %10 : vector<8x128xf32>
    %cst_10 = arith.constant 0.327591091 : f32
    %17 = vector.broadcast %cst_10 : f32 to vector<8x128xf32>
    %18 = arith.mulf %17, %16 : vector<8x128xf32>
    %cst_11 = arith.constant 1.000000e+00 : f32
    %19 = vector.broadcast %cst_11 : f32 to vector<8x128xf32>
    %20 = arith.addf %19, %18 : vector<8x128xf32>
    %21 = tpu.reciprocal %20 {approx = true} : vector<8x128xf32> -> vector<8x128xf32>
    %cst_12 = arith.constant 1.06140542 : f32
    %22 = vector.broadcast %cst_12 : f32 to vector<8x128xf32>
    %23 = arith.mulf %22, %21 : vector<8x128xf32>
    %cst_13 = arith.constant -1.45315206 : f32
    %24 = vector.broadcast %cst_13 : f32 to vector<8x128xf32>
    %25 = arith.addf %23, %24 : vector<8x128xf32>
    %26 = arith.mulf %25, %21 : vector<8x128xf32>
    %cst_14 = arith.constant 1.42141378 : f32
    %27 = vector.broadcast %cst_14 : f32 to vector<8x128xf32>
    %28 = arith.addf %26, %27 : vector<8x128xf32>
    %29 = arith.mulf %28, %21 : vector<8x128xf32>
    %cst_15 = arith.constant -0.284496725 : f32
    %30 = vector.broadcast %cst_15 : f32 to vector<8x128xf32>
    %31 = arith.addf %29, %30 : vector<8x128xf32>
    %32 = arith.mulf %31, %21 : vector<8x128xf32>
    %cst_16 = arith.constant 0.254829586 : f32
    %33 = vector.broadcast %cst_16 : f32 to vector<8x128xf32>
    %34 = arith.addf %32, %33 : vector<8x128xf32>
    %35 = arith.mulf %34, %21 : vector<8x128xf32>
    %cst_17 = arith.constant 0.000000e+00 : f32
    %36 = vector.broadcast %cst_17 : f32 to vector<8x128xf32>
    %37 = arith.subf %36, %16 : vector<8x128xf32>
    %38 = arith.mulf %37, %16 : vector<8x128xf32>
    %39 = math.exp %38 : vector<8x128xf32>
    %40 = arith.mulf %35, %39 : vector<8x128xf32>
    %cst_18 = arith.constant 1.000000e+00 : f32
    %41 = vector.broadcast %cst_18 : f32 to vector<8x128xf32>
    %42 = arith.subf %41, %40 : vector<8x128xf32>
    %43 = arith.mulf %15, %42 : vector<8x128xf32>
    %cst_19 = arith.constant 5.000000e-01 : f32
    %44 = vector.broadcast %cst_19 : f32 to vector<8x128xf32>
    %45 = arith.mulf %44, %8 : vector<8x128xf32>
    %cst_20 = arith.constant 1.000000e+00 : f32
    %46 = vector.broadcast %cst_20 : f32 to vector<8x128xf32>
    %47 = arith.addf %46, %43 : vector<8x128xf32>
    %48 = arith.mulf %45, %47 : vector<8x128xf32>
    %49 = arith.truncf %48 : vector<8x128xf32> to vector<8x128xbf16>
    %c0_21 = arith.constant 0 : index
    %c0_22 = arith.constant 0 : index
    %50 = vector.load %arg7[%c0_21, %c0_22] : memref<8x128xbf16, #tpu.memory_space<vmem>>, vector<8x128xbf16>
    tpu.vector_store %arg7[%c0_21, %c0_22], %49 {strides = array<i32>} : memref<8x128xbf16, #tpu.memory_space<vmem>>, vector<8x128xbf16>,
    return
  }
  func.func @transform_0(%arg0: i32, %arg1: i32) -> (i32, i32) {
    %c0_i32 = arith.constant 0 : i32
    %c0_i32_0 = arith.constant 0 : i32
    return %arg0, %c0_i32 : i32, i32
  }
  func.func @transform_1(%arg0: i32, %arg1: i32) -> (i32, i32) {
    %c0_i32 = arith.constant 0 : i32
    %c0_i32_0 = arith.constant 0 : i32
    %c0_i32_1 = arith.constant 0 : i32
    return %c0_i32, %c0_i32_0 : i32, i32
  }
  func.func @transform_2(%arg0: i32, %arg1: i32) -> (i32, i32) {
    %c0_i32 = arith.constant 0 : i32
    %c0_i32_0 = arith.constant 0 : i32
    %c0_i32_1 = arith.constant 0 : i32
    return %c0_i32, %c0_i32_0 : i32, i32
  }
  func.func @transform_3(%arg0: i32, %arg1: i32) -> (i32, i32) {
    %c0_i32 = arith.constant 0 : i32
    %c0_i32_0 = arith.constant 0 : i32
    return %c0_i32, %arg1 : i32, i32
  }
  func.func @transform_4(%arg0: i32, %arg1: i32) -> (i32, i32) {
    %c0_i32 = arith.constant 0 : i32
    %c0_i32_0 = arith.constant 0 : i32
    return %c0_i32, %arg1 : i32, i32
  }
  func.func @transform_5(%arg0: i32, %arg1: i32) -> (i32, i32) {
    %c0_i32 = arith.constant 0 : i32
    return %arg0, %arg1 : i32, i32
  }
}

module attributes {stable_mosaic.version = 11 : i64} {
  func.func @_layernorm_kernel(%arg0: i32, %arg1: memref<8x32xf32, #tpu.memory_space<vmem>>, %arg2: memref<1x32xf32, #tpu.memory_space<vmem>>, %arg3: memref<1x32xf32, #tpu.memory_space<vmem>>, %arg4: memref<8x32xf32, #tpu.memory_space<vmem>>) attributes {dimension_semantics = [#tpu.dimension_semantics<parallel>], iteration_bounds = array<i64: 1>, scalar_prefetch = 0 : i64, scratch_operands = 0 : i64, tpu.core_type = #tpu.core_type<tc>, window_params = [{transform_indices = @transform_0, window_bounds = array<i64: 8, 32>}, {pipeline_mode = #tpu.pipeline_mode<synchronous>, transform_indices = @transform_1, window_bounds = array<i64: 1, 32>}, {pipeline_mode = #tpu.pipeline_mode<synchronous>, transform_indices = @transform_2, window_bounds = array<i64: 1, 32>}, {transform_indices = @transform_3, window_bounds = array<i64: 8, 32>}]} {
    %c0 = arith.constant 0 : index
    %c0_0 = arith.constant 0 : index
    %0 = vector.load %arg1[%c0, %c0_0] : memref<8x32xf32, #tpu.memory_space<vmem>>, vector<8x32xf32>
    %cst = arith.constant dense<0.000000e+00> : vector<8xf32>
    %1 = vector.multi_reduction <add>, %0, %cst [1] : vector<8x32xf32> to vector<8xf32>
    %2 = vector.shape_cast %1 : vector<8xf32> to vector<8x1xf32>
    %cst_1 = arith.constant 3.200000e+01 : f32
    %3 = vector.broadcast %cst_1 : f32 to vector<8x1xf32>
    %4 = arith.divf %2, %3 : vector<8x1xf32>
    %5 = vector.broadcast %4 : vector<8x1xf32> to vector<8x32xf32>
    %6 = arith.subf %0, %5 : vector<8x32xf32>
    %7 = arith.mulf %6, %6 : vector<8x32xf32>
    %cst_2 = arith.constant dense<0.000000e+00> : vector<8xf32>
    %8 = vector.multi_reduction <add>, %7, %cst_2 [1] : vector<8x32xf32> to vector<8xf32>
    %9 = vector.shape_cast %8 : vector<8xf32> to vector<8x1xf32>
    %cst_3 = arith.constant 3.200000e+01 : f32
    %10 = vector.broadcast %cst_3 : f32 to vector<8x1xf32>
    %11 = arith.divf %9, %10 : vector<8x1xf32>
    %cst_4 = arith.constant 9.99999974E-6 : f32
    %12 = vector.broadcast %cst_4 : f32 to vector<8x1xf32>
    %13 = arith.addf %11, %12 : vector<8x1xf32>
    %14 = math.rsqrt %13 : vector<8x1xf32>
    %15 = vector.broadcast %14 : vector<8x1xf32> to vector<8x32xf32>
    %16 = arith.mulf %6, %15 : vector<8x32xf32>
    %c0_5 = arith.constant 0 : index
    %c0_6 = arith.constant 0 : index
    %17 = vector.load %arg2[%c0_5, %c0_6] : memref<1x32xf32, #tpu.memory_space<vmem>>, vector<1x32xf32>
    %18 = vector.broadcast %17 : vector<1x32xf32> to vector<8x32xf32>
    %19 = arith.mulf %16, %18 : vector<8x32xf32>
    %c0_7 = arith.constant 0 : index
    %c0_8 = arith.constant 0 : index
    %20 = vector.load %arg3[%c0_7, %c0_8] : memref<1x32xf32, #tpu.memory_space<vmem>>, vector<1x32xf32>
    %21 = vector.broadcast %20 : vector<1x32xf32> to vector<8x32xf32>
    %22 = arith.addf %19, %21 : vector<8x32xf32>
    %c0_9 = arith.constant 0 : index
    %c0_10 = arith.constant 0 : index
    %23 = vector.load %arg4[%c0_9, %c0_10] : memref<8x32xf32, #tpu.memory_space<vmem>>, vector<8x32xf32>
    tpu.vector_store %arg4[%c0_9, %c0_10], %22 {strides = array<i32>} : memref<8x32xf32, #tpu.memory_space<vmem>>, vector<8x32xf32>,
    return
  }
  func.func @transform_0(%arg0: i32) -> (i32, i32) {
    %c0_i32 = arith.constant 0 : i32
    %c0_i32_0 = arith.constant 0 : i32
    return %arg0, %c0_i32 : i32, i32
  }
  func.func @transform_1(%arg0: i32) -> (i32, i32) {
    %c0_i32 = arith.constant 0 : i32
    %c0_i32_0 = arith.constant 0 : i32
    %c0_i32_1 = arith.constant 0 : i32
    return %c0_i32, %c0_i32_0 : i32, i32
  }
  func.func @transform_2(%arg0: i32) -> (i32, i32) {
    %c0_i32 = arith.constant 0 : i32
    %c0_i32_0 = arith.constant 0 : i32
    %c0_i32_1 = arith.constant 0 : i32
    return %c0_i32, %c0_i32_0 : i32, i32
  }
  func.func @transform_3(%arg0: i32) -> (i32, i32) {
    %c0_i32 = arith.constant 0 : i32
    %c0_i32_0 = arith.constant 0 : i32
    return %arg0, %c0_i32 : i32, i32
  }
}

module attributes {stable_mosaic.version = 11 : i64} {
  func.func @_matmul_kernel(%arg0: i32, %arg1: i32, %arg2: i32, %arg3: memref<2x32xf32, #tpu.memory_space<vmem>>, %arg4: memref<32x10xbf16, #tpu.memory_space<vmem>>, %arg5: memref<1x10xf32, #tpu.memory_space<vmem>>, %arg6: memref<2x10xf32, #tpu.memory_space<vmem>>) attributes {dimension_semantics = [#tpu.dimension_semantics<parallel>, #tpu.dimension_semantics<parallel>, #tpu.dimension_semantics<arbitrary>], iteration_bounds = array<i64: 1, 1, 1>, scalar_prefetch = 0 : i64, scratch_operands = 0 : i64, tpu.core_type = #tpu.core_type<tc>, window_params = [{transform_indices = @transform_0, window_bounds = array<i64: 2, 32>}, {transform_indices = @transform_1, window_bounds = array<i64: 32, 10>}, {transform_indices = @transform_2, window_bounds = array<i64: 1, 10>}, {transform_indices = @transform_3, window_bounds = array<i64: 2, 10>}]} {
    %c0_i32 = arith.constant 0 : i32
    %0 = arith.cmpi eq, %arg2, %c0_i32 : i32
    %1 = arith.extui %0 : i1 to i32
    %c0_i32_0 = arith.constant 0 : i32
    %2 = arith.cmpi ne, %1, %c0_i32_0 : i32
    scf.if %2 {
      %c0_8 = arith.constant 0 : index
      %c0_9 = arith.constant 0 : index
      %10 = vector.load %arg5[%c0_8, %c0_9] : memref<1x10xf32, #tpu.memory_space<vmem>>, vector<1x10xf32>
      %11 = vector.shape_cast %10 : vector<1x10xf32> to vector<1x10xf32>
      %12 = vector.broadcast %11 : vector<1x10xf32> to vector<2x10xf32>
      %c0_10 = arith.constant 0 : index
      %c0_11 = arith.constant 0 : index
      %13 = vector.load %arg6[%c0_10, %c0_11] : memref<2x10xf32, #tpu.memory_space<vmem>>, vector<2x10xf32>
      tpu.vector_store %arg6[%c0_10, %c0_11], %12 {strides = array<i32>} : memref<2x10xf32, #tpu.memory_space<vmem>>, vector<2x10xf32>,
    } else {
    }
    %c0 = arith.constant 0 : index
    %c0_1 = arith.constant 0 : index
    %3 = vector.load %arg6[%c0, %c0_1] : memref<2x10xf32, #tpu.memory_space<vmem>>, vector<2x10xf32>
    %c0_2 = arith.constant 0 : index
    %c0_3 = arith.constant 0 : index
    %4 = vector.load %arg3[%c0_2, %c0_3] : memref<2x32xf32, #tpu.memory_space<vmem>>, vector<2x32xf32>
    %5 = arith.truncf %4 : vector<2x32xf32> to vector<2x32xbf16>
    %c0_4 = arith.constant 0 : index
    %c0_5 = arith.constant 0 : index
    %6 = vector.load %arg4[%c0_4, %c0_5] : memref<32x10xbf16, #tpu.memory_space<vmem>>, vector<32x10xbf16>
    %cst = arith.constant dense<0.000000e+00> : vector<2x10xf32>
    %7 = tpu.matmul %5, %6, %cst {dimension_numbers = #tpu.dot_dimension_numbers<[1], [0], [0], [1], [0, 0, 1, 1], [], []>} : vector<2x32xbf16>, vector<32x10xbf16>, vector<2x10xf32> -> vector<2x10xf32>
    %8 = arith.addf %3, %7 : vector<2x10xf32>
    %c0_6 = arith.constant 0 : index
    %c0_7 = arith.constant 0 : index
    %9 = vector.load %arg6[%c0_6, %c0_7] : memref<2x10xf32, #tpu.memory_space<vmem>>, vector<2x10xf32>
    tpu.vector_store %arg6[%c0_6, %c0_7], %8 {strides = array<i32>} : memref<2x10xf32, #tpu.memory_space<vmem>>, vector<2x10xf32>,
    return
  }
  func.func @transform_0(%arg0: i32, %arg1: i32, %arg2: i32) -> (i32, i32) {
    %c0_i32 = arith.constant 0 : i32
    return %arg0, %arg2 : i32, i32
  }
  func.func @transform_1(%arg0: i32, %arg1: i32, %arg2: i32) -> (i32, i32) {
    %c0_i32 = arith.constant 0 : i32
    return %arg2, %arg1 : i32, i32
  }
  func.func @transform_2(%arg0: i32, %arg1: i32, %arg2: i32) -> (i32, i32) {
    %c0_i32 = arith.constant 0 : i32
    %c0_i32_0 = arith.constant 0 : i32
    return %c0_i32, %arg1 : i32, i32
  }
  func.func @transform_3(%arg0: i32, %arg1: i32, %arg2: i32) -> (i32, i32) {
    %c0_i32 = arith.constant 0 : i32
    return %arg0, %arg1 : i32, i32
  }
}

</mosaic_0001>

<bundles_post_ra>
// kernel: horizon_swin_forward.25
= control target key start
LH: loop header
LB: loop body
LE: loop exit
PB: predicated region body
PF: predicated region fallthrough
CT: control target
= control target key end

     0   :  { %vm29_vm0 = vcmask 130048   ;;  %vm198_vm1 = vcmask 388096   ;;  %s317_s0 = inlined_call_operand.vmem [shape: f32[32,16], index: 0, kind: input, shape index: {}]   ;;  %s318_s3 = inlined_call_operand.vmem [shape: bf16[16,48], index: 3, kind: input, shape index: {}]   ;;  %s319_s1 = inlined_call_operand.vmem [shape: f32[1,16], index: 1, kind: input, shape index: {}]   ;;  %s320_s2 = inlined_call_operand.vmem [shape: f32[1,16], index: 2, kind: input, shape index: {}]   ;;  %s321_s4 = inlined_call_operand.vmem [shape: f32[1,48], index: 4, kind: input, shape index: {}]   ;;  %s322_s5 = inlined_call_operand.vmem [shape: bf16[32,48], index: 5, kind: output, shape index: {}]  }
   0x1   :  { %v25_v0 = vld [vmem:[%s317_s0] sm:$0xff]  ;;  %v27_v1 = vld [vmem:[%s317_s0 + $0x10] sm:$0xff]  ;;  %v26_v2 = vld [vmem:[%s317_s0 + $0x8] sm:$0xff] }
   0x2   :  { %v30_v3 = vsel %vm29_vm0, %v25_v0, 0.0  ;;  %v36_v4 = vsel %vm29_vm0, %v27_v1, 0.0  ;;  %v28_v5 = vld [vmem:[%s317_s0 + $0x18] sm:$0xff]  ;;  %v33_v6 = vsel %vm29_vm0, %v26_v2, 0.0  ;;  %v230_v28 = vld [vmem:[%s318_s3] sm:$0xff]  }
   0x3   :  { %31 = vadd.xlane.f32.xlu0 %v30_v3  ;;  %37 = vadd.xlane.f32.xlu1 %v36_v4  ;;  %v39_v7 = vsel %vm29_vm0, %v28_v5, 0.0  ;;  %v207_v43 = vld [vmem:[%s319_s1] ss:$0 sm:$0xff] }
   0x4   :  { %224 = vmatprep.subr.bf16.mxu0 %v230_v28  ;;  %v208_v48 = vld [vmem:[%s320_s2] ss:$0 sm:$0xff] }
   0x5   :  { %225 = vmatpush3.bf16.msra.mxu0 %v230_v28  ;;  %v209_v63 = vld [vmem:[%s321_s4] ss:$0 sm:$0xff] }
   0x7   :  { %34 = vadd.xlane.f32.xlu0 %v33_v6  ;;  %40 = vadd.xlane.f32.xlu1 %v39_v7 }
  0x90   :  { %v32_v8 = vpop.xlane.xlu0 %31  ;;  %v38_v9 = vpop.xlane.xlu1 %37 }
  0x91   :  { %v43_v10 = vmul.f32 0.0625, %v32_v8  ;;  %v45_v11 = vmul.f32 0.0625, %v38_v9 }
  0x93   :  { %v47_v12 = vsub.f32 %v25_v0, %v43_v10  ;;  %v49_v13 = vsub.f32 %v27_v1, %v45_v11 }
  0x94   :  { %v35_v14 = vpop.xlane.xlu0 %34  ;;  %v41_v15 = vpop.xlane.xlu1 %40 }
  0x95   :  { %v44_v16 = vmul.f32 0.0625, %v35_v14  ;;  %v46_v17 = vmul.f32 0.0625, %v41_v15  ;;  %v51_v18 = vmul.f32 %v47_v12, %v47_v12  ;;  %v53_v19 = vmul.f32 %v49_v13, %v49_v13 }
  0x97   :  { %v48_v20 = vsub.f32 %v26_v2, %v44_v16  ;;  %v50_v21 = vsub.f32 %v28_v5, %v46_v17  ;;  %v55_v22 = vsel %vm29_vm0, %v51_v18, 0.0  ;;  %v61_v23 = vsel %vm29_vm0, %v53_v19, 0.0 }
  0x98   :  { %56 = vadd.xlane.f32.xlu0 %v55_v22 }
  0x99   :  { %v52_v24 = vmul.f32 %v48_v20, %v48_v20  ;;  %v54_v25 = vmul.f32 %v50_v21, %v50_v21 }
  0x9b   :  { %v58_v26 = vsel %vm29_vm0, %v52_v24, 0.0  ;;  %v64_v27 = vsel %vm29_vm0, %v54_v25, 0.0 }
  0x9c   :  { %62 = vadd.xlane.f32.xlu0 %v61_v23  ;;  %59 = vadd.xlane.f32.xlu1 %v58_v26 }
  0xa0   :  { %65 = vadd.xlane.f32.xlu1 %v64_v27 }
 0x125   :  { %v57_v29 = vpop.xlane.xlu0 %56 }
 0x126   :  { %v67_v30 = vmul.f32 0.0625, %v57_v29 }
 0x128   :  { %v71_v31 = vadd.f32 1e-05, %v67_v30 }
 0x129   :  { %v60_v32 = vpop.xlane.xlu1 %59  ;;  %v63_v33 = vpop.xlane.xlu0 %62 }
 0x12a   :  { %231 = vrsqrt.f32 %v71_v31  ;;  %v68_v34 = vmul.f32 0.0625, %v60_v32  ;;  %v69_v35 = vmul.f32 0.0625, %v63_v33 }
 0x12c   :  { %v72_v36 = vadd.f32 1e-05, %v68_v34  ;;  %v73_v37 = vadd.f32 1e-05, %v69_v35 }
 0x12d   :  { %v66_v38 = vpop.xlane.xlu1 %65 }
 0x12e   :  { %233 = vrsqrt.f32 %v72_v36  ;;  %v70_v39 = vmul.f32 0.0625, %v66_v38 }
 0x12f   :  { %235 = vrsqrt.f32 %v73_v37 }
 0x130   :  { %v74_v40 = vadd.f32 1e-05, %v70_v39 }
 0x132   :  { %237 = vrsqrt.f32 %v74_v40 }
 0x134   :  { %v232_v41 = vpop.eup %231 }
 0x135   :  { %v79_v42 = vmul.f32 %v232_v41, %v47_v12 }
 0x137   :  { %v90_v46 = vmul.f32 %v207_v43, %v79_v42 }
 0x138   :  { %v234_v44 = vpop.eup %233 }
 0x139   :  { %v236_v45 = vpop.eup %235  ;;  %v80_v47 = vmul.f32 %v234_v44, %v48_v20  ;;  %v101_v52 = vadd.f32 %v208_v48, %v90_v46 }
 0x13a   :  { %v81_v49 = vmul.f32 %v236_v45, %v49_v13 }
 0x13b   :  { %v91_v50 = vmul.f32 %v207_v43, %v80_v47 }
 0x13c   :  { %v238_v51 = vpop.eup %237  ;;  %v92_v54 = vmul.f32 %v207_v43, %v81_v49 }
 0x13d   :  { %v102_v53 = vadd.f32 %v208_v48, %v91_v50  ;;  %v82_v55 = vmul.f32 %v238_v51, %v50_v21 }
 0x13e   :  { %v103_v58 = vadd.f32 %v208_v48, %v92_v54 }
 0x13f   :  { %v105_v56 = vpack.c.bf16 %v102_v53, %v101_v52  ;;  %v93_v57 = vmul.f32 %v207_v43, %v82_v55 }
 0x141   :  { %107 = vst.msk [vmem:[#allocation2] sm:$0xff] %vm29_vm0, %v105_v56  ;;  %v104_v59 = vadd.f32 %v208_v48, %v93_v57 }
 0x143   :  { %v106_v60 = vpack.c.bf16 %v104_v59, %v103_v58 }
 0x145   :  { %108 = vst.msk [vmem:[#allocation2 + $0x8] sm:$0xff] %vm29_vm0, %v106_v60 }
 0x148   :  { %v109_v61 = vld [vmem:[#allocation2] sm:$0xff] }
 0x149   :  { %226 = vmatprep.mubr.msk.bf16.mxu0 %vm29_vm0, %v109_v61 }
 0x14c   :  { %v110_v62 = vld [vmem:[#allocation2 + $0x8] sm:$0xff] }
 0x14d   :  { %227 = vmatmul.mubr.msk.bf16.vlgmr.msra.gmra.mrb[0].mxu0 %vm29_vm0, %v110_v62 }
 0x220   :  { %v228_v0 = vpop.f32.mrb[0].mxu0 }
 0x221   :  { %v176_v1 = vadd.f32 %v228_v0, %v209_v63  ;;  %v167_v2 = vpop.f32.mrb[1].mxu0 }
 0x222   :  { %v168_v3 = vadd.f32 %v209_v63, %v167_v2  ;;  %v229_v4 = vpop.f32.mrb[2].mxu0 }
 0x223   :  { %v219_v5 = vpack.c.bf16 %v176_v1, %v176_v1  ;;  %v179_v6 = vadd.f32 %v229_v4, %v209_v63  ;;  %v170_v7 = vpop.f32.mrb[3].mxu0 }
 0x224   :  { %v217_v8 = vpack.c.bf16 %v168_v3, %v168_v3  ;;  %v171_v9 = vadd.f32 %v209_v63, %v170_v7 }
 0x225   :  { %201 = vst.msk [vmem:[%s322_s5 + $0x8] sm:$0xf] %vm198_vm1, %v219_v5  ;;  %v220_v10 = vpack.c.bf16 %v179_v6, %v179_v6 }
 0x226   :  { %199 = vst.msk [vmem:[%s322_s5] sm:$0xf] %vm198_vm1, %v217_v8  ;;  %v218_v11 = vpack.c.bf16 %v171_v9, %v171_v9 }
 0x227   :  { %202 = vst.msk [vmem:[%s322_s5 + $0xc] sm:$0xf] %vm198_vm1, %v220_v10 }
 0x228   :  { %200 = vst.msk [vmem:[%s322_s5 + $0x4] sm:$0xf] %vm198_vm1, %v218_v11 }

// kernel: horizon_swin_forward.24
= control target key start
LH: loop header
LB: loop body
LE: loop exit
PB: predicated region body
PF: predicated region fallthrough
CT: control target
= control target key end

     0   :  { %vm58_vm0 = vcmask 392192   ;;  %vm114_vm1 = vcmask 130048   ;;  %s316_s1 = inlined_call_operand.vmem [shape: bf16[48,16], index: 1, kind: input, shape index: {}]   ;;  %s317_s0 = inlined_call_operand.vmem [shape: f32[32,48], index: 0, kind: input, shape index: {}]   ;;  %s318_s2 = inlined_call_operand.vmem [shape: f32[1,16], index: 2, kind: input, shape index: {}, may-alias: {2,4}]   ;;  %s319_s3 = inlined_call_operand.vmem [shape: f32[1,16], index: 3, kind: input, shape index: {}]   ;;  %s320_s4 = inlined_call_operand.vmem [shape: f32[1,16], index: 4, kind: input, shape index: {}, may-alias: {2,4}]   ;;  %s321_s5 = inlined_call_operand.vmem [shape: f32[32,16], index: 5, kind: output, shape index: {}]  }
   0x1   :  { %v221_v0 = vld [vmem:[%s316_s1] sm:$0xff]   ;;  %v222_v1 = vld [vmem:[%s316_s1 + $0x8] sm:$0xff]   ;;  %v223_v4 = vld [vmem:[%s316_s1 + $0x10] sm:$0xff]  }
   0x2   :  { %211 = vmatprep.subr.bf16.mxu0 %v221_v0  ;;  %v21_v2 = vld [vmem:[%s317_s0] sm:$0xff]  ;;  %v22_v3 = vld [vmem:[%s317_s0 + $0x8] sm:$0xff]  ;;  %v23_v6 = vld [vmem:[%s317_s0 + $0x10] sm:$0xff] }
   0x3   :  { %212 = vmatpush3.bf16.msra.mxu0 %v221_v0  ;;  %v25_v5 = vpack.c.bf16 %v22_v3, %v21_v2  ;;  %v24_v7 = vld [vmem:[%s317_s0 + $0x18] sm:$0xff]  ;;  %v198_v9 = vld [vmem:[%s318_s2] ss:$0 sm:$0xff] }
   0x4   :  { %213 = vmatprep.subr.bf16.mxu0 %v222_v1  ;;  %v26_v8 = vpack.c.bf16 %v24_v7, %v23_v6  ;;  %v204_v55 = vld [vmem:[%s319_s3] ss:$0 sm:$0xff] }
   0x5   :  { %217 = vmatprep.mubr.msk.bf16.mxu0 %vm58_vm0, %v25_v5  ;;  %v205_v57 = vld [vmem:[%s320_s4] ss:$0 sm:$0xff] }
   0x7   :  { %214 = vmatpush3.bf16.msra.mxu0 %v222_v1 }
   0x8   :  { %215 = vmatprep.subr.bf16.mxu0 %v223_v4 }
   0xb   :  { %216 = vmatpush3.bf16.msra.mxu0 %v223_v4 }
   0xe   :  { %218 = vmatmul.mubr.msk.bf16.vlgmr.msra.gmra.mrb[0].mxu0 %vm58_vm0, %v26_v8 }
  0xe1   :  { %v219_v10 = vpop.f32.mrb[0].mxu0 }
  0xe2   :  { %v108_v11 = vadd.f32 %v219_v10, %v198_v9  ;;  %v99_v12 = vpop.f32.mrb[1].mxu0 }
  0xe3   :  { %v100_v13 = vadd.f32 %v198_v9, %v99_v12  ;;  %v220_v14 = vpop.f32.mrb[2].mxu0 }
  0xe4   :  { %v111_v15 = vadd.f32 %v220_v14, %v198_v9  ;;  %v102_v16 = vpop.f32.mrb[3].mxu0  ;;  %v121_v17 = vsel %vm114_vm1, %v108_v11, 0.0 }
  0xe5   :  { %v103_v18 = vadd.f32 %v198_v9, %v102_v16  ;;  %122 = vadd.xlane.f32.xlu1 %v121_v17  ;;  %v115_v19 = vsel %vm114_vm1, %v100_v13, 0.0 }
  0xe6   :  { %116 = vadd.xlane.f32.xlu0 %v115_v19  ;;  %v124_v20 = vsel %vm114_vm1, %v111_v15, 0.0 }
  0xe7   :  { %v118_v21 = vsel %vm114_vm1, %v103_v18, 0.0 }
  0xe9   :  { %125 = vadd.xlane.f32.xlu1 %v124_v20 }
  0xea   :  { %119 = vadd.xlane.f32.xlu0 %v118_v21 }
 0x172   :  { %v123_v22 = vpop.xlane.xlu1 %122 }
 0x173   :  { %v130_v23 = vmul.f32 0.0625, %v123_v22  ;;  %v117_v24 = vpop.xlane.xlu0 %116 }
 0x174   :  { %v128_v25 = vmul.f32 0.0625, %v117_v24 }
 0x175   :  { %v134_v26 = vsub.f32 %v108_v11, %v130_v23 }
 0x176   :  { %v132_v27 = vsub.f32 %v100_v13, %v128_v25  ;;  %v126_v28 = vpop.xlane.xlu1 %125 }
 0x177   :  { %v131_v29 = vmul.f32 0.0625, %v126_v28  ;;  %v120_v30 = vpop.xlane.xlu0 %119  ;;  %v138_v36 = vmul.f32 %v134_v26, %v134_v26 }
 0x178   :  { %v129_v31 = vmul.f32 0.0625, %v120_v30  ;;  %v136_v32 = vmul.f32 %v132_v27, %v132_v27 }
 0x179   :  { %v135_v33 = vsub.f32 %v111_v15, %v131_v29  ;;  %v146_v38 = vsel %vm114_vm1, %v138_v36, 0.0 }
 0x17a   :  { %v133_v34 = vsub.f32 %v103_v18, %v129_v31  ;;  %v140_v35 = vsel %vm114_vm1, %v136_v32, 0.0 }
 0x17b   :  { %141 = vadd.xlane.f32.xlu0 %v140_v35  ;;  %v139_v40 = vmul.f32 %v135_v33, %v135_v33 }
 0x17c   :  { %v137_v37 = vmul.f32 %v133_v34, %v133_v34 }
 0x17d   :  { %v149_v41 = vsel %vm114_vm1, %v139_v40, 0.0 }
 0x17e   :  { %v143_v39 = vsel %vm114_vm1, %v137_v37, 0.0 }
 0x17f   :  { %147 = vadd.xlane.f32.xlu0 %v146_v38  ;;  %144 = vadd.xlane.f32.xlu1 %v143_v39 }
 0x183   :  { %150 = vadd.xlane.f32.xlu1 %v149_v41 }
 0x208   :  { %v142_v42 = vpop.xlane.xlu0 %141 }
 0x209   :  { %v152_v43 = vmul.f32 0.0625, %v142_v42 }
 0x20b   :  { %v156_v44 = vadd.f32 1e-05, %v152_v43 }
 0x20c   :  { %v145_v45 = vpop.xlane.xlu1 %144  ;;  %v148_v46 = vpop.xlane.xlu0 %147 }
 0x20d   :  { %224 = vrsqrt.f32 %v156_v44  ;;  %v153_v47 = vmul.f32 0.0625, %v145_v45  ;;  %v154_v48 = vmul.f32 0.0625, %v148_v46 }
 0x20f   :  { %v157_v49 = vadd.f32 1e-05, %v153_v47  ;;  %v158_v50 = vadd.f32 1e-05, %v154_v48 }
 0x210   :  { %v151_v51 = vpop.xlane.xlu1 %150 }
 0x211   :  { %226 = vrsqrt.f32 %v157_v49  ;;  %v155_v52 = vmul.f32 0.0625, %v151_v51 }
 0x212   :  { %228 = vrsqrt.f32 %v158_v50 }
 0x213   :  { %v159_v53 = vadd.f32 1e-05, %v155_v52 }
 0x215   :  { %230 = vrsqrt.f32 %v159_v53 }
 0x217   :  { %v225_v54 = vpop.eup %224 }
 0x218   :  { %v164_v56 = vmul.f32 %v225_v54, %v132_v27 }
 0x21a   :  { %v175_v58 = vmul.f32 %v204_v55, %v164_v56 }
 0x21b   :  { %v227_v59 = vpop.eup %226 }
 0x21c   :  { %v229_v60 = vpop.eup %228  ;;  %v186_v61 = vadd.f32 %v205_v57, %v175_v58  ;;  %v165_v62 = vmul.f32 %v227_v59, %v133_v34 }
 0x21d   :  { %v166_v63 = vmul.f32 %v229_v60, %v134_v26 }
 0x21e   :  { %190 = vst.msk [vmem:[%s321_s5] sm:$0xff] %vm114_vm1, %v186_v61  ;;  %v176_v0 = vmul.f32 %v204_v55, %v165_v62 }
 0x21f   :  { %v231_v1 = vpop.eup %230  ;;  %v177_v2 = vmul.f32 %v204_v55, %v166_v63 }
 0x220   :  { %v187_v3 = vadd.f32 %v205_v57, %v176_v0  ;;  %v167_v4 = vmul.f32 %v231_v1, %v135_v33 }
 0x221   :  { %v188_v5 = vadd.f32 %v205_v57, %v177_v2 }
 0x222   :  { %191 = vst.msk [vmem:[%s321_s5 + $0x8] sm:$0xff] %vm114_vm1, %v187_v3  ;;  %v178_v6 = vmul.f32 %v204_v55, %v167_v4 }
 0x223   :  { %192 = vst.msk [vmem:[%s321_s5 + $0x10] sm:$0xff] %vm114_vm1, %v188_v5 }
 0x224   :  { %v189_v7 = vadd.f32 %v205_v57, %v178_v6 }
 0x226   :  { %193 = vst.msk [vmem:[%s321_s5 + $0x18] sm:$0xff] %vm114_vm1, %v189_v7 }

// kernel: horizon_swin_forward.27
= control target key start
LH: loop header
LB: loop body
LE: loop exit
PB: predicated region body
PF: predicated region fallthrough
CT: control target
= control target key end

     0   :  { %vm37_vm0 = vcmask 130048   ;;  %s249_s1 = inlined_call_operand.vmem [shape: bf16[16,16], index: 1, kind: input, shape index: {}]   ;;  %s250_s0 = inlined_call_operand.vmem [shape: bf16[32,16], index: 0, kind: input, shape index: {}]   ;;  %s251_s2 = inlined_call_operand.vmem [shape: f32[1,16], index: 2, kind: input, shape index: {}]   ;;  %s252_s3 = inlined_call_operand.vmem [shape: f32[32,16], index: 3, kind: input, shape index: {}]   ;;  %s253_s4 = inlined_call_operand.vmem [shape: f32[32,16], index: 4, kind: output, shape index: {}]  }
   0x1   :  { %v151_v0 = vld [vmem:[%s249_s1] sm:$0xff]   ;;  %v153_v2 = vld [vmem:[%s250_s0 + $0x8] sm:$0xff]   ;;  %v31_v4 = vld [vmem:[%s252_s3 + $0x10] sm:$0xff] }
   0x2   :  { %v152_v1 = vld [vmem:[%s250_s0] sm:$0xff]   ;;  %145 = vmatprep.subr.bf16.mxu0 %v151_v0  ;;  %v32_v8 = vld [vmem:[%s252_s3 + $0x18] sm:$0xff]  ;;  %v30_v10 = vld [vmem:[%s252_s3 + $0x8] sm:$0xff] }
   0x3   :  { %146 = vmatpush3.bf16.msra.mxu0 %v151_v0  ;;  %147 = vmatprep.mubr.msk.bf16.mxu0 %vm37_vm0, %v152_v1  ;;  %v136_v3 = vld [vmem:[%s251_s2] ss:$0 sm:$0xff] }
   0x4   :  { %v35_v5 = vadd.f32 %v136_v3, %v31_v4  ;;  %v29_v6 = vld [vmem:[%s252_s3] sm:$0xff]  ;;  %v36_v9 = vadd.f32 %v136_v3, %v32_v8  ;;  %v34_v11 = vadd.f32 %v136_v3, %v30_v10 }
   0x5   :  { %v33_v7 = vadd.f32 %v136_v3, %v29_v6 }
   0x6   :  { %148 = vmatmul.mubr.msk.bf16.vlgmr.msra.gmra.mrb[0].mxu0 %vm37_vm0, %v153_v2  ;;  %40 = vst.msk [vmem:[%s253_s4 + $0x10] sm:$0xff] %vm37_vm0, %v35_v5  ;;  %41 = vst.msk [vmem:[%s253_s4 + $0x18] sm:$0xff] %vm37_vm0, %v36_v9 }
   0x7   :  { %38 = vst.msk [vmem:[%s253_s4] sm:$0xff] %vm37_vm0, %v33_v7  ;;  %39 = vst.msk [vmem:[%s253_s4 + $0x8] sm:$0xff] %vm37_vm0, %v34_v11 }
   0xd   :  { %v44_v12 = vld [vmem:[%s253_s4 + $0x10] sm:$0xff]  ;;  %v45_v15 = vld [vmem:[%s253_s4 + $0x18] sm:$0xff] }
   0xe   :  { %v42_v13 = vld [vmem:[%s253_s4] sm:$0xff]  ;;  %v43_v18 = vld [vmem:[%s253_s4 + $0x8] sm:$0xff] }
  0xd9   :  { %v149_v14 = vpop.f32.mrb[0].mxu0 }
  0xda   :  { %v126_v16 = vadd.f32 %v149_v14, %v44_v12  ;;  %v109_v17 = vpop.f32.mrb[1].mxu0 }
  0xdb   :  { %v124_v19 = vadd.f32 %v109_v17, %v42_v13  ;;  %v150_v20 = vpop.f32.mrb[2].mxu0 }
  0xdc   :  { %130 = vst.msk [vmem:[%s253_s4 + $0x10] sm:$0xff] %vm37_vm0, %v126_v16  ;;  %v127_v21 = vadd.f32 %v150_v20, %v45_v15  ;;  %v112_v22 = vpop.f32.mrb[3].mxu0 }
  0xdd   :  { %128 = vst.msk [vmem:[%s253_s4] sm:$0xff] %vm37_vm0, %v124_v19  ;;  %v125_v23 = vadd.f32 %v112_v22, %v43_v18 }
  0xde   :  { %131 = vst.msk [vmem:[%s253_s4 + $0x18] sm:$0xff] %vm37_vm0, %v127_v21 }
  0xdf   :  { %129 = vst.msk [vmem:[%s253_s4 + $0x8] sm:$0xff] %vm37_vm0, %v125_v23 }

// kernel: horizon_swin_forward.26
= control target key start
LH: loop header
LB: loop body
LE: loop exit
PB: predicated region body
PF: predicated region fallthrough
CT: control target
= control target key end

     0   :  { %s1064_s9 = smov 0   ;;  %s1066_s10 = smov 0   ;;  %s1208_s0 = inlined_call_operand.vmem [shape: bf16[2,4,4,48], index: 0, kind: input, shape index: {}]   ;;  %s1209_s1 = inlined_call_operand.vmem [shape: f32[2,4,4], index: 1, kind: input, shape index: {}]   ;;  %s1210_s2 = inlined_call_operand.vmem [shape: bf16[2,4,4,16], index: 2, kind: output, shape index: {}]  }
   0x1   :  { %s1068_s11 = smov 0   ;;  %s1070_s12 = smov 0  }
   0x2   :  { %s1072_s13 = smov 0  }
   0x3 LB: > { %s21_s14 = sadd.s32 1, %s1029_s11  ;;  %s24_s15 = sadd.s32 1, %s1033_s12  ;;  %s1037_s13 = sphi %s1072_s13, %s12_s13   ;;  %s1033_s12 = sphi %s1070_s12, %s1214_s12   ;;  %s1029_s11 = sphi %s1068_s11, %s1213_s11   ;;  %s1025_s10 = sphi %s1066_s10, %s1212_s10   ;;  %s1021_s9 = sphi %s1064_s9, %s1211_s9  }
   0x4   : > { %p22_p0 = scmp.ge.s32.totalorder %s21_s14, 2  ;;  %p847_p1 = scmp.ge.s32.totalorder %s1037_s13, 1 }
   0x5   : > { %p133_p2 = scmp.lt.s32.totalorder %s1037_s13, 5 }
   0x6   : > { %s1216_s14 = smov (%p22_p0, %s21_s14), 0  ;;  %s1218_s15 = smov (!%p22_p0, %s24_s15), %s1033_s12 }
   0x7   : > { %p134_p3 = pnand %p847_p1, %p133_p2  ;;  %p26_p4 = scmp.ge.s32.totalorder %s1218_s15, 2 }
   0x8   : > { %s848_s16 = sshll.u32 (!%p134_p3), %s1021_s9, 1  ;;  %p164_p5 = scmp.lt.s32.totalorder (!%p134_p3), %s1025_s10, 1  ;;  %v192_v0 = vlaneseq (!%p134_p3)  ;;  %v1039_v1 = vmov (!%p134_p3), 1966171168   ;;  %v1040_v3 = vmov (!%p134_p3), 0.0   ;;  %vm1041_vm0 = vmmov (!%p134_p3), 0  }
   0x9   : > { %s1220_s15 = smov (%p26_p4, %s1218_s15), 0  ;;  %137 = sbr.rel (%p134_p3) target bundleno = 1268 (0x4f4), region = 28 }
   0xa   : > { %p166_p6 = scmp.lt.s32.totalorder (!%p134_p3), %s848_s16, 3  ;;  %v190_v2 = vunpack.c.l.s4 (!%p134_p3), %v1039_v1  ;;  %885 = vmatprep.subr.bf16.mxu0 (!%p134_p3), %v1040_v3  ;;  %891 = vmatprep.subr.bf16.mxu1 (!%p134_p3), %v1040_v3  ;;  %v1096_v5 = vshrl.u32 (!%p134_p3), %v192_v0, 7  ;;  %s1042_s23 = smov (!%p134_p3), 112   ;;  %vm205_vm1 = vcmask (!%p134_p3), 64512   ;;  %v253_v20 = vld [vmem:[%s1209_s1] sm:$0xf] (!%p134_p3) }
   0xb   : > { %887 = vmatprep.mubr.msk.bf16.mxu0 (!%p134_p3), %vm1041_vm0, %v1040_v3  ;;  %893 = vmatprep.mubr.msk.bf16.mxu1 (!%p134_p3), %vm1041_vm0, %v1040_v3  ;;  %s1043_s24 = smov (!%p134_p3), 96   ;;  %s1044_s25 = smov (!%p134_p3), 104   ;;  %vm255_vm2 = vcmask (!%p134_p3), 27648   ;;  %vm272_vm3 = vcmask (!%p134_p3), 1041408   ;;  %vm268_vm4 = vcmask (!%p134_p3), 31744   ;;  %vm450_vm5 = vcmask (!%p134_p3), 122880  }
   0xc   : > { %v191_v4 = vunpack.c.0.s8 (!%p134_p3), %v190_v2  ;;  %s1045_s26 = smov (!%p134_p3), 120   ;;  %s1046_s29 = smov (!%p134_p3), 88   ;;  %v857_v49 = vld [vmem:[%s1209_s1 + $0x4] sm:$0xf] (!%p134_p3)  ;;  %v537_v57 = vld [vmem:[%s1209_s1] sm:$0xf] (!%p134_p3) }
   0xd   : > { %v865_v1 = vld [vmem:[%s1209_s1 + $0x4] sm:$0xf] (!%p134_p3)  ;;  %s1047_s8 = smov (!%p134_p3), 8   ;;  %vm750_vm6 = vcmask (!%p134_p3), 123905  }
   0xe   : > { %v194_v6 = vsub.s32 (!%p134_p3), %v191_v4, %v1096_v5 }
  0x10   : > { %s1222_s10 = smov (!%p164_p5, %s1025_s10), 1  ;;  %s1224_s16 = smov (!%p166_p6, %s848_s16), 3 }
  0x11   : > { %s849_s17 = sshll.u32 %s1222_s10, 2 }
  0x12   : > { %s1102_s18 = sadd.s32 %s849_s17, %s1224_s16 }
  0x13   : > { %s850_s19 = sshll.u32 %s1102_s18, 1 }
  0x14   : > { %s171_s22 = scalar_lea.vmem %s1208_s0, %s850_s19  ;;  %s181_s16 = scalar_lea.vmem %s1210_s2, %s850_s19 }
  0x15   : > { %v184_v7 = vld [vmem:[%s171_s22] sm:$0x1]  ;;  %v185_v8 = vld [vmem:[%s171_s22 + $0x2] sm:$0x1] }
  0x16   : > { %v188_v9 = vcombine.low %v184_v7, %v185_v8  ;;  %v859_v14 = vld.sshfl [vmem:[%s171_s22] sm:$0x10 pattern:$0x75316420] }
  0x17   : > { %v860_v15 = vld.sshfl [vmem:[%s171_s22 + $0x2] sm:$0x10 pattern:$0x75316420] }
  0x18   : > { %v195_v10 = vrot.slane %v188_v9, %v194_v6  ;;  %v861_v16 = vcombine.high %v859_v14, %v860_v15 }
  0x1a   : > { %v202_v11 = vrot.slane %v195_v10, %v194_v6  ;;  %v480_v17 = vrot.slane %v861_v16, %v194_v6 }
  0x1c   : > { %203 = vrot.lane.b32.xlu0 %v202_v11, %s1042_s23  ;;  %266 = vrot.lane.b32.xlu1 %v202_v11, %s1043_s24  ;;  %v1117_v18 = vrot.slane %v480_v17, %v194_v6 }
  0x20   : > { %320 = vrot.lane.b32.xlu1 %v202_v11, %s1044_s25 }
  0x24   : > { %318 = vrot.lane.b32.xlu1 %v202_v11, %s1045_s26 }
  0x28   : > { %488 = vrot.lane.b32.xlu1 %v1117_v18, %s1042_s23 }
  0x2c   : > { %601 = vrot.lane.b32.xlu1 %v1117_v18, %s1044_s25 }
  0x30   : > { %599 = vrot.lane.b32.xlu1 %v1117_v18, %s1045_s26 }
  0x8e   : > { %v204_v12 = vpop.permute.xlu0 %203  ;;  %v267_v27 = vpop.permute.xlu1 %266 }
  0x8f   : > { %v210_v13 = vsel %vm205_vm1, %v204_v12, 0  ;;  %v274_v28 = vsel %vm272_vm3, %v267_v27, 0 }
  0x90   : > { %886 = vmatpush3.bf16.xpose.msra.mxu0 %v210_v13  ;;  %892 = vmatpush3.bf16.msra.mxu1 %v274_v28 }
  0x91   : > { %903 = vmatprep.subr.bf16.mxu0 %v1040_v3  ;;  %897 = vmatprep.subr.bf16.mxu1 %v1040_v3 }
  0x92   : > { %v321_v32 = vpop.permute.xlu1 %320 }
  0x93   : > { %v326_v35 = vsel %vm205_vm1, %v321_v32, 0 }
  0x96   : > { %v319_v34 = vpop.permute.xlu1 %318 }
  0x97   : > { %888 = vmatmul.mubr.msk.bf16.vlgmr.msra.gmra.mrb[0].mxu0 %vm205_vm1, %v202_v11 }
  0x98   : > { %905 = vmatprep.mubr.msk.bf16.mxu0 %vm1041_vm0, %v1040_v3 }
  0x9a   : > { %v489_v37 = vpop.permute.xlu1 %488 }
  0x9b   : > { %v494_v38 = vsel %vm205_vm1, %v489_v37, 0 }
  0x9e   : > { %v602_v39 = vpop.permute.xlu1 %601 }
  0x9f   : > { %v607_v40 = vsel %vm205_vm1, %v602_v39, 0 }
  0xa2   : > { %v600_v41 = vpop.permute.xlu1 %599 }
 0x16a   : > { %v246_v19 = vpop.f32.mrb[0].mxu0 }
 0x16b   : > { %v252_v21 = vmul.f32 0.35355338, %v246_v19  ;;  %v889_v22 = vpop.f32.mrb[1].mxu0 }
 0x16c   : > { %v249_v23 = vpop.f32.mrb[2].mxu0 }
 0x16d   : > { %v890_v24 = vpop.f32.mrb[3].mxu0  ;;  %v254_v25 = vadd.f32 %v253_v20, %v252_v21 }
 0x16f   : > { %v256_v26 = vsel %vm255_vm2, %v254_v25, -inf }
 0x170   : > { %257 = vmax.xlane.f32.xlu0 %v256_v26 }
 0x186   : > { %382 = vrot.lane.b32.xlu0 %v202_v11, %s1046_s29 }
 0x1fd   : > { %v258_v29 = vpop.xlane.xlu0 %257 }
 0x1fe   : > { %v259_v30 = vsub.f32 %v254_v25, %v258_v29 }
 0x200   : > { %v260_v31 = vmul.f32 1.442695, %v259_v30 }
 0x201   : > { %v383_v42 = vpop.permute.xlu0 %382 }
 0x202   : > { %983 = vpow2.f32 %v260_v31  ;;  %v388_v43 = vsel %vm272_vm3, %v383_v42, 0 }
 0x203   : > { %904 = vmatpush3.bf16.msra.mxu0 %v388_v43 }
 0x204   : > { %915 = vmatprep.subr.bf16.mxu0 %v1040_v3 }
 0x20c   : > { %v1129_v33 = vpop.eup %983 }
 0x20d   : > { %v265_v36 = vpack.c.bf16 %v1129_v33, %v1129_v33  ;;  %v262_v32 = vsel %vm255_vm2, %v1129_v33, 0.0 }
 0x20f   : > { %894 = vmatmul.mubr.msk.bf16.vlgmr.msra.gmra.mrb[0].mxu1 %vm268_vm4, %v265_v36 }
 0x210   : > { %898 = vmatpush3.bf16.xpose.msra.mxu1 %v326_v35  ;;  %899 = vmatprep.mubr.msk.bf16.mxu1 %vm1041_vm0, %v1040_v3 }
 0x211   : > { %909 = vmatprep.subr.bf16.mxu1 %v1040_v3 }
 0x217   : > { %900 = vmatmul.mubr.msk.bf16.vlgmr.msra.gmra.mrb[4].mxu1 %vm205_vm1, %v319_v34 }
 0x218   : > { %910 = vmatpush3.bf16.xpose.msra.mxu1 %v494_v38  ;;  %911 = vmatprep.mubr.msk.bf16.mxu1 %vm1041_vm0, %v1040_v3 }
 0x219   : > { %921 = vmatprep.subr.bf16.mxu1 %v1040_v3 }
 0x21f   : > { %912 = vmatmul.mubr.msk.bf16.vlgmr.msra.gmra.mrb[8].mxu1 %vm205_vm1, %v1117_v18 }
 0x220   : > { %922 = vmatpush3.bf16.xpose.msra.mxu1 %v607_v40  ;;  %923 = vmatprep.mubr.msk.bf16.mxu1 %vm1041_vm0, %v1040_v3 }
 0x227   : > { %924 = vmatmul.mubr.msk.bf16.vlgmr.msra.gmra.mrb[12].mxu1 %vm205_vm1, %v600_v41 }
 0x2e2   : > { %v1151_v44 = vpop.f32.mrb[0].mxu1 }
 0x2e3   : > { %v895_v45 = vpop.f32.mrb[1].mxu1 }
 0x2e4   : > { %v313_v46 = vpop.f32.mrb[2].mxu1 }
 0x2e5   : > { %v896_v47 = vpop.f32.mrb[3].mxu1 }
 0x2ea   : > { %v362_v48 = vpop.f32.mrb[4].mxu1 }
 0x2eb   : > { %v368_v50 = vmul.f32 0.35355338, %v362_v48  ;;  %v901_v51 = vpop.f32.mrb[5].mxu1 }
 0x2ec   : > { %v365_v52 = vpop.f32.mrb[6].mxu1 }
 0x2ed   : > { %v902_v53 = vpop.f32.mrb[7].mxu1  ;;  %v371_v54 = vadd.f32 %v857_v49, %v368_v50 }
 0x2ee   : > { %v1048_v53 = vmov 1983009808  }
 0x2ef   : > { %v372_v55 = vsel %vm255_vm2, %v371_v54, -inf }
 0x2f0   : > { %373 = vmax.xlane.f32.xlu1 %v372_v55 }
 0x2f2   : > { %v530_v56 = vpop.f32.mrb[8].mxu1 }
 0x2f3   : > { %v536_v58 = vmul.f32 0.35355338, %v530_v56  ;;  %v913_v59 = vpop.f32.mrb[9].mxu1 }
 0x2f4   : > { %v533_v60 = vpop.f32.mrb[10].mxu1 }
 0x2f5   : > { %v914_v61 = vpop.f32.mrb[11].mxu1  ;;  %v538_v62 = vadd.f32 %v537_v57, %v536_v58 }
 0x2f7   : > { %v539_v63 = vsel %vm255_vm2, %v538_v62, -inf }
 0x2f8   : > { %540 = vmax.xlane.f32.xlu0 %v539_v63 }
 0x2fa   : > { %v643_v0 = vpop.f32.mrb[12].mxu1 }
 0x2fb   : > { %v649_v2 = vmul.f32 0.35355338, %v643_v0  ;;  %v925_v4 = vpop.f32.mrb[13].mxu1 }
 0x2fc   : > { %v646_v6 = vpop.f32.mrb[14].mxu1 }
 0x2fd   : > { %v926_v7 = vpop.f32.mrb[15].mxu1  ;;  %v651_v8 = vadd.f32 %v865_v1, %v649_v2 }
 0x2ff   : > { %v652_v9 = vsel %vm255_vm2, %v651_v8, -inf }
 0x300   : > { %653 = vmax.xlane.f32.xlu0 %v652_v9 }
 0x301   : > { %549 = vrot.lane.b32.xlu1 %v1117_v18, %s1043_s24 }
 0x316   : > { %662 = vrot.lane.b32.xlu0 %v1117_v18, %s1046_s29 }
 0x37d   : > { %v374_v10 = vpop.xlane.xlu1 %373 }
 0x37e   : > { %v375_v11 = vsub.f32 %v371_v54, %v374_v10  ;;  %v439_v54 = vunpack.c.l.s4 %v1048_v53 }
 0x380   : > { %v376_v12 = vmul.f32 1.442695, %v375_v11  ;;  %v440_v55 = vunpack.c.0.s8 %v439_v54 }
 0x381   : > { %v550_v16 = vpop.permute.xlu1 %549 }
 0x382   : > { %985 = vpow2.f32 %v376_v12  ;;  %v555_v19 = vsel %vm272_vm3, %v550_v16, 0  ;;  %v443_v57 = vsub.s32 %v440_v55, %v1096_v5 }
 0x385   : > { %v541_v13 = vpop.xlane.xlu0 %540 }
 0x386   : > { %v542_v14 = vsub.f32 %v538_v62, %v541_v13 }
 0x388   : > { %v543_v15 = vmul.f32 1.442695, %v542_v14 }
 0x38a   : > { %987 = vpow2.f32 %v543_v15 }
 0x38c   : > { %v986_v17 = vpop.eup %985 }
 0x38d   : > { %v654_v20 = vpop.xlane.xlu0 %653  ;;  %v378_v21 = vsel %vm255_vm2, %v986_v17, 0.0  ;;  %v381_v22 = vpack.c.bf16 %v986_v17, %v986_v17 }
 0x38e   : > { %v655_v23 = vsub.f32 %v651_v8, %v654_v20  ;;  %379 = vadd.xlane.f32.xlu1 %v378_v21 }
 0x38f   : > { %906 = vmatmul.mubr.msk.bf16.vlgmr.msra.gmra.mrb[4].mxu0 %vm268_vm4, %v381_v22 }
 0x390   : > { %v656_v18 = vmul.f32 1.442695, %v655_v23  ;;  %916 = vmatpush3.bf16.msra.mxu0 %v555_v19  ;;  %917 = vmatprep.mubr.msk.bf16.mxu0 %vm1041_vm0, %v1040_v3 }
 0x391   : > { %927 = vmatprep.subr.bf16.mxu0 %v1040_v3  ;;  %v663_v24 = vpop.permute.xlu0 %662 }
 0x392   : > { %989 = vpow2.f32 %v656_v18  ;;  %v668_v26 = vsel %vm272_vm3, %v663_v24, 0 }
 0x394   : > { %v988_v25 = vpop.eup %987 }
 0x395   : > { %v548_v27 = vpack.c.bf16 %v988_v25, %v988_v25  ;;  %v545_v31 = vsel %vm255_vm2, %v988_v25, 0.0 }
 0x397   : > { %918 = vmatmul.mubr.msk.bf16.vlgmr.msra.gmra.mrb[8].mxu0 %vm268_vm4, %v548_v27 }
 0x398   : > { %928 = vmatpush3.bf16.msra.mxu0 %v668_v26  ;;  %929 = vmatprep.mubr.msk.bf16.mxu0 %vm1041_vm0, %v1040_v3 }
 0x39c   : > { %v990_v28 = vpop.eup %989 }
 0x39d   : > { %v658_v29 = vsel %vm255_vm2, %v990_v28, 0.0  ;;  %v661_v30 = vpack.c.bf16 %v990_v28, %v990_v28 }
 0x39e   : > { %659 = vadd.xlane.f32.xlu0 %v658_v29 }
 0x39f   : > { %930 = vmatmul.mubr.msk.bf16.vlgmr.msra.gmra.mrb[12].mxu0 %vm268_vm4, %v661_v30 }
 0x3a2   : > { %546 = vadd.xlane.f32.xlu0 %v545_v31 }
 0x3a6   : > { %263 = vadd.xlane.f32.xlu0 %v262_v32 }
 0x41b   : > { %v380_v34 = vpop.xlane.xlu1 %379 }
 0x41c   : > { %991 = vrcp.f32 %v380_v34 }
 0x426   : > { %v992_v35 = vpop.eup %991 }
 0x42b   : > { %v660_v39 = vpop.xlane.xlu0 %659 }
 0x42c   : > { %993 = vrcp.f32 %v660_v39 }
 0x42f   : > { %v547_v51 = vpop.xlane.xlu0 %546 }
 0x433   : > { %v264_v52 = vpop.xlane.xlu0 %263 }
 0x434   : > { %995 = vrcp.f32 %v264_v52 }
 0x435   : > { %997 = vrcp.f32 %v547_v51 }
 0x436   : > { %v994_v46 = vpop.eup %993 }
 0x43e   : > { %v996_v56 = vpop.eup %995 }
 0x43f   : > { %v317_v58 = vmul.f32 %v996_v56, %v1151_v44  ;;  %v998_v1 = vpop.eup %997 }
 0x462   : > { %v424_v36 = vpop.f32.mrb[4].mxu0 }
 0x463   : > { %v431_v37 = vmul.f32 %v992_v35, %v424_v36  ;;  %v907_v3 = vpop.f32.mrb[5].mxu0 }
 0x464   : > { %v427_v38 = vpop.f32.mrb[6].mxu0 }
 0x465   : > { %433 = vrot.lane.b32.xlu1 %v431_v37, %s1047_s8  ;;  %v908_v40 = vpop.f32.mrb[7].mxu0 }
 0x46a   : > { %v591_v41 = vpop.f32.mrb[8].mxu0 }
 0x46b   : > { %v919_v42 = vpop.f32.mrb[9].mxu0  ;;  %v598_v5 = vmul.f32 %v998_v1, %v591_v41 }
 0x46c   : > { %v594_v43 = vpop.f32.mrb[10].mxu0 }
 0x46d   : > { %v920_v45 = vpop.f32.mrb[11].mxu0 }
 0x472   : > { %v704_v47 = vpop.f32.mrb[12].mxu0 }
 0x473   : > { %v711_v33 = vmul.f32 %v994_v46, %v704_v47  ;;  %v931_v48 = vpop.f32.mrb[13].mxu0 }
 0x474   : > { %v707_v49 = vpop.f32.mrb[14].mxu0 }
 0x475   : > { %713 = vrot.lane.b32.xlu0 %v711_v33, %s1047_s8  ;;  %v932_v50 = vpop.f32.mrb[15].mxu0 }
 0x4d7   : > { %v434_v59 = vpop.permute.xlu1 %433 }
 0x4d8   : > { %v436_v60 = vsel %vm205_vm1, %v317_v58, %v434_v59 }
 0x4d9   : > { %v444_v61 = vrot.slane %v436_v60, %v443_v57 }
 0x4db   : > { %v445_v62 = vcombine.high %v444_v61, %v444_v61  ;;  %v448_v63 = vpack.c.bf16 %v444_v61, %v444_v61 }
 0x4dd   : > { %v449_v0 = vpack.c.bf16 %v445_v62, %v445_v62  ;;  %451 = vst.msk [vmem:[%s181_s16] sm:$0x1] %vm450_vm5, %v448_v63 }
 0x4df   : > { %452 = vst.msk [vmem:[%s181_s16 + $0x2] sm:$0x1] %vm450_vm5, %v449_v0 }
 0x4e7   : > { %v714_v2 = vpop.permute.xlu0 %713 }
 0x4e8   : > { %v716_v44 = vsel %vm205_vm1, %v598_v5, %v714_v2 }
 0x4e9   : > { %v724_v4 = vrot.slane %v716_v44, %v443_v57 }
 0x4eb   : > { %v725_v6 = vcombine.high %v724_v4, %v724_v4  ;;  %v728_v7 = vpack.c.bf16 %v724_v4, %v724_v4 }
 0x4ed   : > { %v729_v8 = vpack.c.bf16 %v725_v6, %v725_v6  ;;  %v738_v9 = vrot.slane %v728_v7, %v443_v57 }
 0x4ef   : > { %v745_v10 = vrot.slane %v729_v8, %v443_v57  ;;  %v746_v11 = vrot.slane %v738_v9, 7 }
 0x4f1   : > { %v747_v12 = vrot.slane %v745_v10, 7  ;;  %751 = vst.msk [vmem:[%s181_s16] sm:$0x2] %vm750_vm6, %v746_v11 }
 0x4f3   : > { %752 = vst.msk [vmem:[%s181_s16 + $0x2] sm:$0x2] %vm750_vm6, %v747_v12 }
 0x4f4 PF: > { %s12_s13 = sadd.s32 1, %s1037_s13   ;;  %s1211_s9 = smov %s1029_s11 }
 0x4f5   : > { %p9_p7 = scmp.ge.s32.totalorder %s12_s13, 6   ;;  %s1212_s10 = smov %s1033_s12 }
 0x4f6   : > { %s1213_s11 = smov %s1216_s14  ;;  %s1214_s12 = smov %s1220_s15 }
 0x4f7   :  { %11 = sbr.rel (!%p9_p7) target bundleno = 3 (0x3), region = 59 }

// kernel: horizon_swin_forward.29
= control target key start
LH: loop header
LB: loop body
LE: loop exit
PB: predicated region body
PF: predicated region fallthrough
CT: control target
= control target key end

     0   :  { %vm92_vm0 = vcmask 523264   ;;  %vm37_vm1 = vcmask 130048   ;;  %s298_s1 = inlined_call_operand.vmem [shape: bf16[64,16], index: 1, kind: input, shape index: {}]   ;;  %s299_s0 = inlined_call_operand.vmem [shape: bf16[32,64], index: 0, kind: input, shape index: {}]   ;;  %s300_s2 = inlined_call_operand.vmem [shape: f32[1,16], index: 2, kind: input, shape index: {}]   ;;  %s301_s3 = inlined_call_operand.vmem [shape: f32[32,16], index: 3, kind: input, shape index: {}]   ;;  %s302_s4 = inlined_call_operand.vmem [shape: f32[32,16], index: 4, kind: output, shape index: {}]  }
   0x1   :  { %v188_v0 = vld [vmem:[%s298_s1] sm:$0xff]   ;;  %v189_v1 = vld [vmem:[%s298_s1 + $0x8] sm:$0xff]   ;;  %v190_v2 = vld [vmem:[%s298_s1 + $0x10] sm:$0xff]  }
   0x2   :  { %176 = vmatprep.subr.bf16.mxu0 %v188_v0  ;;  %v192_v3 = vld [vmem:[%s299_s0] sm:$0xff]   ;;  %v31_v5 = vld [vmem:[%s301_s3 + $0x10] sm:$0xff]  ;;  %v191_v7 = vld [vmem:[%s298_s1 + $0x18] sm:$0xff]  }
   0x3   :  { %177 = vmatpush3.bf16.msra.mxu0 %v188_v0  ;;  %184 = vmatprep.mubr.msk.bf16.mxu0 %vm92_vm0, %v192_v3  ;;  %v161_v4 = vld [vmem:[%s300_s2] ss:$0 sm:$0xff]  ;;  %v193_v8 = vld [vmem:[%s299_s0 + $0x8] sm:$0xff]   ;;  %v32_v11 = vld [vmem:[%s301_s3 + $0x18] sm:$0xff] }
   0x4   :  { %178 = vmatprep.subr.bf16.mxu0 %v189_v1  ;;  %v35_v6 = vadd.f32 %v161_v4, %v31_v5  ;;  %v29_v9 = vld [vmem:[%s301_s3] sm:$0xff]  ;;  %v36_v12 = vadd.f32 %v161_v4, %v32_v11  ;;  %v30_v13 = vld [vmem:[%s301_s3 + $0x8] sm:$0xff] }
   0x5   :  { %v33_v10 = vadd.f32 %v161_v4, %v29_v9  ;;  %v34_v14 = vadd.f32 %v161_v4, %v30_v13 }
   0x6   :  { %40 = vst.msk [vmem:[%s302_s4 + $0x10] sm:$0xff] %vm37_vm1, %v35_v6  ;;  %41 = vst.msk [vmem:[%s302_s4 + $0x18] sm:$0xff] %vm37_vm1, %v36_v12 }
   0x7   :  { %179 = vmatpush3.bf16.msra.mxu0 %v189_v1  ;;  %38 = vst.msk [vmem:[%s302_s4] sm:$0xff] %vm37_vm1, %v33_v10  ;;  %39 = vst.msk [vmem:[%s302_s4 + $0x8] sm:$0xff] %vm37_vm1, %v34_v14 }
   0x8   :  { %180 = vmatprep.subr.bf16.mxu0 %v190_v2 }
   0xb   :  { %181 = vmatpush3.bf16.msra.mxu0 %v190_v2 }
   0xc   :  { %182 = vmatprep.subr.bf16.mxu0 %v191_v7 }
   0xd   :  { %v44_v15 = vld [vmem:[%s302_s4 + $0x10] sm:$0xff]  ;;  %v45_v18 = vld [vmem:[%s302_s4 + $0x18] sm:$0xff] }
   0xe   :  { %v42_v16 = vld [vmem:[%s302_s4] sm:$0xff]  ;;  %v43_v21 = vld [vmem:[%s302_s4 + $0x8] sm:$0xff] }
   0xf   :  { %183 = vmatpush3.bf16.msra.mxu0 %v191_v7 }
  0x12   :  { %185 = vmatmul.mubr.msk.bf16.vlgmr.msra.gmra.mrb[0].mxu0 %vm92_vm0, %v193_v8 }
  0xe5   :  { %v186_v17 = vpop.f32.mrb[0].mxu0 }
  0xe6   :  { %v150_v19 = vadd.f32 %v186_v17, %v44_v15  ;;  %v133_v20 = vpop.f32.mrb[1].mxu0 }
  0xe7   :  { %v148_v22 = vadd.f32 %v133_v20, %v42_v16  ;;  %v187_v23 = vpop.f32.mrb[2].mxu0 }
  0xe8   :  { %155 = vst.msk [vmem:[%s302_s4 + $0x10] sm:$0xff] %vm37_vm1, %v150_v19  ;;  %v151_v24 = vadd.f32 %v187_v23, %v45_v18  ;;  %v136_v25 = vpop.f32.mrb[3].mxu0 }
  0xe9   :  { %153 = vst.msk [vmem:[%s302_s4] sm:$0xff] %vm37_vm1, %v148_v22  ;;  %v149_v26 = vadd.f32 %v136_v25, %v43_v21 }
  0xea   :  { %156 = vst.msk [vmem:[%s302_s4 + $0x18] sm:$0xff] %vm37_vm1, %v151_v24 }
  0xeb   :  { %154 = vst.msk [vmem:[%s302_s4 + $0x8] sm:$0xff] %vm37_vm1, %v149_v26 }

// kernel: horizon_swin_forward.28
= control target key start
LH: loop header
LB: loop body
LE: loop exit
PB: predicated region body
PF: predicated region fallthrough
CT: control target
= control target key end

     0   :  { %vm29_vm0 = vcmask 130048   ;;  %vm302_vm5 = vcmask 519168   ;;  %s475_s0 = inlined_call_operand.vmem [shape: f32[32,16], index: 0, kind: input, shape index: {}]   ;;  %s476_s3 = inlined_call_operand.vmem [shape: bf16[16,64], index: 3, kind: input, shape index: {}]   ;;  %s477_s1 = inlined_call_operand.vmem [shape: f32[1,16], index: 1, kind: input, shape index: {}]   ;;  %s478_s2 = inlined_call_operand.vmem [shape: f32[1,16], index: 2, kind: input, shape index: {}]   ;;  %s479_s4 = inlined_call_operand.vmem [shape: f32[1,64], index: 4, kind: input, shape index: {}]   ;;  %s480_s5 = inlined_call_operand.vmem [shape: bf16[32,64], index: 5, kind: output, shape index: {}]  }
   0x1   :  { %v25_v0 = vld [vmem:[%s475_s0] sm:$0xff]  ;;  %v27_v1 = vld [vmem:[%s475_s0 + $0x10] sm:$0xff]  ;;  %v26_v2 = vld [vmem:[%s475_s0 + $0x8] sm:$0xff] }
   0x2   :  { %v30_v3 = vsel %vm29_vm0, %v25_v0, 0.0  ;;  %v36_v4 = vsel %vm29_vm0, %v27_v1, 0.0  ;;  %v28_v5 = vld [vmem:[%s475_s0 + $0x18] sm:$0xff]  ;;  %v33_v6 = vsel %vm29_vm0, %v26_v2, 0.0  ;;  %v335_v28 = vld [vmem:[%s476_s3] sm:$0xff]  }
   0x3   :  { %31 = vadd.xlane.f32.xlu0 %v30_v3  ;;  %37 = vadd.xlane.f32.xlu1 %v36_v4  ;;  %v39_v7 = vsel %vm29_vm0, %v28_v5, 0.0  ;;  %v311_v43 = vld [vmem:[%s477_s1] ss:$0 sm:$0xff] }
   0x4   :  { %328 = vmatprep.subr.bf16.mxu0 %v335_v28  ;;  %v312_v48 = vld [vmem:[%s478_s2] ss:$0 sm:$0xff] }
   0x5   :  { %329 = vmatpush3.bf16.msra.mxu0 %v335_v28  ;;  %v313_v63 = vld [vmem:[%s479_s4] ss:$0 sm:$0xff] }
   0x7   :  { %34 = vadd.xlane.f32.xlu0 %v33_v6  ;;  %40 = vadd.xlane.f32.xlu1 %v39_v7 }
  0x90   :  { %v32_v8 = vpop.xlane.xlu0 %31  ;;  %v38_v9 = vpop.xlane.xlu1 %37 }
  0x91   :  { %v43_v10 = vmul.f32 0.0625, %v32_v8  ;;  %v45_v11 = vmul.f32 0.0625, %v38_v9 }
  0x93   :  { %v47_v12 = vsub.f32 %v25_v0, %v43_v10  ;;  %v49_v13 = vsub.f32 %v27_v1, %v45_v11 }
  0x94   :  { %v35_v14 = vpop.xlane.xlu0 %34  ;;  %v41_v15 = vpop.xlane.xlu1 %40 }
  0x95   :  { %v44_v16 = vmul.f32 0.0625, %v35_v14  ;;  %v46_v17 = vmul.f32 0.0625, %v41_v15  ;;  %v51_v18 = vmul.f32 %v47_v12, %v47_v12  ;;  %v53_v19 = vmul.f32 %v49_v13, %v49_v13 }
  0x97   :  { %v48_v20 = vsub.f32 %v26_v2, %v44_v16  ;;  %v50_v21 = vsub.f32 %v28_v5, %v46_v17  ;;  %v55_v22 = vsel %vm29_vm0, %v51_v18, 0.0  ;;  %v61_v23 = vsel %vm29_vm0, %v53_v19, 0.0 }
  0x98   :  { %56 = vadd.xlane.f32.xlu0 %v55_v22 }
  0x99   :  { %v52_v24 = vmul.f32 %v48_v20, %v48_v20  ;;  %v54_v25 = vmul.f32 %v50_v21, %v50_v21 }
  0x9b   :  { %v58_v26 = vsel %vm29_vm0, %v52_v24, 0.0  ;;  %v64_v27 = vsel %vm29_vm0, %v54_v25, 0.0 }
  0x9c   :  { %62 = vadd.xlane.f32.xlu0 %v61_v23  ;;  %59 = vadd.xlane.f32.xlu1 %v58_v26 }
  0xa0   :  { %65 = vadd.xlane.f32.xlu1 %v64_v27 }
 0x125   :  { %v57_v29 = vpop.xlane.xlu0 %56 }
 0x126   :  { %v67_v30 = vmul.f32 0.0625, %v57_v29 }
 0x128   :  { %v71_v31 = vadd.f32 1e-05, %v67_v30 }
 0x129   :  { %v60_v32 = vpop.xlane.xlu1 %59  ;;  %v63_v33 = vpop.xlane.xlu0 %62 }
 0x12a   :  { %336 = vrsqrt.f32 %v71_v31  ;;  %v68_v34 = vmul.f32 0.0625, %v60_v32  ;;  %v69_v35 = vmul.f32 0.0625, %v63_v33 }
 0x12c   :  { %v72_v36 = vadd.f32 1e-05, %v68_v34  ;;  %v73_v37 = vadd.f32 1e-05, %v69_v35 }
 0x12d   :  { %v66_v38 = vpop.xlane.xlu1 %65 }
 0x12e   :  { %338 = vrsqrt.f32 %v72_v36  ;;  %v70_v39 = vmul.f32 0.0625, %v66_v38 }
 0x12f   :  { %340 = vrsqrt.f32 %v73_v37 }
 0x130   :  { %v74_v40 = vadd.f32 1e-05, %v70_v39 }
 0x132   :  { %342 = vrsqrt.f32 %v74_v40 }
 0x134   :  { %v337_v41 = vpop.eup %336 }
 0x135   :  { %v79_v42 = vmul.f32 %v337_v41, %v47_v12 }
 0x137   :  { %v90_v46 = vmul.f32 %v311_v43, %v79_v42 }
 0x138   :  { %v339_v44 = vpop.eup %338 }
 0x139   :  { %v341_v45 = vpop.eup %340  ;;  %v80_v47 = vmul.f32 %v339_v44, %v48_v20  ;;  %v101_v52 = vadd.f32 %v312_v48, %v90_v46 }
 0x13a   :  { %v81_v49 = vmul.f32 %v341_v45, %v49_v13 }
 0x13b   :  { %v91_v50 = vmul.f32 %v311_v43, %v80_v47 }
 0x13c   :  { %v343_v51 = vpop.eup %342  ;;  %v92_v54 = vmul.f32 %v311_v43, %v81_v49 }
 0x13d   :  { %v102_v53 = vadd.f32 %v312_v48, %v91_v50  ;;  %v82_v55 = vmul.f32 %v343_v51, %v50_v21 }
 0x13e   :  { %v103_v58 = vadd.f32 %v312_v48, %v92_v54 }
 0x13f   :  { %v105_v56 = vpack.c.bf16 %v102_v53, %v101_v52  ;;  %v93_v57 = vmul.f32 %v311_v43, %v82_v55 }
 0x141   :  { %107 = vst.msk [vmem:[#allocation2] sm:$0xff] %vm29_vm0, %v105_v56  ;;  %v104_v59 = vadd.f32 %v312_v48, %v93_v57 }
 0x143   :  { %v106_v60 = vpack.c.bf16 %v104_v59, %v103_v58 }
 0x145   :  { %108 = vst.msk [vmem:[#allocation2 + $0x8] sm:$0xff] %vm29_vm0, %v106_v60 }
 0x148   :  { %v109_v61 = vld [vmem:[#allocation2] sm:$0xff] }
 0x149   :  { %330 = vmatprep.mubr.msk.bf16.mxu0 %vm29_vm0, %v109_v61 }
 0x14c   :  { %v110_v62 = vld [vmem:[#allocation2 + $0x8] sm:$0xff] }
 0x14d   :  { %331 = vmatmul.mubr.msk.bf16.vlgmr.msra.gmra.mrb[0].mxu0 %vm29_vm0, %v110_v62 }
 0x220   :  { %v332_v0 = vpop.f32.mrb[0].mxu0 }
 0x221   :  { %v427_v1 = vadd.f32 %v332_v0, %v313_v63  ;;  %v167_v2 = vpop.f32.mrb[1].mxu0 }
 0x222   :  { %v429_v3 = vadd.f32 %v313_v63, %v167_v2  ;;  %v333_v4 = vpop.f32.mrb[2].mxu0 }
 0x223   :  { %v432_v5 = vmul.f32 0.70710677, %v427_v1  ;;  %v434_v6 = vadd.f32 %v333_v4, %v313_v63  ;;  %v170_v7 = vpop.f32.mrb[3].mxu0 }
 0x224   :  { %v437_v8 = vmul.f32 0.70710677, %v429_v3  ;;  %v439_v9 = vadd.f32 %v313_v63, %v170_v7 }
 0x225   :  { %v196_v10 = vand.u32 2147483647, %v432_v5  ;;  %v443_v11 = vmul.f32 0.70710677, %v434_v6  ;;  %vm188_vm1 = vcmp.ge.f32.partialorder %v432_v5, 0.0 }
 0x226   :  { %v194_v12 = vand.u32 2147483647, %v437_v8  ;;  %v447_v13 = vmul.f32 0.70710677, %v439_v9  ;;  %vm186_vm2 = vcmp.ge.f32.partialorder %v437_v8, 0.0 }
 0x227   :  { %v200_v14 = vmul.f32 0.3275911, %v196_v10  ;;  %v197_v16 = vand.u32 2147483647, %v443_v11  ;;  %v248_v24 = vsub.f32 0.0, %v196_v10  ;;  %vm189_vm3 = vcmp.ge.f32.partialorder %v443_v11, 0.0 }
 0x228   :  { %v198_v15 = vmul.f32 0.3275911, %v194_v12  ;;  %v195_v18 = vand.u32 2147483647, %v447_v13  ;;  %v246_v25 = vsub.f32 0.0, %v194_v12  ;;  %vm187_vm4 = vcmp.ge.f32.partialorder %v447_v13, 0.0 }
 0x229   :  { %v204_v17 = vadd.f32 1.0, %v200_v14  ;;  %v201_v20 = vmul.f32 0.3275911, %v197_v16  ;;  %v252_v27 = vmul.f32 %v248_v24, %v196_v10  ;;  %v249_v28 = vsub.f32 0.0, %v197_v16 }
 0x22a   :  { %v202_v19 = vadd.f32 1.0, %v198_v15  ;;  %v199_v21 = vmul.f32 0.3275911, %v195_v18  ;;  %v250_v31 = vmul.f32 %v246_v25, %v194_v12  ;;  %v247_v33 = vsub.f32 0.0, %v195_v18 }
 0x22b   :  { %344 = vrcp.f32 %v204_v17  ;;  %v205_v22 = vadd.f32 1.0, %v201_v20  ;;  %v258_v36 = vmul.f32 1.442695, %v252_v27  ;;  %v253_v38 = vmul.f32 %v249_v28, %v197_v16 }
 0x22c   :  { %346 = vrcp.f32 %v202_v19  ;;  %v203_v23 = vadd.f32 1.0, %v199_v21  ;;  %v254_v40 = vmul.f32 1.442695, %v250_v31  ;;  %v251_v44 = vmul.f32 %v247_v33, %v195_v18 }
 0x22d   :  { %348 = vrcp.f32 %v205_v22  ;;  %v260_v49 = vmul.f32 1.442695, %v253_v38  ;;  %v360_v25 = vmov -1.0   ;;  %v275_v13 = vmul.f32 0.5, %v439_v9 }
 0x22e   :  { %350 = vrcp.f32 %v203_v23  ;;  %v256_v54 = vmul.f32 1.442695, %v251_v44  ;;  %v192_v27 = vsel %vm188_vm1, 1.0, %v360_v25  ;;  %v193_v38 = vsel %vm189_vm3, 1.0, %v360_v25 }
 0x22f   :  { %352 = vpow2.f32 %v258_v36  ;;  %v274_v36 = vmul.f32 0.5, %v429_v3  ;;  %v277_v44 = vmul.f32 0.5, %v434_v6 }
 0x230   :  { %354 = vpow2.f32 %v254_v40 }
 0x231   :  { %356 = vpow2.f32 %v260_v49 }
 0x232   :  { %358 = vpow2.f32 %v256_v54 }
 0x235   :  { %v345_v26 = vpop.eup %344 }
 0x236   :  { %v347_v29 = vpop.eup %346  ;;  %v212_v30 = vmul.f32 1.0614054, %v345_v26 }
 0x237   :  { %v210_v32 = vmul.f32 1.0614054, %v347_v29  ;;  %v349_v35 = vpop.eup %348 }
 0x238   :  { %v216_v34 = vadd.f32 -1.4531521, %v212_v30  ;;  %v213_v41 = vmul.f32 1.0614054, %v349_v35  ;;  %v351_v42 = vpop.eup %350 }
 0x239   :  { %v214_v37 = vadd.f32 -1.4531521, %v210_v32  ;;  %v211_v47 = vmul.f32 1.0614054, %v351_v42  ;;  %v353_v14 = vpop.eup %352  ;;  %v276_v32 = vmul.f32 0.5, %v427_v1 }
 0x23a   :  { %v220_v39 = vmul.f32 %v345_v26, %v216_v34  ;;  %v217_v46 = vadd.f32 -1.4531521, %v213_v41  ;;  %v355_v16 = vpop.eup %354 }
 0x23b   :  { %v218_v43 = vmul.f32 %v347_v29, %v214_v37  ;;  %v215_v52 = vadd.f32 -1.4531521, %v211_v47  ;;  %v357_v24 = vpop.eup %356 }
 0x23c   :  { %v224_v45 = vadd.f32 1.4214138, %v220_v39  ;;  %v221_v51 = vmul.f32 %v349_v35, %v217_v46  ;;  %v359_v31 = vpop.eup %358 }
 0x23d   :  { %v222_v48 = vadd.f32 1.4214138, %v218_v43  ;;  %v219_v57 = vmul.f32 %v351_v42, %v215_v52  ;;  %v191_v43 = vsel %vm187_vm4, 1.0, %v360_v25 }
 0x23e   :  { %v228_v50 = vmul.f32 %v345_v26, %v224_v45  ;;  %v225_v56 = vadd.f32 1.4214138, %v221_v51 }
 0x23f   :  { %v226_v53 = vmul.f32 %v347_v29, %v222_v48  ;;  %v223_v61 = vadd.f32 1.4214138, %v219_v57 }
 0x240   :  { %v232_v55 = vadd.f32 -0.28449672, %v228_v50  ;;  %v229_v60 = vmul.f32 %v349_v35, %v225_v56 }
 0x241   :  { %v230_v58 = vadd.f32 -0.28449672, %v226_v53  ;;  %v227_v2 = vmul.f32 %v351_v42, %v223_v61 }
 0x242   :  { %v236_v59 = vmul.f32 %v345_v26, %v232_v55  ;;  %v233_v0 = vadd.f32 -0.28449672, %v229_v60 }
 0x243   :  { %v234_v62 = vmul.f32 %v347_v29, %v230_v58  ;;  %v231_v12 = vadd.f32 -0.28449672, %v227_v2 }
 0x244   :  { %v240_v63 = vadd.f32 0.2548296, %v236_v59  ;;  %v237_v10 = vmul.f32 %v349_v35, %v233_v0 }
 0x245   :  { %v238_v4 = vadd.f32 0.2548296, %v234_v62  ;;  %v235_v19 = vmul.f32 %v351_v42, %v231_v12 }
 0x246   :  { %v244_v7 = vmul.f32 %v345_v26, %v240_v63  ;;  %v241_v18 = vadd.f32 0.2548296, %v237_v10  ;;  %v190_v26 = vsel %vm186_vm2, 1.0, %v360_v25 }
 0x247   :  { %v242_v15 = vmul.f32 %v347_v29, %v238_v4  ;;  %v239_v23 = vadd.f32 0.2548296, %v235_v19 }
 0x248   :  { %v264_v17 = vmul.f32 %v353_v14, %v244_v7  ;;  %v245_v22 = vmul.f32 %v349_v35, %v241_v18 }
 0x249   :  { %v262_v20 = vmul.f32 %v355_v16, %v242_v15  ;;  %v243_v29 = vmul.f32 %v351_v42, %v239_v23 }
 0x24a   :  { %v268_v21 = vsub.f32 1.0, %v264_v17  ;;  %v265_v5 = vmul.f32 %v357_v24, %v245_v22 }
 0x24b   :  { %v266_v28 = vsub.f32 1.0, %v262_v20  ;;  %v263_v35 = vmul.f32 %v359_v31, %v243_v29 }
 0x24c   :  { %v272_v30 = vmul.f32 %v268_v21, %v192_v27  ;;  %v269_v34 = vsub.f32 1.0, %v265_v5 }
 0x24d   :  { %v270_v8 = vmul.f32 %v266_v28, %v190_v26  ;;  %v267_v41 = vsub.f32 1.0, %v263_v35 }
 0x24e   :  { %v280_v33 = vadd.f32 1.0, %v272_v30  ;;  %v273_v40 = vmul.f32 %v269_v34, %v193_v38 }
 0x24f   :  { %v278_v37 = vadd.f32 1.0, %v270_v8  ;;  %v271_v45 = vmul.f32 %v267_v41, %v191_v43 }
 0x250   :  { %v284_v39 = vmul.f32 %v280_v33, %v276_v32  ;;  %v281_v1 = vadd.f32 1.0, %v273_v40 }
 0x251   :  { %v282_v11 = vmul.f32 %v278_v37, %v274_v36  ;;  %v279_v47 = vadd.f32 1.0, %v271_v45 }
 0x252   :  { %v323_v42 = vpack.c.bf16 %v284_v39, %v284_v39  ;;  %v285_v3 = vmul.f32 %v281_v1, %v277_v44 }
 0x253   :  { %v321_v46 = vpack.c.bf16 %v282_v11, %v282_v11  ;;  %v283_v49 = vmul.f32 %v279_v47, %v275_v13 }
 0x254   :  { %305 = vst.msk [vmem:[%s480_s5 + $0x8] sm:$0xf] %vm302_vm5, %v323_v42  ;;  %v324_v48 = vpack.c.bf16 %v285_v3, %v285_v3 }
 0x255   :  { %303 = vst.msk [vmem:[%s480_s5] sm:$0xf] %vm302_vm5, %v321_v46  ;;  %v322_v6 = vpack.c.bf16 %v283_v49, %v283_v49 }
 0x256   :  { %306 = vst.msk [vmem:[%s480_s5 + $0xc] sm:$0xf] %vm302_vm5, %v324_v48 }
 0x257   :  { %304 = vst.msk [vmem:[%s480_s5 + $0x4] sm:$0xf] %vm302_vm5, %v322_v6 }

// kernel: horizon_swin_forward.31
= control target key start
LH: loop header
LB: loop body
LE: loop exit
PB: predicated region body
PF: predicated region fallthrough
CT: control target
= control target key end

     0   :  { %s1139_s12 = smov 0   ;;  %s1141_s13 = smov 0   ;;  %s1295_s0 = inlined_call_operand.vmem [shape: bf16[2,4,4,48], index: 0, kind: input, shape index: {}]   ;;  %s1296_s1 = inlined_call_operand.vmem [shape: f32[2,4,4], index: 1, kind: input, shape index: {}]   ;;  %s1297_s2 = inlined_call_operand.vmem [shape: f32[2,2,4,4], index: 2, kind: input, shape index: {}]   ;;  %s1298_s3 = inlined_call_operand.vmem [shape: bf16[2,4,4,16], index: 3, kind: output, shape index: {}]  }
   0x1   :  { %s1143_s14 = smov 0   ;;  %s1145_s15 = smov 0  }
   0x2   :  { %s1147_s16 = smov 0  }
   0x3 LB: > { %s22_s17 = sadd.s32 1, %s1099_s14  ;;  %s25_s18 = sadd.s32 1, %s1103_s15  ;;  %s1107_s16 = sphi %s1147_s16, %s13_s16   ;;  %s1103_s15 = sphi %s1145_s15, %s1302_s15   ;;  %s1099_s14 = sphi %s1143_s14, %s1301_s14   ;;  %s1095_s13 = sphi %s1141_s13, %s1300_s13   ;;  %s1091_s12 = sphi %s1139_s12, %s1299_s12  }
   0x4   : > { %p23_p0 = scmp.ge.s32.totalorder %s22_s17, 2  ;;  %p913_p1 = scmp.ge.s32.totalorder %s1107_s16, 1 }
   0x5   : > { %p168_p2 = scmp.lt.s32.totalorder %s1107_s16, 5 }
   0x6   : > { %s1304_s17 = smov (%p23_p0, %s22_s17), 0  ;;  %s1306_s18 = smov (!%p23_p0, %s25_s18), %s1103_s15 }
   0x7   : > { %p169_p3 = pnand %p913_p1, %p168_p2  ;;  %p27_p4 = scmp.ge.s32.totalorder %s1306_s18, 2 }
   0x8   : > { %s914_s19 = sshll.u32 (!%p169_p3), %s1091_s12, 1  ;;  %p206_p5 = scmp.lt.s32.totalorder (!%p169_p3), %s1095_s13, 1  ;;  %v240_v0 = vlaneseq (!%p169_p3)  ;;  %v1109_v1 = vmov (!%p169_p3), 1966171168   ;;  %v1110_v3 = vmov (!%p169_p3), 0.0   ;;  %vm1111_vm0 = vmmov (!%p169_p3), 0  }
   0x9   : > { %s1308_s18 = smov (%p27_p4, %s1306_s18), 0  ;;  %172 = sbr.rel (%p169_p3) target bundleno = 1272 (0x4f8), region = 32 }
   0xa   : > { %p208_p6 = scmp.lt.s32.totalorder (!%p169_p3), %s914_s19, 3  ;;  %v238_v2 = vunpack.c.l.s4 (!%p169_p3), %v1109_v1  ;;  %955 = vmatprep.subr.bf16.mxu0 (!%p169_p3), %v1110_v3  ;;  %961 = vmatprep.subr.bf16.mxu1 (!%p169_p3), %v1110_v3  ;;  %v1174_v5 = vshrl.u32 (!%p169_p3), %v240_v0, 7  ;;  %s1112_s26 = smov (!%p169_p3), 112   ;;  %vm253_vm1 = vcmask (!%p169_p3), 64512   ;;  %v301_v20 = vld [vmem:[%s1296_s1] sm:$0xf] (!%p169_p3) }
   0xb   : > { %957 = vmatprep.mubr.msk.bf16.mxu0 (!%p169_p3), %vm1111_vm0, %v1110_v3  ;;  %963 = vmatprep.mubr.msk.bf16.mxu1 (!%p169_p3), %vm1111_vm0, %v1110_v3  ;;  %s1113_s27 = smov (!%p169_p3), 96   ;;  %s1114_s28 = smov (!%p169_p3), 104   ;;  %vm304_vm2 = vcmask (!%p169_p3), 27648   ;;  %vm321_vm3 = vcmask (!%p169_p3), 1041408   ;;  %vm317_vm4 = vcmask (!%p169_p3), 31744   ;;  %vm500_vm5 = vcmask (!%p169_p3), 122880  }
   0xc   : > { %v239_v4 = vunpack.c.0.s8 (!%p169_p3), %v238_v2  ;;  %s1115_s29 = smov (!%p169_p3), 120   ;;  %p215_p7 = scmp.lt.s32.totalorder (!%p169_p3), %s1091_s12, 1  ;;  %v925_v51 = vld [vmem:[%s1296_s1 + $0x4] sm:$0xf] (!%p169_p3)  ;;  %v589_v60 = vld [vmem:[%s1296_s1] sm:$0xf] (!%p169_p3) }
   0xd   : > { %s1116_s9 = smov (!%p169_p3), 88   ;;  %s1117_s23 = smov (!%p169_p3), 8   ;;  %vm804_vm6 = vcmask (!%p169_p3), 123905  }
   0xe   : > { %v242_v6 = vsub.s32 (!%p169_p3), %v239_v4, %v1174_v5 }
  0x10   : > { %s1310_s13 = smov (!%p206_p5, %s1095_s13), 1  ;;  %s1312_s19 = smov (!%p208_p6, %s914_s19), 3 }
  0x11   : > { %s915_s20 = sshll.u32 %s1310_s13, 2  ;;  %s1314_s12 = smov (!%p215_p7, %s1091_s12), 1 }
  0x12   : > { %s1180_s21 = sadd.s32 %s915_s20, %s1312_s19  ;;  %s938_s30 = sshll.u32 %s1314_s12, 3 }
  0x13   : > { %s916_s22 = sshll.u32 %s1180_s21, 1  ;;  %s1205_s6 = scalar_lea.vmem %s1297_s2, %s938_s30 }
  0x14   : > { %s213_s25 = scalar_lea.vmem %s1295_s0, %s916_s22  ;;  %v233_v24 = vld [vmem:[%s1205_s6] sm:$0xf]  ;;  %v929_v0 = vld [vmem:[%s1205_s6 + $0x4] sm:$0xf] }
  0x15   : > { %v231_v7 = vld [vmem:[%s213_s25] sm:$0x1]  ;;  %v232_v8 = vld [vmem:[%s213_s25 + $0x2] sm:$0x1] }
  0x16   : > { %v236_v9 = vcombine.low %v231_v7, %v232_v8  ;;  %v927_v14 = vld.sshfl [vmem:[%s213_s25] sm:$0x10 pattern:$0x75316420]  ;;  %v934_v8 = vld [vmem:[%s1296_s1 + $0x4] sm:$0xf] }
  0x17   : > { %v928_v15 = vld.sshfl [vmem:[%s213_s25 + $0x2] sm:$0x10 pattern:$0x75316420] }
  0x18   : > { %v243_v10 = vrot.slane %v236_v9, %v242_v6  ;;  %v930_v16 = vcombine.high %v927_v14, %v928_v15 }
  0x1a   : > { %v250_v11 = vrot.slane %v243_v10, %v242_v6  ;;  %v532_v17 = vrot.slane %v930_v16, %v242_v6 }
  0x1c   : > { %251 = vrot.lane.b32.xlu0 %v250_v11, %s1112_s26  ;;  %315 = vrot.lane.b32.xlu1 %v250_v11, %s1113_s27  ;;  %v1195_v18 = vrot.slane %v532_v17, %v242_v6 }
  0x20   : > { %369 = vrot.lane.b32.xlu1 %v250_v11, %s1114_s28 }
  0x24   : > { %367 = vrot.lane.b32.xlu1 %v250_v11, %s1115_s29 }
  0x28   : > { %540 = vrot.lane.b32.xlu1 %v1195_v18, %s1112_s26  ;;  %s228_s26 = scalar_lea.vmem %s1298_s3, %s916_s22 }
  0x2c   : > { %654 = vrot.lane.b32.xlu1 %v1195_v18, %s1114_s28 }
  0x30   : > { %652 = vrot.lane.b32.xlu1 %v1195_v18, %s1115_s29 }
  0x8e   : > { %v252_v12 = vpop.permute.xlu0 %251  ;;  %v316_v29 = vpop.permute.xlu1 %315 }
  0x8f   : > { %v258_v13 = vsel %vm253_vm1, %v252_v12, 0  ;;  %v323_v30 = vsel %vm321_vm3, %v316_v29, 0 }
  0x90   : > { %956 = vmatpush3.bf16.xpose.msra.mxu0 %v258_v13  ;;  %962 = vmatpush3.bf16.msra.mxu1 %v323_v30 }
  0x91   : > { %973 = vmatprep.subr.bf16.mxu0 %v1110_v3  ;;  %967 = vmatprep.subr.bf16.mxu1 %v1110_v3 }
  0x92   : > { %v370_v34 = vpop.permute.xlu1 %369 }
  0x93   : > { %v375_v37 = vsel %vm253_vm1, %v370_v34, 0 }
  0x96   : > { %v368_v36 = vpop.permute.xlu1 %367 }
  0x97   : > { %958 = vmatmul.mubr.msk.bf16.vlgmr.msra.gmra.mrb[0].mxu0 %vm253_vm1, %v250_v11 }
  0x98   : > { %975 = vmatprep.mubr.msk.bf16.mxu0 %vm1111_vm0, %v1110_v3 }
  0x9a   : > { %v541_v39 = vpop.permute.xlu1 %540 }
  0x9b   : > { %v546_v40 = vsel %vm253_vm1, %v541_v39, 0 }
  0x9e   : > { %v655_v41 = vpop.permute.xlu1 %654 }
  0x9f   : > { %v660_v42 = vsel %vm253_vm1, %v655_v41, 0 }
  0xa2   : > { %v653_v43 = vpop.permute.xlu1 %652 }
 0x16a   : > { %v294_v19 = vpop.f32.mrb[0].mxu0 }
 0x16b   : > { %v300_v21 = vmul.f32 0.35355338, %v294_v19  ;;  %v959_v22 = vpop.f32.mrb[1].mxu0 }
 0x16c   : > { %v297_v23 = vpop.f32.mrb[2].mxu0 }
 0x16d   : > { %v302_v25 = vadd.f32 %v301_v20, %v300_v21  ;;  %v960_v26 = vpop.f32.mrb[3].mxu0 }
 0x16f   : > { %v303_v27 = vadd.f32 %v302_v25, %v233_v24 }
 0x171   : > { %v305_v28 = vsel %vm304_vm2, %v303_v27, -inf }
 0x172   : > { %306 = vmax.xlane.f32.xlu0 %v305_v28 }
 0x188   : > { %432 = vrot.lane.b32.xlu0 %v250_v11, %s1116_s9 }
 0x1ff   : > { %v307_v31 = vpop.xlane.xlu0 %306 }
 0x200   : > { %v308_v32 = vsub.f32 %v303_v27, %v307_v31 }
 0x202   : > { %v309_v33 = vmul.f32 1.442695, %v308_v32 }
 0x203   : > { %v433_v44 = vpop.permute.xlu0 %432 }
 0x204   : > { %1053 = vpow2.f32 %v309_v33  ;;  %v438_v45 = vsel %vm321_vm3, %v433_v44, 0 }
 0x205   : > { %974 = vmatpush3.bf16.msra.mxu0 %v438_v45 }
 0x206   : > { %985 = vmatprep.subr.bf16.mxu0 %v1110_v3 }
 0x20e   : > { %v1215_v35 = vpop.eup %1053 }
 0x20f   : > { %v314_v38 = vpack.c.bf16 %v1215_v35, %v1215_v35  ;;  %v311_v39 = vsel %vm304_vm2, %v1215_v35, 0.0 }
 0x211   : > { %964 = vmatmul.mubr.msk.bf16.vlgmr.msra.gmra.mrb[0].mxu1 %vm317_vm4, %v314_v38 }
 0x212   : > { %968 = vmatpush3.bf16.xpose.msra.mxu1 %v375_v37  ;;  %969 = vmatprep.mubr.msk.bf16.mxu1 %vm1111_vm0, %v1110_v3 }
 0x213   : > { %979 = vmatprep.subr.bf16.mxu1 %v1110_v3 }
 0x219   : > { %970 = vmatmul.mubr.msk.bf16.vlgmr.msra.gmra.mrb[4].mxu1 %vm253_vm1, %v368_v36 }
 0x21a   : > { %980 = vmatpush3.bf16.xpose.msra.mxu1 %v546_v40  ;;  %981 = vmatprep.mubr.msk.bf16.mxu1 %vm1111_vm0, %v1110_v3 }
 0x21b   : > { %991 = vmatprep.subr.bf16.mxu1 %v1110_v3 }
 0x221   : > { %982 = vmatmul.mubr.msk.bf16.vlgmr.msra.gmra.mrb[8].mxu1 %vm253_vm1, %v1195_v18 }
 0x222   : > { %992 = vmatpush3.bf16.xpose.msra.mxu1 %v660_v42  ;;  %993 = vmatprep.mubr.msk.bf16.mxu1 %vm1111_vm0, %v1110_v3 }
 0x229   : > { %994 = vmatmul.mubr.msk.bf16.vlgmr.msra.gmra.mrb[12].mxu1 %vm253_vm1, %v653_v43 }
 0x2e4   : > { %v1237_v46 = vpop.f32.mrb[0].mxu1 }
 0x2e5   : > { %v965_v47 = vpop.f32.mrb[1].mxu1 }
 0x2e6   : > { %v362_v48 = vpop.f32.mrb[2].mxu1 }
 0x2e7   : > { %v966_v49 = vpop.f32.mrb[3].mxu1 }
 0x2ec   : > { %v411_v50 = vpop.f32.mrb[4].mxu1 }
 0x2ed   : > { %v417_v52 = vmul.f32 0.35355338, %v411_v50  ;;  %v971_v53 = vpop.f32.mrb[5].mxu1 }
 0x2ee   : > { %v414_v54 = vpop.f32.mrb[6].mxu1 }
 0x2ef   : > { %v420_v55 = vadd.f32 %v925_v51, %v417_v52  ;;  %v972_v56 = vpop.f32.mrb[7].mxu1 }
 0x2f1   : > { %v421_v57 = vadd.f32 %v420_v55, %v233_v24 }
 0x2f3   : > { %v422_v58 = vsel %vm304_vm2, %v421_v57, -inf }
 0x2f4   : > { %423 = vmax.xlane.f32.xlu1 %v422_v58  ;;  %v582_v59 = vpop.f32.mrb[8].mxu1 }
 0x2f5   : > { %v588_v61 = vmul.f32 0.35355338, %v582_v59  ;;  %v983_v62 = vpop.f32.mrb[9].mxu1  ;;  %v1118_v59 = vmov 1983009808  }
 0x2f6   : > { %v585_v63 = vpop.f32.mrb[10].mxu1 }
 0x2f7   : > { %v590_v1 = vadd.f32 %v589_v60, %v588_v61  ;;  %v984_v2 = vpop.f32.mrb[11].mxu1  ;;  %v489_v60 = vunpack.c.l.s4 %v1118_v59 }
 0x2f9   : > { %v591_v4 = vadd.f32 %v929_v0, %v590_v1  ;;  %v490_v61 = vunpack.c.0.s8 %v489_v60 }
 0x2fb   : > { %v592_v6 = vsel %vm304_vm2, %v591_v4, -inf  ;;  %v493_v63 = vsub.s32 %v490_v61, %v1174_v5 }
 0x2fc   : > { %593 = vmax.xlane.f32.xlu0 %v592_v6  ;;  %v696_v7 = vpop.f32.mrb[12].mxu1 }
 0x2fd   : > { %v702_v9 = vmul.f32 0.35355338, %v696_v7  ;;  %v995_v10 = vpop.f32.mrb[13].mxu1 }
 0x2fe   : > { %v699_v11 = vpop.f32.mrb[14].mxu1 }
 0x2ff   : > { %v704_v12 = vadd.f32 %v934_v8, %v702_v9  ;;  %v996_v13 = vpop.f32.mrb[15].mxu1 }
 0x301   : > { %v705_v14 = vadd.f32 %v929_v0, %v704_v12 }
 0x303   : > { %v706_v15 = vsel %vm304_vm2, %v705_v14, -inf }
 0x304   : > { %707 = vmax.xlane.f32.xlu0 %v706_v15 }
 0x305   : > { %602 = vrot.lane.b32.xlu1 %v1195_v18, %s1113_s27 }
 0x31a   : > { %716 = vrot.lane.b32.xlu0 %v1195_v18, %s1116_s9 }
 0x381   : > { %v424_v16 = vpop.xlane.xlu1 %423 }
 0x382   : > { %v425_v17 = vsub.f32 %v421_v57, %v424_v16 }
 0x384   : > { %v426_v19 = vmul.f32 1.442695, %v425_v17 }
 0x385   : > { %v603_v23 = vpop.permute.xlu1 %602 }
 0x386   : > { %1055 = vpow2.f32 %v426_v19  ;;  %v608_v25 = vsel %vm321_vm3, %v603_v23, 0 }
 0x389   : > { %v594_v20 = vpop.xlane.xlu0 %593 }
 0x38a   : > { %v595_v21 = vsub.f32 %v591_v4, %v594_v20 }
 0x38c   : > { %v596_v22 = vmul.f32 1.442695, %v595_v21 }
 0x38e   : > { %1057 = vpow2.f32 %v596_v22 }
 0x390   : > { %v1056_v24 = vpop.eup %1055 }
 0x391   : > { %v708_v26 = vpop.xlane.xlu0 %707  ;;  %v428_v27 = vsel %vm304_vm2, %v1056_v24, 0.0  ;;  %v431_v28 = vpack.c.bf16 %v1056_v24, %v1056_v24 }
 0x392   : > { %v709_v29 = vsub.f32 %v705_v14, %v708_v26  ;;  %429 = vadd.xlane.f32.xlu1 %v428_v27 }
 0x393   : > { %976 = vmatmul.mubr.msk.bf16.vlgmr.msra.gmra.mrb[4].mxu0 %vm317_vm4, %v431_v28 }
 0x394   : > { %v710_v18 = vmul.f32 1.442695, %v709_v29  ;;  %986 = vmatpush3.bf16.msra.mxu0 %v608_v25  ;;  %987 = vmatprep.mubr.msk.bf16.mxu0 %vm1111_vm0, %v1110_v3 }
 0x395   : > { %997 = vmatprep.subr.bf16.mxu0 %v1110_v3  ;;  %v717_v30 = vpop.permute.xlu0 %716 }
 0x396   : > { %1059 = vpow2.f32 %v710_v18  ;;  %v722_v32 = vsel %vm321_vm3, %v717_v30, 0 }
 0x398   : > { %v1058_v31 = vpop.eup %1057 }
 0x399   : > { %v601_v33 = vpack.c.bf16 %v1058_v31, %v1058_v31  ;;  %v598_v38 = vsel %vm304_vm2, %v1058_v31, 0.0 }
 0x39b   : > { %988 = vmatmul.mubr.msk.bf16.vlgmr.msra.gmra.mrb[8].mxu0 %vm317_vm4, %v601_v33 }
 0x39c   : > { %998 = vmatpush3.bf16.msra.mxu0 %v722_v32  ;;  %999 = vmatprep.mubr.msk.bf16.mxu0 %vm1111_vm0, %v1110_v3 }
 0x3a0   : > { %v1060_v34 = vpop.eup %1059 }
 0x3a1   : > { %v712_v36 = vsel %vm304_vm2, %v1060_v34, 0.0  ;;  %v715_v37 = vpack.c.bf16 %v1060_v34, %v1060_v34 }
 0x3a2   : > { %713 = vadd.xlane.f32.xlu0 %v712_v36 }
 0x3a3   : > { %1000 = vmatmul.mubr.msk.bf16.vlgmr.msra.gmra.mrb[12].mxu0 %vm317_vm4, %v715_v37 }
 0x3a6   : > { %599 = vadd.xlane.f32.xlu0 %v598_v38 }
 0x3aa   : > { %312 = vadd.xlane.f32.xlu0 %v311_v39 }
 0x41f   : > { %v430_v40 = vpop.xlane.xlu1 %429 }
 0x420   : > { %1061 = vrcp.f32 %v430_v40 }
 0x42a   : > { %v1062_v41 = vpop.eup %1061 }
 0x42f   : > { %v714_v45 = vpop.xlane.xlu0 %713 }
 0x430   : > { %1063 = vrcp.f32 %v714_v45 }
 0x433   : > { %v600_v57 = vpop.xlane.xlu0 %599 }
 0x437   : > { %v313_v58 = vpop.xlane.xlu0 %312 }
 0x438   : > { %1065 = vrcp.f32 %v313_v58 }
 0x439   : > { %1067 = vrcp.f32 %v600_v57 }
 0x43a   : > { %v1064_v52 = vpop.eup %1063 }
 0x442   : > { %v1066_v62 = vpop.eup %1065 }
 0x443   : > { %v366_v0 = vmul.f32 %v1066_v62, %v1237_v46  ;;  %v1068_v9 = vpop.eup %1067 }
 0x466   : > { %v474_v42 = vpop.f32.mrb[4].mxu0 }
 0x467   : > { %v481_v43 = vmul.f32 %v1062_v41, %v474_v42  ;;  %v977_v3 = vpop.f32.mrb[5].mxu0 }
 0x468   : > { %v477_v44 = vpop.f32.mrb[6].mxu0 }
 0x469   : > { %483 = vrot.lane.b32.xlu1 %v481_v43, %s1117_s23  ;;  %v978_v47 = vpop.f32.mrb[7].mxu0 }
 0x46e   : > { %v644_v48 = vpop.f32.mrb[8].mxu0 }
 0x46f   : > { %v989_v49 = vpop.f32.mrb[9].mxu0  ;;  %v651_v5 = vmul.f32 %v1068_v9, %v644_v48 }
 0x470   : > { %v647_v50 = vpop.f32.mrb[10].mxu0 }
 0x471   : > { %v990_v51 = vpop.f32.mrb[11].mxu0 }
 0x476   : > { %v758_v53 = vpop.f32.mrb[12].mxu0 }
 0x477   : > { %v765_v35 = vmul.f32 %v1064_v52, %v758_v53  ;;  %v1001_v54 = vpop.f32.mrb[13].mxu0 }
 0x478   : > { %v761_v55 = vpop.f32.mrb[14].mxu0 }
 0x479   : > { %767 = vrot.lane.b32.xlu0 %v765_v35, %s1117_s23  ;;  %v1002_v56 = vpop.f32.mrb[15].mxu0 }
 0x4db   : > { %v484_v1 = vpop.permute.xlu1 %483 }
 0x4dc   : > { %v486_v2 = vsel %vm253_vm1, %v366_v0, %v484_v1 }
 0x4dd   : > { %v494_v4 = vrot.slane %v486_v2, %v493_v63 }
 0x4df   : > { %v495_v6 = vcombine.high %v494_v4, %v494_v4  ;;  %v498_v7 = vpack.c.bf16 %v494_v4, %v494_v4 }
 0x4e1   : > { %v499_v8 = vpack.c.bf16 %v495_v6, %v495_v6  ;;  %501 = vst.msk [vmem:[%s228_s26] sm:$0x1] %vm500_vm5, %v498_v7 }
 0x4e3   : > { %502 = vst.msk [vmem:[%s228_s26 + $0x2] sm:$0x1] %vm500_vm5, %v499_v8 }
 0x4eb   : > { %v768_v10 = vpop.permute.xlu0 %767 }
 0x4ec   : > { %v770_v46 = vsel %vm253_vm1, %v651_v5, %v768_v10 }
 0x4ed   : > { %v778_v11 = vrot.slane %v770_v46, %v493_v63 }
 0x4ef   : > { %v779_v12 = vcombine.high %v778_v11, %v778_v11  ;;  %v782_v13 = vpack.c.bf16 %v778_v11, %v778_v11 }
 0x4f1   : > { %v783_v14 = vpack.c.bf16 %v779_v12, %v779_v12  ;;  %v792_v15 = vrot.slane %v782_v13, %v493_v63 }
 0x4f3   : > { %v799_v16 = vrot.slane %v783_v14, %v493_v63  ;;  %v800_v17 = vrot.slane %v792_v15, 7 }
 0x4f5   : > { %v801_v19 = vrot.slane %v799_v16, 7  ;;  %805 = vst.msk [vmem:[%s228_s26] sm:$0x2] %vm804_vm6, %v800_v17 }
 0x4f7   : > { %806 = vst.msk [vmem:[%s228_s26 + $0x2] sm:$0x2] %vm804_vm6, %v801_v19 }
 0x4f8 PF: > { %s13_s16 = sadd.s32 1, %s1107_s16   ;;  %s1299_s12 = smov %s1099_s14 }
 0x4f9   : > { %p10_p8 = scmp.ge.s32.totalorder %s13_s16, 6   ;;  %s1300_s13 = smov %s1103_s15 }
 0x4fa   : > { %s1301_s14 = smov %s1304_s17  ;;  %s1302_s15 = smov %s1308_s18 }
 0x4fb   :  { %12 = sbr.rel (!%p10_p8) target bundleno = 3 (0x3), region = 67 }

// kernel: horizon_swin_forward.36
= control target key start
LH: loop header
LB: loop body
LE: loop exit
PB: predicated region body
PF: predicated region fallthrough
CT: control target
= control target key end

     0   :  { %vm26_vm0 = vcmask 261120   ;;  %v158_v8 = vmov 0.0   ;;  %vm159_vm1 = vmmov 0   ;;  %vm58_vm2 = vcmask 257024   ;;  %s214_s0 = inlined_call_operand.vmem [shape: f32[8,32], index: 0, kind: input, shape index: {}]   ;;  %s215_s3 = inlined_call_operand.vmem [shape: bf16[32,96], index: 3, kind: input, shape index: {}]   ;;  %s216_s1 = inlined_call_operand.vmem [shape: f32[1,32], index: 1, kind: input, shape index: {}]   ;;  %s217_s2 = inlined_call_operand.vmem [shape: f32[1,32], index: 2, kind: input, shape index: {}]   ;;  %s218_s4 = inlined_call_operand.vmem [shape: f32[1,96], index: 4, kind: input, shape index: {}]   ;;  %s219_s5 = inlined_call_operand.vmem [shape: bf16[8,96], index: 5, kind: output, shape index: {}]  }
   0x1   :  { %v25_v0 = vld [vmem:[%s214_s0] sm:$0xff]  ;;  %144 = vmatprep.subr.bf16.mxu0 %v158_v8  ;;  %v155_v9 = vld [vmem:[%s215_s3 + $0x8] sm:$0xff]   ;;  %148 = vmatprep.mubr.msk.bf16.mxu0 %vm159_vm1, %v158_v8  ;;  %vm129_vm3 = vcmask 781312  }
   0x2   :  { %v27_v1 = vsel %vm26_vm0, %v25_v0, 0.0  ;;  %v154_v7 = vld [vmem:[%s215_s3] sm:$0xff]  }
   0x3   :  { %28 = vadd.xlane.f32.xlu0 %v27_v1  ;;  %145 = vmatpush3.bf16.msra.mxu0 %v154_v7  ;;  %v135_v14 = vld [vmem:[%s216_s1] ss:$0 sm:$0xff] }
   0x4   :  { %146 = vmatprep.subr.bf16.mxu0 %v158_v8  ;;  %v136_v16 = vld [vmem:[%s217_s2] ss:$0 sm:$0xff] }
   0x5   :  { %v137_v21 = vld [vmem:[%s218_s4] ss:$0 sm:$0xff] }
   0x7   :  { %147 = vmatpush3.bf16.msra.mxu0 %v155_v9 }
  0x90   :  { %v29_v2 = vpop.xlane.xlu0 %28 }
  0x91   :  { %v31_v3 = vmul.f32 0.03125, %v29_v2 }
  0x93   :  { %v32_v4 = vsub.f32 %v25_v0, %v31_v3 }
  0x95   :  { %v33_v5 = vmul.f32 %v32_v4, %v32_v4 }
  0x97   :  { %v34_v6 = vsel %vm26_vm0, %v33_v5, 0.0 }
  0x98   :  { %35 = vadd.xlane.f32.xlu0 %v34_v6 }
 0x125   :  { %v36_v10 = vpop.xlane.xlu0 %35 }
 0x126   :  { %v37_v11 = vmul.f32 0.03125, %v36_v10 }
 0x128   :  { %v38_v12 = vadd.f32 1e-05, %v37_v11 }
 0x12a   :  { %156 = vrsqrt.f32 %v38_v12 }
 0x134   :  { %v157_v13 = vpop.eup %156 }
 0x135   :  { %v40_v15 = vmul.f32 %v157_v13, %v32_v4 }
 0x137   :  { %v48_v17 = vmul.f32 %v135_v14, %v40_v15 }
 0x139   :  { %v56_v18 = vadd.f32 %v136_v16, %v48_v17 }
 0x13b   :  { %v57_v19 = vpack.c.bf16 %v56_v18, %v56_v18 }
 0x13d   :  { %59 = vst.msk [vmem:[#allocation2] sm:$0xf] %vm58_vm2, %v57_v19 }
 0x144   :  { %v60_v20 = vld [vmem:[#allocation2] sm:$0xf] }
 0x145   :  { %149 = vmatmul.mubr.msk.bf16.vlgmr.msra.gmra.mrb[0].mxu0 %vm26_vm0, %v60_v20 }
 0x218   :  { %v122_v22 = vpop.f32.mrb[0].mxu0 }
 0x219   :  { %v123_v23 = vadd.f32 %v137_v21, %v122_v22  ;;  %v150_v24 = vpop.f32.mrb[1].mxu0 }
 0x21a   :  { %v125_v25 = vpop.f32.mrb[2].mxu0 }
 0x21b   :  { %v128_v26 = vpack.c.bf16 %v123_v23, %v123_v23  ;;  %v151_v27 = vpop.f32.mrb[3].mxu0 }
 0x21d   :  { %130 = vst.msk [vmem:[%s219_s5] sm:$0xf] %vm129_vm3, %v128_v26 }

// kernel: horizon_swin_forward.35
= control target key start
LH: loop header
LB: loop body
LE: loop exit
PB: predicated region body
PF: predicated region fallthrough
CT: control target
= control target key end

     0   :  { %vm26_vm0 = vcmask 523264   ;;  %v183_v8 = vmov 0.0   ;;  %vm184_vm1 = vmmov 0   ;;  %vm58_vm2 = vcmask 519168   ;;  %s245_s0 = inlined_call_operand.vmem [shape: f32[8,64], index: 0, kind: input, shape index: {}]   ;;  %s246_s3 = inlined_call_operand.vmem [shape: bf16[64,32], index: 3, kind: input, shape index: {}]   ;;  %s247_s1 = inlined_call_operand.vmem [shape: f32[1,64], index: 1, kind: input, shape index: {}]   ;;  %s248_s2 = inlined_call_operand.vmem [shape: f32[1,64], index: 2, kind: input, shape index: {}]   ;;  %s249_s4 = inlined_call_operand.vmem [shape: f32[1,32], index: 4, kind: input, shape index: {}]   ;;  %s250_s5 = inlined_call_operand.vmem [shape: f32[8,32], index: 5, kind: output, shape index: {}]  }
   0x1   :  { %v25_v0 = vld [vmem:[%s245_s0] sm:$0xff]  ;;  %163 = vmatprep.subr.bf16.mxu0 %v183_v8  ;;  %v178_v9 = vld [vmem:[%s246_s3 + $0x8] sm:$0xff]   ;;  %v179_v10 = vld [vmem:[%s246_s3 + $0x10] sm:$0xff]   ;;  %171 = vmatprep.mubr.msk.bf16.mxu0 %vm184_vm1, %v183_v8  ;;  %vm144_vm3 = vcmask 261120  }
   0x2   :  { %v27_v1 = vsel %vm26_vm0, %v25_v0, 0.0  ;;  %v177_v7 = vld [vmem:[%s246_s3] sm:$0xff]   ;;  %v180_v11 = vld [vmem:[%s246_s3 + $0x18] sm:$0xff]  }
   0x3   :  { %28 = vadd.xlane.f32.xlu0 %v27_v1  ;;  %164 = vmatpush3.bf16.msra.mxu0 %v177_v7  ;;  %v150_v16 = vld [vmem:[%s247_s1] ss:$0 sm:$0xff] }
   0x4   :  { %165 = vmatprep.subr.bf16.mxu0 %v183_v8  ;;  %v151_v18 = vld [vmem:[%s248_s2] ss:$0 sm:$0xff] }
   0x5   :  { %v152_v23 = vld [vmem:[%s249_s4] ss:$0 sm:$0xff] }
   0x7   :  { %166 = vmatpush3.bf16.msra.mxu0 %v178_v9 }
   0x8   :  { %167 = vmatprep.subr.bf16.mxu0 %v183_v8 }
   0xb   :  { %168 = vmatpush3.bf16.msra.mxu0 %v179_v10 }
   0xc   :  { %169 = vmatprep.subr.bf16.mxu0 %v183_v8 }
   0xf   :  { %170 = vmatpush3.bf16.msra.mxu0 %v180_v11 }
  0x90   :  { %v29_v2 = vpop.xlane.xlu0 %28 }
  0x91   :  { %v31_v3 = vmul.f32 0.015625, %v29_v2 }
  0x93   :  { %v32_v4 = vsub.f32 %v25_v0, %v31_v3 }
  0x95   :  { %v33_v5 = vmul.f32 %v32_v4, %v32_v4 }
  0x97   :  { %v34_v6 = vsel %vm26_vm0, %v33_v5, 0.0 }
  0x98   :  { %35 = vadd.xlane.f32.xlu0 %v34_v6 }
 0x125   :  { %v36_v12 = vpop.xlane.xlu0 %35 }
 0x126   :  { %v37_v13 = vmul.f32 0.015625, %v36_v12 }
 0x128   :  { %v38_v14 = vadd.f32 1e-05, %v37_v13 }
 0x12a   :  { %181 = vrsqrt.f32 %v38_v14 }
 0x134   :  { %v182_v15 = vpop.eup %181 }
 0x135   :  { %v40_v17 = vmul.f32 %v182_v15, %v32_v4 }
 0x137   :  { %v48_v19 = vmul.f32 %v150_v16, %v40_v17 }
 0x139   :  { %v56_v20 = vadd.f32 %v151_v18, %v48_v19 }
 0x13b   :  { %v57_v21 = vpack.c.bf16 %v56_v20, %v56_v20 }
 0x13d   :  { %59 = vst.msk [vmem:[#allocation2] sm:$0xf] %vm58_vm2, %v57_v21 }
 0x144   :  { %v60_v22 = vld [vmem:[#allocation2] sm:$0xf] }
 0x145   :  { %172 = vmatmul.mubr.msk.bf16.vlgmr.msra.gmra.mrb[0].mxu0 %vm26_vm0, %v60_v22 }
 0x218   :  { %v138_v24 = vpop.f32.mrb[0].mxu0 }
 0x219   :  { %v139_v25 = vadd.f32 %v152_v23, %v138_v24  ;;  %v173_v26 = vpop.f32.mrb[1].mxu0 }
 0x21a   :  { %v141_v27 = vpop.f32.mrb[2].mxu0 }
 0x21b   :  { %145 = vst.msk [vmem:[%s250_s5] sm:$0xff] %vm144_vm3, %v139_v25  ;;  %v174_v28 = vpop.f32.mrb[3].mxu0 }

// kernel: horizon_swin_forward.37
= control target key start
LH: loop header
LB: loop body
LE: loop exit
PB: predicated region body
PF: predicated region fallthrough
CT: control target
= control target key end

     0   :  { %s965_s9 = smov 0   ;;  %s967_s10 = smov 0   ;;  %s1092_s0 = inlined_call_operand.vmem [shape: bf16[2,2,2,96], index: 0, kind: input, shape index: {}]   ;;  %s1093_s1 = inlined_call_operand.vmem [shape: f32[4,4,4], index: 1, kind: input, shape index: {}]   ;;  %s1094_s2 = inlined_call_operand.vmem [shape: bf16[2,2,2,32], index: 2, kind: output, shape index: {}]  }
   0x1   :  { %s969_s11 = smov 0  }
   0x2 LB: > { %s24_s12 = sadd.s32 1, %s926_s10  ;;  %p770_p0 = scmp.ge.s32.totalorder %s930_s11, 1  ;;  %s930_s11 = sphi %s969_s11, %s12_s11   ;;  %s926_s10 = sphi %s967_s10, %s1096_s10   ;;  %s922_s9 = sphi %s965_s9, %s1095_s9  }
   0x3   : > { %p26_p1 = scmp.ge.s32.totalorder %s24_s12, 2  ;;  %p132_p2 = scmp.lt.s32.totalorder %s930_s11, 3 }
   0x5   : > { %s1098_s12 = smov (%p26_p1, %s24_s12), 0  ;;  %p133_p3 = pnand %p770_p0, %p132_p2 }
   0x6   : > { %p161_p4 = scmp.lt.s32.totalorder (!%p133_p3), %s922_s9, 1  ;;  %v187_v0 = vlaneseq (!%p133_p3)  ;;  %v932_v1 = vmov (!%p133_p3), 1966171168   ;;  %v933_v3 = vmov (!%p133_p3), 0.0   ;;  %vm934_vm0 = vmmov (!%p133_p3), 0   ;;  %s935_s17 = smov (!%p133_p3), 96  }
   0x7   : > { %136 = sbr.rel (%p133_p3) target bundleno = 1260 (0x4ec), region = 28  ;;  %v185_v2 = vunpack.c.l.s4 (!%p133_p3), %v932_v1  ;;  %802 = vmatprep.subr.bf16.mxu0 (!%p133_p3), %v933_v3  ;;  %808 = vmatprep.subr.bf16.mxu1 (!%p133_p3), %v933_v3  ;;  %vm200_vm1 = vcmask (!%p133_p3), 64512   ;;  %s936_s18 = smov (!%p133_p3), 64   ;;  %v248_v15 = vld [vmem:[%s1093_s1] sm:$0xf] (!%p133_p3)  ;;  %vm250_vm2 = vcmask (!%p133_p3), 27648  }
   0x8   : > { %v987_v4 = vshrl.u32 (!%p133_p3), %v187_v0, 7  ;;  %804 = vmatprep.mubr.msk.bf16.mxu0 (!%p133_p3), %vm934_vm0, %v933_v3  ;;  %810 = vmatprep.mubr.msk.bf16.mxu1 (!%p133_p3), %vm934_vm0, %v933_v3  ;;  %s937_s19 = smov (!%p133_p3), 88   ;;  %s938_s20 = smov (!%p133_p3), 120   ;;  %vm267_vm3 = vcmask (!%p133_p3), 1041408   ;;  %vm263_vm4 = vcmask (!%p133_p3), 31744   ;;  %vm668_vm5 = vcmask (!%p133_p3), 130048  }
   0x9   : > { %v186_v5 = vunpack.c.0.s8 (!%p133_p3), %v185_v2  ;;  %s939_s21 = smov (!%p133_p3), 80   ;;  %s940_s22 = smov (!%p133_p3), 112   ;;  %v776_v45 = vld [vmem:[%s1093_s1 + $0x4] sm:$0xf] (!%p133_p3)  ;;  %v779_v53 = vld [vmem:[%s1093_s1 + $0x8] sm:$0xf] (!%p133_p3) }
   0xa   : > { %s941_s23 = smov (!%p133_p3), 72   ;;  %s942_s24 = smov (!%p133_p3), 104   ;;  %v782_v61 = vld [vmem:[%s1093_s1 + $0xc] sm:$0xf] (!%p133_p3)  ;;  %vm670_vm6 = vcmask (!%p133_p3), 195584   ;;  %vm685_vm7 = vcmask (!%p133_p3), 253952  }
   0xb   : > { %v189_v6 = vsub.s32 (!%p133_p3), %v186_v5, %v987_v4  ;;  %s943_s27 = smov (!%p133_p3), 56   ;;  %s944_s6 = smov (!%p133_p3), 48  }
   0xc   : > { %s945_s7 = smov (!%p133_p3), 40   ;;  %s946_s8 = smov (!%p133_p3), 8  }
   0xd   : > { %s947_s14 = smov (!%p133_p3), 16   ;;  %s948_s15 = smov (!%p133_p3), 24  }
   0xe   : > { %s1100_s9 = smov (!%p161_p4, %s922_s9), 1 }
   0xf   : > { %s771_s13 = sshll.u32 %s1100_s9, 1 }
  0x10   : > { %s167_s16 = scalar_lea.vmem %s1092_s0, %s771_s13 }
  0x11   : > { %v179_v7 = vld [vmem:[%s167_s16] sm:$0x1]  ;;  %v180_v8 = vld [vmem:[%s167_s16 + $0x1] sm:$0x1] }
  0x12   : > { %v183_v9 = vcombine.low %v179_v7, %v180_v8 }
  0x14   : > { %v190_v10 = vrot.slane %v183_v9, %v189_v6 }
  0x16   : > { %v1000_v11 = vrot.slane %v190_v10, %v189_v6 }
  0x18   : > { %198 = vrot.lane.b32.xlu0 %v1000_v11, %s935_s17  ;;  %261 = vrot.lane.b32.xlu1 %v1000_v11, %s936_s18  ;;  %s176_s18 = scalar_lea.vmem %s1094_s2, %s771_s13 }
  0x1c   : > { %315 = vrot.lane.b32.xlu1 %v1000_v11, %s937_s19 }
  0x20   : > { %313 = vrot.lane.b32.xlu1 %v1000_v11, %s938_s20 }
  0x24   : > { %429 = vrot.lane.b32.xlu1 %v1000_v11, %s939_s21 }
  0x28   : > { %427 = vrot.lane.b32.xlu1 %v1000_v11, %s940_s22 }
  0x2c   : > { %543 = vrot.lane.b32.xlu1 %v1000_v11, %s941_s23 }
  0x30   : > { %541 = vrot.lane.b32.xlu1 %v1000_v11, %s942_s24 }
  0x8a   : > { %v199_v12 = vpop.permute.xlu0 %198  ;;  %v262_v22 = vpop.permute.xlu1 %261 }
  0x8b   : > { %v205_v13 = vsel %vm200_vm1, %v199_v12, 0  ;;  %v269_v23 = vsel %vm267_vm3, %v262_v22, 0 }
  0x8c   : > { %803 = vmatpush3.bf16.xpose.msra.mxu0 %v205_v13  ;;  %809 = vmatpush3.bf16.msra.mxu1 %v269_v23 }
  0x8d   : > { %820 = vmatprep.subr.bf16.mxu0 %v933_v3  ;;  %814 = vmatprep.subr.bf16.mxu1 %v933_v3 }
  0x8e   : > { %v316_v27 = vpop.permute.xlu1 %315 }
  0x8f   : > { %v321_v30 = vsel %vm200_vm1, %v316_v27, 0 }
  0x92   : > { %v314_v28 = vpop.permute.xlu1 %313 }
  0x93   : > { %805 = vmatmul.mubr.msk.bf16.vlgmr.msra.gmra.mrb[0].mxu0 %vm200_vm1, %v1000_v11 }
  0x94   : > { %822 = vmatprep.mubr.msk.bf16.mxu0 %vm934_vm0, %v933_v3 }
  0x96   : > { %v430_v32 = vpop.permute.xlu1 %429 }
  0x97   : > { %v435_v34 = vsel %vm200_vm1, %v430_v32, 0 }
  0x9a   : > { %v428_v33 = vpop.permute.xlu1 %427 }
  0x9e   : > { %v544_v35 = vpop.permute.xlu1 %543 }
  0x9f   : > { %v549_v36 = vsel %vm200_vm1, %v544_v35, 0 }
  0xa2   : > { %v542_v37 = vpop.permute.xlu1 %541 }
 0x166   : > { %v241_v14 = vpop.f32.mrb[0].mxu0 }
 0x167   : > { %v247_v16 = vmul.f32 0.35355338, %v241_v14  ;;  %v806_v17 = vpop.f32.mrb[1].mxu0 }
 0x168   : > { %v244_v18 = vpop.f32.mrb[2].mxu0 }
 0x169   : > { %v807_v19 = vpop.f32.mrb[3].mxu0  ;;  %v249_v20 = vadd.f32 %v248_v15, %v247_v16 }
 0x16b   : > { %v251_v21 = vsel %vm250_vm2, %v249_v20, -inf }
 0x16c   : > { %252 = vmax.xlane.f32.xlu0 %v251_v21 }
 0x182   : > { %377 = vrot.lane.b32.xlu0 %v1000_v11, %s943_s27 }
 0x1f9   : > { %v253_v24 = vpop.xlane.xlu0 %252 }
 0x1fa   : > { %v254_v25 = vsub.f32 %v249_v20, %v253_v24 }
 0x1fc   : > { %v255_v26 = vmul.f32 1.442695, %v254_v25 }
 0x1fd   : > { %v378_v38 = vpop.permute.xlu0 %377 }
 0x1fe   : > { %892 = vpow2.f32 %v255_v26  ;;  %v383_v39 = vsel %vm267_vm3, %v378_v38, 0 }
 0x1ff   : > { %821 = vmatpush3.bf16.msra.mxu0 %v383_v39 }
 0x200   : > { %832 = vmatprep.subr.bf16.mxu0 %v933_v3 }
 0x208   : > { %v1023_v29 = vpop.eup %892 }
 0x209   : > { %v260_v31 = vpack.c.bf16 %v1023_v29, %v1023_v29 }
 0x20b   : > { %811 = vmatmul.mubr.msk.bf16.vlgmr.msra.gmra.mrb[0].mxu1 %vm263_vm4, %v260_v31 }
 0x20c   : > { %815 = vmatpush3.bf16.xpose.msra.mxu1 %v321_v30  ;;  %816 = vmatprep.mubr.msk.bf16.mxu1 %vm934_vm0, %v933_v3 }
 0x20d   : > { %826 = vmatprep.subr.bf16.mxu1 %v933_v3 }
 0x213   : > { %817 = vmatmul.mubr.msk.bf16.vlgmr.msra.gmra.mrb[4].mxu1 %vm200_vm1, %v314_v28  ;;  %v257_v28 = vsel %vm250_vm2, %v1023_v29, 0.0 }
 0x214   : > { %827 = vmatpush3.bf16.xpose.msra.mxu1 %v435_v34  ;;  %828 = vmatprep.mubr.msk.bf16.mxu1 %vm934_vm0, %v933_v3 }
 0x215   : > { %838 = vmatprep.subr.bf16.mxu1 %v933_v3 }
 0x21b   : > { %829 = vmatmul.mubr.msk.bf16.vlgmr.msra.gmra.mrb[8].mxu1 %vm200_vm1, %v428_v33 }
 0x21c   : > { %839 = vmatpush3.bf16.xpose.msra.mxu1 %v549_v36  ;;  %840 = vmatprep.mubr.msk.bf16.mxu1 %vm934_vm0, %v933_v3 }
 0x223   : > { %841 = vmatmul.mubr.msk.bf16.vlgmr.msra.gmra.mrb[12].mxu1 %vm200_vm1, %v542_v37 }
 0x2de   : > { %v1044_v40 = vpop.f32.mrb[0].mxu1 }
 0x2df   : > { %v812_v41 = vpop.f32.mrb[1].mxu1 }
 0x2e0   : > { %v308_v42 = vpop.f32.mrb[2].mxu1 }
 0x2e1   : > { %v813_v43 = vpop.f32.mrb[3].mxu1 }
 0x2e6   : > { %v357_v44 = vpop.f32.mrb[4].mxu1 }
 0x2e7   : > { %v363_v46 = vmul.f32 0.35355338, %v357_v44  ;;  %v818_v47 = vpop.f32.mrb[5].mxu1 }
 0x2e8   : > { %v360_v48 = vpop.f32.mrb[6].mxu1 }
 0x2e9   : > { %v819_v49 = vpop.f32.mrb[7].mxu1  ;;  %v366_v50 = vadd.f32 %v776_v45, %v363_v46 }
 0x2eb   : > { %v367_v51 = vsel %vm250_vm2, %v366_v50, -inf }
 0x2ec   : > { %368 = vmax.xlane.f32.xlu1 %v367_v51  ;;  %v949_v51 = vmov 1983009808  }
 0x2ee   : > { %v471_v52 = vpop.f32.mrb[8].mxu1 }
 0x2ef   : > { %v477_v54 = vmul.f32 0.35355338, %v471_v52  ;;  %v830_v55 = vpop.f32.mrb[9].mxu1  ;;  %v674_v52 = vunpack.c.l.s4 %v949_v51 }
 0x2f0   : > { %v474_v56 = vpop.f32.mrb[10].mxu1 }
 0x2f1   : > { %v831_v57 = vpop.f32.mrb[11].mxu1  ;;  %v480_v58 = vadd.f32 %v779_v53, %v477_v54  ;;  %v675_v54 = vunpack.c.0.s8 %v674_v52 }
 0x2f3   : > { %v481_v59 = vsel %vm250_vm2, %v480_v58, -inf }
 0x2f4   : > { %482 = vmax.xlane.f32.xlu0 %v481_v59 }
 0x2f6   : > { %v585_v60 = vpop.f32.mrb[12].mxu1 }
 0x2f7   : > { %v591_v62 = vmul.f32 0.35355338, %v585_v60  ;;  %v842_v63 = vpop.f32.mrb[13].mxu1 }
 0x2f8   : > { %v588_v0 = vpop.f32.mrb[14].mxu1 }
 0x2f9   : > { %v843_v1 = vpop.f32.mrb[15].mxu1  ;;  %v594_v2 = vadd.f32 %v782_v61, %v591_v62 }
 0x2fb   : > { %v595_v5 = vsel %vm250_vm2, %v594_v2, -inf }
 0x2fc   : > { %596 = vmax.xlane.f32.xlu0 %v595_v5 }
 0x2fd   : > { %491 = vrot.lane.b32.xlu1 %v1000_v11, %s944_s6 }
 0x312   : > { %605 = vrot.lane.b32.xlu0 %v1000_v11, %s945_s7 }
 0x379   : > { %v369_v6 = vpop.xlane.xlu1 %368 }
 0x37a   : > { %v370_v7 = vsub.f32 %v366_v50, %v369_v6 }
 0x37c   : > { %v371_v8 = vmul.f32 1.442695, %v370_v7 }
 0x37d   : > { %v492_v13 = vpop.permute.xlu1 %491 }
 0x37e   : > { %894 = vpow2.f32 %v371_v8  ;;  %v497_v15 = vsel %vm267_vm3, %v492_v13, 0 }
 0x381   : > { %v483_v9 = vpop.xlane.xlu0 %482 }
 0x382   : > { %v484_v10 = vsub.f32 %v480_v58, %v483_v9  ;;  %v678_v58 = vsub.s32 %v675_v54, %v987_v4 }
 0x384   : > { %v485_v12 = vmul.f32 1.442695, %v484_v10 }
 0x386   : > { %896 = vpow2.f32 %v485_v12 }
 0x388   : > { %v895_v14 = vpop.eup %894 }
 0x389   : > { %v597_v16 = vpop.xlane.xlu0 %596  ;;  %v373_v17 = vsel %vm250_vm2, %v895_v14, 0.0  ;;  %v376_v18 = vpack.c.bf16 %v895_v14, %v895_v14 }
 0x38a   : > { %v598_v19 = vsub.f32 %v594_v2, %v597_v16  ;;  %374 = vadd.xlane.f32.xlu0 %v373_v17 }
 0x38b   : > { %823 = vmatmul.mubr.msk.bf16.vlgmr.msra.gmra.mrb[4].mxu0 %vm263_vm4, %v376_v18 }
 0x38c   : > { %v599_v11 = vmul.f32 1.442695, %v598_v19  ;;  %833 = vmatpush3.bf16.msra.mxu0 %v497_v15  ;;  %834 = vmatprep.mubr.msk.bf16.mxu0 %vm934_vm0, %v933_v3 }
 0x38d   : > { %844 = vmatprep.subr.bf16.mxu0 %v933_v3  ;;  %v606_v20 = vpop.permute.xlu0 %605 }
 0x38e   : > { %898 = vpow2.f32 %v599_v11  ;;  %v611_v22 = vsel %vm267_vm3, %v606_v20, 0 }
 0x390   : > { %v897_v21 = vpop.eup %896 }
 0x391   : > { %v487_v23 = vsel %vm250_vm2, %v897_v21, 0.0  ;;  %v490_v24 = vpack.c.bf16 %v897_v21, %v897_v21 }
 0x392   : > { %488 = vadd.xlane.f32.xlu1 %v487_v23 }
 0x393   : > { %835 = vmatmul.mubr.msk.bf16.vlgmr.msra.gmra.mrb[8].mxu0 %vm263_vm4, %v490_v24 }
 0x394   : > { %845 = vmatpush3.bf16.msra.mxu0 %v611_v22  ;;  %846 = vmatprep.mubr.msk.bf16.mxu0 %vm934_vm0, %v933_v3 }
 0x398   : > { %v899_v25 = vpop.eup %898 }
 0x399   : > { %v601_v26 = vsel %vm250_vm2, %v899_v25, 0.0  ;;  %v604_v27 = vpack.c.bf16 %v899_v25, %v899_v25 }
 0x39a   : > { %602 = vadd.xlane.f32.xlu0 %v601_v26 }
 0x39b   : > { %847 = vmatmul.mubr.msk.bf16.vlgmr.msra.gmra.mrb[12].mxu0 %vm263_vm4, %v604_v27 }
 0x39e   : > { %258 = vadd.xlane.f32.xlu0 %v257_v28 }
 0x417   : > { %v375_v30 = vpop.xlane.xlu0 %374 }
 0x418   : > { %900 = vrcp.f32 %v375_v30 }
 0x41f   : > { %v489_v31 = vpop.xlane.xlu1 %488 }
 0x420   : > { %902 = vrcp.f32 %v489_v31 }
 0x422   : > { %v901_v32 = vpop.eup %900 }
 0x427   : > { %v603_v36 = vpop.xlane.xlu0 %602 }
 0x428   : > { %904 = vrcp.f32 %v603_v36 }
 0x42a   : > { %v903_v38 = vpop.eup %902 }
 0x42b   : > { %v259_v50 = vpop.xlane.xlu0 %258 }
 0x42c   : > { %906 = vrcp.f32 %v259_v50 }
 0x432   : > { %v905_v44 = vpop.eup %904 }
 0x436   : > { %v907_v53 = vpop.eup %906 }
 0x437   : > { %v312_v56 = vmul.f32 %v907_v53, %v1044_v40 }
 0x45e   : > { %v419_v33 = vpop.f32.mrb[4].mxu0 }
 0x45f   : > { %v426_v34 = vmul.f32 %v901_v32, %v419_v33  ;;  %v824_v35 = vpop.f32.mrb[5].mxu0 }
 0x460   : > { %v422_v3 = vpop.f32.mrb[6].mxu0 }
 0x461   : > { %656 = vrot.lane.b32.xlu0 %v426_v34, %s946_s8  ;;  %v825_v37 = vpop.f32.mrb[7].mxu0 }
 0x466   : > { %v533_v39 = vpop.f32.mrb[8].mxu0 }
 0x467   : > { %v540_v41 = vmul.f32 %v903_v38, %v533_v39  ;;  %v836_v42 = vpop.f32.mrb[9].mxu0 }
 0x468   : > { %v536_v29 = vpop.f32.mrb[10].mxu0 }
 0x469   : > { %660 = vrot.lane.b32.xlu1 %v540_v41, %s947_s14  ;;  %v837_v43 = vpop.f32.mrb[11].mxu0 }
 0x46e   : > { %v647_v45 = vpop.f32.mrb[12].mxu0 }
 0x46f   : > { %v654_v46 = vmul.f32 %v905_v44, %v647_v45  ;;  %v848_v47 = vpop.f32.mrb[13].mxu0 }
 0x470   : > { %v650_v48 = vpop.f32.mrb[14].mxu0 }
 0x471   : > { %664 = vrot.lane.b32.xlu0 %v654_v46, %s948_s15  ;;  %v849_v49 = vpop.f32.mrb[15].mxu0 }
 0x4d3   : > { %v657_v55 = vpop.permute.xlu0 %656 }
 0x4d4   : > { %v667_v59 = vsel %vm200_vm1, %v312_v56, %v657_v55 }
 0x4db   : > { %v661_v57 = vpop.permute.xlu1 %660 }
 0x4dc   : > { %v669_v60 = vsel %vm668_vm5, %v667_v59, %v661_v57 }
 0x4e3   : > { %v665_v61 = vpop.permute.xlu0 %664 }
 0x4e4   : > { %v671_v62 = vsel %vm670_vm6, %v669_v60, %v665_v61 }
 0x4e5   : > { %v679_v63 = vrot.slane %v671_v62, %v678_v58 }
 0x4e7   : > { %v680_v0 = vcombine.high %v679_v63, %v679_v63  ;;  %v683_v1 = vpack.c.bf16 %v679_v63, %v679_v63 }
 0x4e9   : > { %v684_v40 = vpack.c.bf16 %v680_v0, %v680_v0  ;;  %686 = vst.msk [vmem:[%s176_s18] sm:$0x1] %vm685_vm7, %v683_v1 }
 0x4eb   : > { %687 = vst.msk [vmem:[%s176_s18 + $0x1] sm:$0x1] %vm685_vm7, %v684_v40 }
 0x4ec PF: > { %s12_s11 = sadd.s32 1, %s930_s11   ;;  %s1095_s9 = smov %s926_s10 }
 0x4ed   : > { %p9_p5 = scmp.ge.s32.totalorder %s12_s11, 4   ;;  %s1096_s10 = smov %s1098_s12 }
 0x4ef   :  { %11 = sbr.rel (!%p9_p5) target bundleno = 2 (0x2), region = 61 }

// kernel: horizon_swin_forward.38
= control target key start
LH: loop header
LB: loop body
LE: loop exit
PB: predicated region body
PF: predicated region fallthrough
CT: control target
= control target key end

     0   :  { %v120_v0 = vmov 0.0   ;;  %vm121_vm0 = vmmov 0   ;;  %vm31_vm1 = vcmask 261120   ;;  %s171_s1 = inlined_call_operand.vmem [shape: bf16[32,32], index: 1, kind: input, shape index: {}]   ;;  %s172_s2 = inlined_call_operand.vmem [shape: f32[1,32], index: 2, kind: input, shape index: {}]   ;;  %s173_s3 = inlined_call_operand.vmem [shape: f32[8,32], index: 3, kind: input, shape index: {}]   ;;  %s174_s4 = inlined_call_operand.vmem [shape: f32[8,32], index: 4, kind: output, shape index: {}]   ;;  %s175_s0 = inlined_call_operand.vmem [shape: bf16[8,32], index: 0, kind: input, shape index: {}]  }
   0x1   :  { %108 = vmatprep.subr.bf16.mxu0 %v120_v0  ;;  %v118_v1 = vld [vmem:[%s171_s1] sm:$0xff]   ;;  %112 = vmatprep.mubr.msk.bf16.mxu0 %vm121_vm0, %v120_v0  ;;  %v119_v2 = vld [vmem:[%s171_s1 + $0x8] sm:$0xff]  }
   0x2   :  { %109 = vmatpush3.bf16.msra.mxu0 %v118_v1  ;;  %v101_v3 = vld [vmem:[%s172_s2] ss:$0 sm:$0xff] }
   0x3   :  { %v29_v4 = vld [vmem:[%s173_s3] sm:$0xff]  ;;  %110 = vmatprep.subr.bf16.mxu0 %v120_v0 }
   0x4   :  { %v30_v5 = vadd.f32 %v101_v3, %v29_v4  ;;  %v34_v6 = vld [vmem:[%s175_s0] sm:$0xf] }
   0x6   :  { %32 = vst.msk [vmem:[%s174_s4] sm:$0xff] %vm31_vm1, %v30_v5  ;;  %111 = vmatpush3.bf16.msra.mxu0 %v119_v2 }
   0x9   :  { %113 = vmatmul.mubr.msk.bf16.vlgmr.msra.gmra.mrb[0].mxu0 %vm31_vm1, %v34_v6 }
   0xd   :  { %v33_v7 = vld [vmem:[%s174_s4] sm:$0xff] }
  0xdc   :  { %v89_v8 = vpop.f32.mrb[0].mxu0 }
  0xdd   :  { %v95_v9 = vadd.f32 %v89_v8, %v33_v7  ;;  %v114_v10 = vpop.f32.mrb[1].mxu0 }
  0xde   :  { %v92_v11 = vpop.f32.mrb[2].mxu0 }
  0xdf   :  { %96 = vst.msk [vmem:[%s174_s4] sm:$0xff] %vm31_vm1, %v95_v9  ;;  %v115_v12 = vpop.f32.mrb[3].mxu0 }

// kernel: horizon_swin_forward.40
= control target key start
LH: loop header
LB: loop body
LE: loop exit
PB: predicated region body
PF: predicated region fallthrough
CT: control target
= control target key end

     0   :  { %v194_v0 = vmov 0.0   ;;  %vm195_vm0 = vmmov 0   ;;  %vm31_vm1 = vcmask 261120   ;;  %s265_s1 = inlined_call_operand.vmem [shape: bf16[128,32], index: 1, kind: input, shape index: {}]   ;;  %s266_s2 = inlined_call_operand.vmem [shape: f32[1,32], index: 2, kind: input, shape index: {}]   ;;  %s267_s3 = inlined_call_operand.vmem [shape: f32[8,32], index: 3, kind: input, shape index: {}]   ;;  %s268_s4 = inlined_call_operand.vmem [shape: f32[8,32], index: 4, kind: output, shape index: {}]   ;;  %s269_s0 = inlined_call_operand.vmem [shape: bf16[8,128], index: 0, kind: input, shape index: {}]  }
   0x1   :  { %164 = vmatprep.subr.bf16.mxu0 %v194_v0  ;;  %v186_v1 = vld [vmem:[%s265_s1] sm:$0xff]   ;;  %180 = vmatprep.mubr.msk.bf16.mxu0 %vm195_vm0, %v194_v0  ;;  %v187_v2 = vld [vmem:[%s265_s1 + $0x8] sm:$0xff]   ;;  %v188_v3 = vld [vmem:[%s265_s1 + $0x10] sm:$0xff]  }
   0x2   :  { %165 = vmatpush3.bf16.msra.mxu0 %v186_v1  ;;  %v146_v4 = vld [vmem:[%s266_s2] ss:$0 sm:$0xff]  ;;  %v189_v7 = vld [vmem:[%s265_s1 + $0x18] sm:$0xff]   ;;  %v191_v9 = vld [vmem:[%s265_s1 + $0x28] sm:$0xff]  }
   0x3   :  { %166 = vmatprep.subr.bf16.mxu0 %v194_v0  ;;  %v29_v5 = vld [vmem:[%s267_s3] sm:$0xff]  ;;  %v192_v10 = vld [vmem:[%s265_s1 + $0x30] sm:$0xff]   ;;  %v193_v11 = vld [vmem:[%s265_s1 + $0x38] sm:$0xff]  }
   0x4   :  { %v30_v6 = vadd.f32 %v146_v4, %v29_v5  ;;  %v190_v8 = vld [vmem:[%s265_s1 + $0x20] sm:$0xff]  }
   0x5   :  { %v34_v12 = vld [vmem:[%s269_s0] sm:$0xf] }
   0x6   :  { %167 = vmatpush3.bf16.msra.mxu0 %v187_v2  ;;  %32 = vst.msk [vmem:[%s268_s4] sm:$0xff] %vm31_vm1, %v30_v6 }
   0x7   :  { %168 = vmatprep.subr.bf16.mxu0 %v194_v0 }
   0xa   :  { %169 = vmatpush3.bf16.msra.mxu0 %v188_v3 }
   0xb   :  { %170 = vmatprep.subr.bf16.mxu0 %v194_v0 }
   0xd   :  { %v33_v13 = vld [vmem:[%s268_s4] sm:$0xff] }
   0xe   :  { %171 = vmatpush3.bf16.msra.mxu0 %v189_v7 }
   0xf   :  { %172 = vmatprep.subr.bf16.mxu0 %v194_v0 }
  0x12   :  { %173 = vmatpush3.bf16.msra.mxu0 %v190_v8 }
  0x13   :  { %174 = vmatprep.subr.bf16.mxu0 %v194_v0 }
  0x16   :  { %175 = vmatpush3.bf16.msra.mxu0 %v191_v9 }
  0x17   :  { %176 = vmatprep.subr.bf16.mxu0 %v194_v0 }
  0x1a   :  { %177 = vmatpush3.bf16.msra.mxu0 %v192_v10 }
  0x1b   :  { %178 = vmatprep.subr.bf16.mxu0 %v194_v0 }
  0x1e   :  { %179 = vmatpush3.bf16.msra.mxu0 %v193_v11 }
  0x21   :  { %181 = vmatmul.mubr.bf16.vlgmr.msra.gmra.mrb[0].mxu0 %v34_v12 }
  0xf4   :  { %v133_v14 = vpop.f32.mrb[0].mxu0 }
  0xf5   :  { %v139_v15 = vadd.f32 %v133_v14, %v33_v13  ;;  %v182_v16 = vpop.f32.mrb[1].mxu0 }
  0xf6   :  { %v136_v17 = vpop.f32.mrb[2].mxu0 }
  0xf7   :  { %141 = vst.msk [vmem:[%s268_s4] sm:$0xff] %vm31_vm1, %v139_v15  ;;  %v183_v18 = vpop.f32.mrb[3].mxu0 }

// kernel: horizon_swin_forward.39
= control target key start
LH: loop header
LB: loop body
LE: loop exit
PB: predicated region body
PF: predicated region fallthrough
CT: control target
= control target key end

     0   :  { %vm26_vm0 = vcmask 261120   ;;  %v188_v8 = vmov 0.0   ;;  %vm189_vm1 = vmmov 0   ;;  %vm58_vm2 = vcmask 257024   ;;  %s245_s0 = inlined_call_operand.vmem [shape: f32[8,32], index: 0, kind: input, shape index: {}]   ;;  %s246_s3 = inlined_call_operand.vmem [shape: bf16[32,128], index: 3, kind: input, shape index: {}]   ;;  %s247_s1 = inlined_call_operand.vmem [shape: f32[1,32], index: 1, kind: input, shape index: {}]   ;;  %s248_s2 = inlined_call_operand.vmem [shape: f32[1,32], index: 2, kind: input, shape index: {}]   ;;  %s249_s4 = inlined_call_operand.vmem [shape: f32[1,128], index: 4, kind: input, shape index: {}]   ;;  %s250_s5 = inlined_call_operand.vmem [shape: bf16[8,128], index: 5, kind: output, shape index: {}]  }
   0x1   :  { %v25_v0 = vld [vmem:[%s245_s0] sm:$0xff]  ;;  %169 = vmatprep.subr.bf16.mxu0 %v188_v8  ;;  %v181_v9 = vld [vmem:[%s246_s3 + $0x8] sm:$0xff]   ;;  %173 = vmatprep.mubr.msk.bf16.mxu0 %vm189_vm1, %v188_v8  ;;  %v190_v47 = vmov -1.0  }
   0x2   :  { %v27_v1 = vsel %vm26_vm0, %v25_v0, 0.0  ;;  %v180_v7 = vld [vmem:[%s246_s3] sm:$0xff]  }
   0x3   :  { %28 = vadd.xlane.f32.xlu0 %v27_v1  ;;  %170 = vmatpush3.bf16.msra.mxu0 %v180_v7  ;;  %v160_v14 = vld [vmem:[%s247_s1] ss:$0 sm:$0xff] }
   0x4   :  { %171 = vmatprep.subr.bf16.mxu0 %v188_v8  ;;  %v161_v16 = vld [vmem:[%s248_s2] ss:$0 sm:$0xff] }
   0x5   :  { %v162_v21 = vld [vmem:[%s249_s4] ss:$0 sm:$0xff] }
   0x7   :  { %172 = vmatpush3.bf16.msra.mxu0 %v181_v9 }
  0x90   :  { %v29_v2 = vpop.xlane.xlu0 %28 }
  0x91   :  { %v31_v3 = vmul.f32 0.03125, %v29_v2 }
  0x93   :  { %v32_v4 = vsub.f32 %v25_v0, %v31_v3 }
  0x95   :  { %v33_v5 = vmul.f32 %v32_v4, %v32_v4 }
  0x97   :  { %v34_v6 = vsel %vm26_vm0, %v33_v5, 0.0 }
  0x98   :  { %35 = vadd.xlane.f32.xlu0 %v34_v6 }
 0x125   :  { %v36_v10 = vpop.xlane.xlu0 %35 }
 0x126   :  { %v37_v11 = vmul.f32 0.03125, %v36_v10 }
 0x128   :  { %v38_v12 = vadd.f32 1e-05, %v37_v11 }
 0x12a   :  { %182 = vrsqrt.f32 %v38_v12 }
 0x134   :  { %v183_v13 = vpop.eup %182 }
 0x135   :  { %v40_v15 = vmul.f32 %v183_v13, %v32_v4 }
 0x137   :  { %v48_v17 = vmul.f32 %v160_v14, %v40_v15 }
 0x139   :  { %v56_v18 = vadd.f32 %v161_v16, %v48_v17 }
 0x13b   :  { %v57_v19 = vpack.c.bf16 %v56_v18, %v56_v18 }
 0x13d   :  { %59 = vst.msk [vmem:[#allocation2] sm:$0xf] %vm58_vm2, %v57_v19 }
 0x144   :  { %v60_v20 = vld [vmem:[#allocation2] sm:$0xf] }
 0x145   :  { %174 = vmatmul.mubr.msk.bf16.vlgmr.msra.gmra.mrb[0].mxu0 %vm26_vm0, %v60_v20 }
 0x218   :  { %v122_v22 = vpop.f32.mrb[0].mxu0 }
 0x219   :  { %v123_v23 = vadd.f32 %v162_v21, %v122_v22  ;;  %v175_v24 = vpop.f32.mrb[1].mxu0 }
 0x21a   :  { %v125_v25 = vpop.f32.mrb[2].mxu0 }
 0x21b   :  { %v128_v26 = vmul.f32 0.70710677, %v123_v23  ;;  %v176_v27 = vpop.f32.mrb[3].mxu0  ;;  %v151_v50 = vmul.f32 0.5, %v123_v23 }
 0x21d   :  { %v131_v28 = vand.u32 2147483647, %v128_v26  ;;  %vm129_vm3 = vcmp.ge.f32.partialorder %v128_v26, 0.0 }
 0x21e   :  { %v130_v48 = vsel %vm129_vm3, 1.0, %v190_v47 }
 0x21f   :  { %v132_v29 = vmul.f32 0.3275911, %v131_v28  ;;  %v144_v31 = vsub.f32 0.0, %v131_v28 }
 0x221   :  { %v133_v30 = vadd.f32 1.0, %v132_v29  ;;  %v145_v33 = vmul.f32 %v144_v31, %v131_v28 }
 0x223   :  { %184 = vrcp.f32 %v133_v30  ;;  %v146_v36 = vmul.f32 1.442695, %v145_v33 }
 0x225   :  { %186 = vpow2.f32 %v146_v36 }
 0x22d   :  { %v185_v32 = vpop.eup %184 }
 0x22e   :  { %v135_v34 = vmul.f32 1.0614054, %v185_v32 }
 0x22f   :  { %v187_v44 = vpop.eup %186 }
 0x230   :  { %v136_v35 = vadd.f32 -1.4531521, %v135_v34 }
 0x232   :  { %v137_v37 = vmul.f32 %v185_v32, %v136_v35 }
 0x234   :  { %v138_v38 = vadd.f32 1.4214138, %v137_v37 }
 0x236   :  { %v139_v39 = vmul.f32 %v185_v32, %v138_v38 }
 0x238   :  { %v140_v40 = vadd.f32 -0.28449672, %v139_v39 }
 0x23a   :  { %v141_v41 = vmul.f32 %v185_v32, %v140_v40 }
 0x23c   :  { %v142_v42 = vadd.f32 0.2548296, %v141_v41 }
 0x23e   :  { %v143_v43 = vmul.f32 %v185_v32, %v142_v42 }
 0x240   :  { %v148_v45 = vmul.f32 %v187_v44, %v143_v43 }
 0x242   :  { %v149_v46 = vsub.f32 1.0, %v148_v45 }
 0x244   :  { %v150_v49 = vmul.f32 %v149_v46, %v130_v48 }
 0x246   :  { %v152_v51 = vadd.f32 1.0, %v150_v49 }
 0x248   :  { %v153_v52 = vmul.f32 %v152_v51, %v151_v50 }
 0x24a   :  { %v154_v53 = vpack.c.bf16 %v153_v52, %v153_v52 }
 0x24c   :  { %155 = vst [vmem:[%s250_s5] sm:$0xf] %v154_v53 }

// kernel: horizon_swin_forward.46
= control target key start
LH: loop header
LB: loop body
LE: loop exit
PB: predicated region body
PF: predicated region fallthrough
CT: control target
= control target key end

     0   :  { %vm15_vm0 = vcmask 261120   ;;  %s90_s0 = inlined_call_operand.vmem [shape: f32[8,32], index: 0, kind: input, shape index: {}]   ;;  %s91_s1 = inlined_call_operand.vmem [shape: f32[1,32], index: 1, kind: input, shape index: {}]   ;;  %s92_s2 = inlined_call_operand.vmem [shape: f32[1,32], index: 2, kind: input, shape index: {}]   ;;  %s93_s3 = inlined_call_operand.vmem [shape: f32[8,32], index: 3, kind: output, shape index: {}]  }
   0x1   :  { %v14_v0 = vld [vmem:[%s90_s0] sm:$0xff] }
   0x2   :  { %v16_v1 = vsel %vm15_vm0, %v14_v0, 0.0  ;;  %v51_v11 = vld [vmem:[%s91_s1] ss:$0 sm:$0xff] }
   0x3   :  { %17 = vadd.xlane.f32.xlu0 %v16_v1  ;;  %v52_v13 = vld [vmem:[%s92_s2] ss:$0 sm:$0xff] }
  0x90   :  { %v18_v2 = vpop.xlane.xlu0 %17 }
  0x91   :  { %v20_v3 = vmul.f32 0.03125, %v18_v2 }
  0x93   :  { %v21_v4 = vsub.f32 %v14_v0, %v20_v3 }
  0x95   :  { %v22_v5 = vmul.f32 %v21_v4, %v21_v4 }
  0x97   :  { %v23_v6 = vsel %vm15_vm0, %v22_v5, 0.0 }
  0x98   :  { %24 = vadd.xlane.f32.xlu0 %v23_v6 }
 0x125   :  { %v25_v7 = vpop.xlane.xlu0 %24 }
 0x126   :  { %v26_v8 = vmul.f32 0.03125, %v25_v7 }
 0x128   :  { %v27_v9 = vadd.f32 1e-05, %v26_v8 }
 0x12a   :  { %53 = vrsqrt.f32 %v27_v9 }
 0x134   :  { %v54_v10 = vpop.eup %53 }
 0x135   :  { %v29_v12 = vmul.f32 %v54_v10, %v21_v4 }
 0x137   :  { %v37_v14 = vmul.f32 %v51_v11, %v29_v12 }
 0x139   :  { %v45_v15 = vadd.f32 %v52_v13, %v37_v14 }
 0x13b   :  { %46 = vst.msk [vmem:[%s93_s3] sm:$0xff] %vm15_vm0, %v45_v15 }

// kernel: horizon_swin_forward.47
= control target key start
LH: loop header
LB: loop body
LE: loop exit
PB: predicated region body
PF: predicated region fallthrough
CT: control target
= control target key end

     0   :  { %v153_v1 = vmov 0.0   ;;  %vm154_vm0 = vmmov 0   ;;  %vm27_vm1 = vcmask 74752   ;;  %s202_s0 = inlined_call_operand.vmem [shape: f32[2,32], index: 0, kind: input, shape index: {}]   ;;  %s203_s1 = inlined_call_operand.vmem [shape: bf16[32,10], index: 1, kind: input, shape index: {}]   ;;  %s204_s2 = inlined_call_operand.vmem [shape: f32[1,10], index: 2, kind: input, shape index: {}]   ;;  %s205_s3 = inlined_call_operand.hbm [shape: f32[2,10], index: 3, kind: output, shape index: {}]  }
   0x1   :  { %v127_v0 = vld [vmem:[%s203_s1] sm:$0xff]   ;;  %116 = vmatprep.subr.bf16.mxu0 %v153_v1  ;;  %v128_v2 = vld [vmem:[%s203_s1 + $0x8] sm:$0xff]   ;;  %120 = vmatprep.mubr.msk.bf16.mxu0 %vm154_vm0, %v153_v1 }
   0x2   :  { %117 = vmatpush3.bf16.msra.mxu0 %v127_v0  ;;  %v30_v3 = vld [vmem:[%s202_s0] sm:$0x3] }
   0x3   :  { %v109_v4 = vld [vmem:[%s204_s2] ss:$0 sm:$0xff]  ;;  %118 = vmatprep.subr.bf16.mxu0 %v153_v1 }
   0x4   :  { %28 = vst.msk [vmem:[#allocation2] sm:$0x3] %vm27_vm1, %v109_v4 }
   0x5   :  { %8 = vsyncpa [#allocation3], 0  ;;  %v31_v5 = vpack.c.bf16 %v30_v3, %v30_v3  ;;  %vm48_vm2 = vcmask 261120   ;;  %s155_s1 = smov [#allocation2]  }
   0x6   :  { %119 = vmatpush3.bf16.msra.mxu0 %v128_v2  ;;  %s101_s20 = sshll.u32 %s155_s1, 4  ;;  %s102_s20 = int_to_ptr.vmem [resolvable:$true] %s101_s20 }
   0x7   :  { %s129_s0 = scalar_lea.vmem %s102_s20, 32  ;;  %p134_p1 = scmp.lt.s32.totalorder %s102_s20, %s102_s20 }
   0x8   :  { %p130_p0 = scmp.ne.s32.totalorder %s102_s20, %s129_s0  ;;  %p135_p2 = scmp.lt.s32.totalorder %s129_s0, %s129_s0 }
   0x9   :  { %121 = vmatmul.mubr.msk.bf16.vlgmr.msra.gmra.mrb[0].mxu0 %vm48_vm2, %v31_v5 }
   0xa   :  { %p136_p3 = por %p135_p2, %p134_p1 }
   0xb   :  { %v29_v6 = vld [vmem:[#allocation2] sm:$0x3] }
   0xc   :  { %p137_p4 = pnand %p136_p3, %p130_p0 }
  0xdc   :  { %v86_v7 = vpop.f32.mrb[0].mxu0 }
  0xdd   :  { %v92_v8 = vadd.f32 %v86_v7, %v29_v6  ;;  %v122_v9 = vpop.f32.mrb[1].mxu0 }
  0xde   :  { %v89_v10 = vpop.f32.mrb[2].mxu0 }
  0xdf   :  { %94 = vst.msk [vmem:[#allocation2] sm:$0x3] %vm27_vm1, %v92_v8  ;;  %v123_v11 = vpop.f32.mrb[3].mxu0 }
  0xe0   :  { %140 = shalt.err (!%p137_p4)
}
  0xe1   :  { %s141_s22 = scalar_lea.hbm %s205_s3, 32 }
  0xe2   :  { %p142_p5 = scmp.ne.s32.totalorder %s205_s3, %s141_s22  ;;  %p145_p6 = scmp.lt.u32.totalorder %s141_s22, %s205_s3 }
  0xe4   :  { %p147_p7 = pnand %p145_p6, %p142_p5 }
  0xe6   :  { %150 = shalt.err (!%p147_p7)
}
  0xe7   :  { %104 = dma.vmem_to_hbm [thread:$0]  %s102_s20, 32, %s205_s3, [#allocation3]  }
  0xe8   :  { %151 = dma.done.wait [#allocation3], 32  }
  0xe9   :  { %152 = vsyncadd [#allocation3], 4294967264 }
  0xea   :  { %108 = vsyncpa [#allocation3], 1 }

</bundles_post_ra>
